<compile_context>
chip_gen: v7x
topology: tpu7x:2x2x1
jax: 0.10.0
libtpu: 0.0.40
codegen_flags: <defaults>
</compile_context>

<pallas_src>
import math

import numpy as np
import jax
import jax.numpy as jnp
from jax.experimental import pallas as pl
from jax.experimental.pallas import tpu as pltpu

D_MODEL = 32
HEADS = 4
DK = D_MODEL // HEADS
D_FF = 64
N_LAYERS = 2
VOCAB = 50
EPS = 1e-5

# ---- static offsets into the packed per-layer slabs --------------------------
# weight slab w32: (L, 32, 256) -> [Wqkv_self | Wo_self | Wq_cross | Wo_cross | W1]
WO_SQKV, WO_SO, WO_CQ, WO_CO, WO_F1 = 0, 96, 128, 160, 192
# bias/norm slab: (L, 1, 480)
BO_SQKV, BO_SO, BO_CQ, BO_CO, BO_F1, BO_F2 = 0, 96, 128, 160, 192, 256
BO_G1, BO_B1, BO_G2, BO_B2, BO_G3, BO_B3 = 288, 320, 352, 384, 416, 448


# ----------------------------- fused Pallas kernel ---------------------------

def _decoder_kernel(
    # data
    x_ref, enc_ref, pe_ref, tbias_ref, sbias_ref,
    # packed weights / biases
    w32_ref, fw2_ref, ckvw_ref, ckvb_ref, bias_ref, fgb_ref,
    # output
    o_ref,
):
    B, T, D = x_ref.shape
    S = enc_ref.shape[1]
    BT = B * T
    HB = HEADS * B

    # positional encoding:  x * sqrt(d_model) + pe[:, :T]   (dropout = identity)
    x = x_ref[...] * math.sqrt(D_MODEL) + pe_ref[...]              # (B,T,D)

    # additive mask biases (precomputed in wrapper, head-tiled with order (h,b))
    tbias = tbias_ref[...]                                          # (H*B,T,T)
    sbias = sbias_ref[...]                                          # (H*B,T,S)

    def layernorm(x3, g, b):
        mu = jnp.mean(x3, axis=-1, keepdims=True)
        var = jnp.mean((x3 - mu) ** 2, axis=-1, keepdims=True)
        return (x3 - mu) * jax.lax.rsqrt(var + EPS) * g + b

    def head_stack(m2, tk):
        # (B*tk, D) feature-major -> (H*B, tk, DK) head-batched (order h, b, t)
        parts = [m2[:, h * DK:(h + 1) * DK] for h in range(HEADS)]
        return jnp.concatenate(parts, axis=0).reshape(HB, tk, DK)

    def head_merge(o):
        # (H*B, Tq, DK) -> (B*Tq, H*DK = D)  == concat-heads along features
        tq = o.shape[1]
        parts = [o[h * B:(h + 1) * B].reshape(B * tq, DK) for h in range(HEADS)]
        return jnp.concatenate(parts, axis=-1)

    def attend(qh, kh, vh, bias_h):
        # ONE batched score matmul + ONE softmax chain for all heads
        s = jnp.einsum('bqd,bkd->bqk', qh, kh,
                       preferred_element_type=jnp.float32) + bias_h
        m = jnp.max(s, axis=-1, keepdims=True)
        e = jnp.exp(s - m)
        inv = pl.reciprocal(jnp.sum(e, axis=-1, keepdims=True), approx=True)
        o = jnp.einsum('bqk,bkd->bqd', e * inv, vh,
                       preferred_element_type=jnp.float32)          # (H*B,Tq,DK)
        return head_merge(o)

    # ---- hoisted cross-attention K/V of `enc` for ALL layers (one matmul) ----
    enc2 = enc_ref[...].reshape(B * S, D)
    enc_kv = (jnp.dot(enc2, ckvw_ref[...], preferred_element_type=jnp.float32)
              + ckvb_ref[...])                                      # (B*S, L*2*D)
    enc_kh, enc_vh = [], []
    for li in range(N_LAYERS):
        k2 = enc_kv[:, li * 2 * D: li * 2 * D + D]
        v2 = enc_kv[:, li * 2 * D + D: (li + 1) * 2 * D]
        enc_kh.append(head_stack(k2, S))
        enc_vh.append(head_stack(v2, S))

    # ---- decoder layers (static unroll) ----
    for li in range(N_LAYERS):
        def w(lo, hi):
            return w32_ref[li, :, lo:hi]

        def bvec(lo, hi):
            return bias_ref[li, :, lo:hi]

        # x = x + SelfAttn(LN1(x), trg_mask)
        xn2 = layernorm(x, bvec(BO_G1, BO_G1 + D),
                        bvec(BO_B1, BO_B1 + D)).reshape(BT, D)
        qkv = (jnp.dot(xn2, w(WO_SQKV, WO_SQKV + 3 * D),
                       preferred_element_type=jnp.float32)
               + bvec(BO_SQKV, BO_SQKV + 3 * D))                    # (BT, 96)
        a = attend(head_stack(qkv[:, 0:D], T),
                   head_stack(qkv[:, D:2 * D], T),
                   head_stack(qkv[:, 2 * D:3 * D], T), tbias)
        a = (jnp.dot(a, w(WO_SO, WO_SO + D),
                     preferred_element_type=jnp.float32)
             + bvec(BO_SO, BO_SO + D))
        x = x + a.reshape(B, T, D)

        # x = x + CrossAttn(LN2(x), e_outputs, src_mask)  (K/V precomputed above)
        xn2 = layernorm(x, bvec(BO_G2, BO_G2 + D),
                        bvec(BO_B2, BO_B2 + D)).reshape(BT, D)
        q = (jnp.dot(xn2, w(WO_CQ, WO_CQ + D),
                     preferred_element_type=jnp.float32)
             + bvec(BO_CQ, BO_CQ + D))
        a = attend(head_stack(q, T), enc_kh[li], enc_vh[li], sbias)
        a = (jnp.dot(a, w(WO_CO, WO_CO + D),
                     preferred_element_type=jnp.float32)
             + bvec(BO_CO, BO_CO + D))
        x = x + a.reshape(B, T, D)

        # x = x + FFN(LN3(x))
        xn2 = layernorm(x, bvec(BO_G3, BO_G3 + D),
                        bvec(BO_B3, BO_B3 + D)).reshape(BT, D)
        h1 = (jnp.dot(xn2, w(WO_F1, WO_F1 + D_FF),
                      preferred_element_type=jnp.float32)
              + bvec(BO_F1, BO_F1 + D_FF))
        h1 = jnp.maximum(h1, 0.0)                                   # ReLU
        ff = (jnp.dot(h1, fw2_ref[:, li * D:(li + 1) * D],
                      preferred_element_type=jnp.float32)
              + bvec(BO_F2, BO_F2 + D))
        x = x + ff.reshape(B, T, D)

    # final nn.LayerNorm
    # NOTE: the (B,T,32) store is not lane-dense (32 < 128 lanes); at ~2 KB of
    # output the masked vst is nanoseconds, so no in-kernel relayout.
    o_ref[...] = layernorm(x, fgb_ref[0:1, :], fgb_ref[1:2, :])


def _decoder_pallas(x, enc, pe, tbias, sbias, packed):
    vmem = pl.BlockSpec(memory_space=pltpu.MemorySpace.VMEM)
    n_in = 5 + len(packed)
    return pl.pallas_call(
        _decoder_kernel,
        out_shape=jax.ShapeDtypeStruct(x.shape, jnp.float32),
        in_specs=[vmem] * n_in,
        out_specs=vmem,
    )(x, enc, pe, tbias, sbias, *packed)


# ------------------------------ parameter packing ----------------------------

def pack_params(params):
    """Pack all per-layer parameters into a few lane-dense VMEM slabs:
       * w32  (L, 32, 256): [Wq|Wk|Wv | Wo_self | Wq_cross | Wo_cross | W1_ffn]
                            (Wq pre-scaled by 1/sqrt(dk))
       * fw2  (64, L*32)  : per-layer FFN W2 concatenated along output lanes
       * ckvw (32, L*64)  : cross-attn [Wk|Wv] of ALL layers (enc K/V hoist)
       * ckvb (1,  L*64)
       * bias (L, 1, 480) : all biases + the 3 per-layer norm gains/biases
       * fgb  (2, 32)     : final LayerNorm gamma / beta
    All concatenation/stacking is free XLA work OUTSIDE the kernel."""
    scale = 1.0 / math.sqrt(DK)
    w32_l, bias_l, ckvw_l, ckvb_l, fw2_l = [], [], [], [], []
    for lp in params['layers']:
        wq1, bq1, wk1, bk1, wv1, bv1, wo1, bo1 = lp['attn1']
        wq2, bq2, wk2, bk2, wv2, bv2, wo2, bo2 = lp['attn2']
        fw1, fb1, fw2, fb2 = lp['ffn']
        # fold the 1/sqrt(dk) score scale into the Q projections
        # ((x Wq + bq) * s == x (Wq s) + (bq s)), mathematically identical.
        w32_l.append(jnp.concatenate(
            [wq1 * scale, wk1, wv1, wo1, wq2 * scale, wo2, fw1], axis=1))
        bias_l.append(jnp.concatenate(
            [bq1 * scale, bk1, bv1, bo1, bq2 * scale, bo2, fb1, fb2,
             lp['g1'], lp['b1'], lp['g2'], lp['b2'], lp['g3'], lp['b3']],
            axis=1))
        ckvw_l.append(jnp.concatenate([wk2, wv2], axis=1))
        ckvb_l.append(jnp.concatenate([bk2, bv2], axis=1))
        fw2_l.append(fw2)

    packed = (
        jnp.stack(w32_l, axis=0),                               # (L, 32, 256)
        jnp.concatenate(fw2_l, axis=1),                         # (64, L*32)
        jnp.concatenate(ckvw_l, axis=1),                        # (32, L*64)
        jnp.concatenate(ckvb_l, axis=1),                        # (1, L*64)
        jnp.stack(bias_l, axis=0),                              # (L, 1, 480)
        jnp.concatenate([params['gf'], params['bf']], axis=0),  # (2, 32)
    )
    return packed


# ------------------------------ model glue -----------------------------------

def build_pe_table(max_len, d_model):
    # Exact replica of the PyTorch PositionalEncoder buffer construction.
    pe = np.zeros((max_len, d_model), dtype=np.float32)
    for pos in range(max_len):
        for i in range(0, d_model, 2):
            pe[pos, i] = math.sin(pos / 10000 ** (2 * i / d_model))
            pe[pos, i + 1] = math.cos(pos / 10000 ** (2 * (i + 1) / d_model))
    return jnp.asarray(pe)[None]  # (1, max_len, d_model)


def init_params(key):
    def lin(k, din, dout, scale=0.05):
        kw, kb = jax.random.split(k)
        w = jax.random.normal(kw, (din, dout), jnp.float32) * scale
        b = jax.random.normal(kb, (1, dout), jnp.float32) * 0.01
        return w, b

    keys = jax.random.split(key, 2 + N_LAYERS)
    params = {
        'embed': jax.random.normal(keys[0], (VOCAB, D_MODEL), jnp.float32) * 0.1,
        'pe': build_pe_table(300, D_MODEL),
        'gf': jnp.ones((1, D_MODEL), jnp.float32),
        'bf': jnp.zeros((1, D_MODEL), jnp.float32),
        'layers': [],
    }
    for li in range(N_LAYERS):
        ks = jax.random.split(keys[2 + li], 10)

        def attn(k4):
            sub = jax.random.split(k4, 4)
            wq, bq = lin(sub[0], D_MODEL, D_MODEL)
            wk, bk = lin(sub[1], D_MODEL, D_MODEL)
            wv, bv = lin(sub[2], D_MODEL, D_MODEL)
            wo, bo = lin(sub[3], D_MODEL, D_MODEL)
            return (wq, bq, wk, bk, wv, bv, wo, bo)

        w1, b1 = lin(ks[2], D_MODEL, D_FF)
        w2, b2 = lin(ks[3], D_FF, D_MODEL)
        params['layers'].append({
            'g1': jnp.ones((1, D_MODEL), jnp.float32), 'b1': jnp.zeros((1, D_MODEL), jnp.float32),
            'g2': jnp.ones((1, D_MODEL), jnp.float32), 'b2': jnp.zeros((1, D_MODEL), jnp.float32),
            'g3': jnp.ones((1, D_MODEL), jnp.float32), 'b3': jnp.zeros((1, D_MODEL), jnp.float32),
            'attn1': attn(ks[0]),
            'attn2': attn(ks[1]),
            'ffn': (w1, b1, w2, b2),
        })
    return params


def decoder_forward(trg, e_outputs, src_mask, trg_mask, embed, pe_table, packed):
    B, T = trg.shape
    S = e_outputs.shape[1]
    # embedding lookup (glue, XLA gather outside the kernel)
    x = jnp.take(embed, trg, axis=0)                                # (B,T,D)
    pe = pe_table[:, :T, :]                                         # (1,T,D)
    # additive mask biases, head-tiled once in the wrapper (order (head,batch))
    # so the kernel never re-runs the ==0 compare/select per attention call.
    tb = jnp.where(trg_mask == 0, -1e9, 0.0).astype(jnp.float32)
    tb = jnp.broadcast_to(tb, (B, T, T))
    tb = jnp.broadcast_to(tb[None], (HEADS, B, T, T)).reshape(HEADS * B, T, T)
    sb = jnp.where(src_mask == 0, -1e9, 0.0).astype(jnp.float32)
    sb = jnp.broadcast_to(sb, (B, T, S))
    sb = jnp.broadcast_to(sb[None], (HEADS, B, T, S)).reshape(HEADS * B, T, S)
    return _decoder_pallas(x, e_outputs.astype(jnp.float32), pe, tb, sb, packed)


if __name__ == "__main__":
    key = jax.random.PRNGKey(0)
    k_params, k_trg, k_enc = jax.random.split(key, 3)

    B, T, S = 2, 8, 10
    params = init_params(k_params)
    packed = pack_params(params)

    trg = jax.random.randint(k_trg, (B, T), 0, VOCAB, dtype=jnp.int32)
    e_outputs = jax.random.normal(k_enc, (B, S, D_MODEL), jnp.float32)
    src_mask = jnp.ones((B, 1, S), jnp.int32)                                      # no padding
    trg_mask = jnp.broadcast_to(jnp.tril(jnp.ones((T, T), jnp.int32)), (B, T, T))  # causal

    fwd = jax.jit(decoder_forward)
    out = fwd(trg, e_outputs, src_mask, trg_mask, params['embed'], params['pe'], packed)
    jax.block_until_ready(out)

    assert out.shape == (B, T, D_MODEL)
    assert bool(jnp.all(jnp.isfinite(out)))
    print("KERNEL_OK")
</pallas_src>

<mosaic_0001>
module attributes {stable_mosaic.version = 11 : i64} {
  func.func @_decoder_kernel(%arg0: memref<2x8x32xf32, #tpu.memory_space<vmem>>, %arg1: memref<2x10x32xf32, #tpu.memory_space<vmem>>, %arg2: memref<1x8x32xf32, #tpu.memory_space<vmem>>, %arg3: memref<8x8x8xf32, #tpu.memory_space<vmem>>, %arg4: memref<8x8x10xf32, #tpu.memory_space<vmem>>, %arg5: memref<2x32x256xf32, #tpu.memory_space<vmem>>, %arg6: memref<64x64xf32, #tpu.memory_space<vmem>>, %arg7: memref<32x128xf32, #tpu.memory_space<vmem>>, %arg8: memref<1x128xf32, #tpu.memory_space<vmem>>, %arg9: memref<2x1x480xf32, #tpu.memory_space<vmem>>, %arg10: memref<2x32xf32, #tpu.memory_space<vmem>>, %arg11: memref<2x8x32xf32, #tpu.memory_space<vmem>>) attributes {dimension_semantics = [], scalar_prefetch = 0 : i64, scratch_operands = 0 : i64, tpu.core_type = #tpu.core_type<tc>} {
    %c0 = arith.constant 0 : index
    %c0_0 = arith.constant 0 : index
    %c0_1 = arith.constant 0 : index
    %0 = vector.load %arg0[%c0, %c0_0, %c0_1] : memref<2x8x32xf32, #tpu.memory_space<vmem>>, vector<2x8x32xf32>
    %cst = arith.constant 5.65685415 : f32
    %1 = vector.broadcast %cst : f32 to vector<2x8x32xf32>
    %2 = arith.mulf %0, %1 : vector<2x8x32xf32>
    %c0_2 = arith.constant 0 : index
    %c0_3 = arith.constant 0 : index
    %c0_4 = arith.constant 0 : index
    %3 = vector.load %arg2[%c0_2, %c0_3, %c0_4] : memref<1x8x32xf32, #tpu.memory_space<vmem>>, vector<1x8x32xf32>
    %4 = vector.broadcast %3 : vector<1x8x32xf32> to vector<2x8x32xf32>
    %5 = arith.addf %2, %4 : vector<2x8x32xf32>
    %c0_5 = arith.constant 0 : index
    %c0_6 = arith.constant 0 : index
    %c0_7 = arith.constant 0 : index
    %6 = vector.load %arg3[%c0_5, %c0_6, %c0_7] : memref<8x8x8xf32, #tpu.memory_space<vmem>>, vector<8x8x8xf32>
    %c0_8 = arith.constant 0 : index
    %c0_9 = arith.constant 0 : index
    %c0_10 = arith.constant 0 : index
    %7 = vector.load %arg4[%c0_8, %c0_9, %c0_10] : memref<8x8x10xf32, #tpu.memory_space<vmem>>, vector<8x8x10xf32>
    %c0_11 = arith.constant 0 : index
    %c0_12 = arith.constant 0 : index
    %c0_13 = arith.constant 0 : index
    %8 = vector.load %arg1[%c0_11, %c0_12, %c0_13] : memref<2x10x32xf32, #tpu.memory_space<vmem>>, vector<2x10x32xf32>
    %9 = vector.shape_cast %8 : vector<2x10x32xf32> to vector<20x32xf32>
    %c0_14 = arith.constant 0 : index
    %c0_15 = arith.constant 0 : index
    %10 = vector.load %arg7[%c0_14, %c0_15] : memref<32x128xf32, #tpu.memory_space<vmem>>, vector<32x128xf32>
    %cst_16 = arith.constant dense<0.000000e+00> : vector<20x128xf32>
    %11 = tpu.matmul %9, %10, %cst_16 {dimension_numbers = #tpu.dot_dimension_numbers<[1], [0], [0], [1], [0, 0, 1, 1], [], []>} : vector<20x32xf32>, vector<32x128xf32>, vector<20x128xf32> -> vector<20x128xf32>
    %c0_17 = arith.constant 0 : index
    %c0_18 = arith.constant 0 : index
    %12 = vector.load %arg8[%c0_17, %c0_18] : memref<1x128xf32, #tpu.memory_space<vmem>>, vector<1x128xf32>
    %13 = vector.broadcast %12 : vector<1x128xf32> to vector<20x128xf32>
    %14 = arith.addf %11, %13 : vector<20x128xf32>
    %15 = vector.extract_strided_slice %14 {offsets = [0, 0], sizes = [20, 32], strides = [1, 1]} : vector<20x128xf32> to vector<20x32xf32>
    %16 = vector.extract_strided_slice %14 {offsets = [0, 32], sizes = [20, 32], strides = [1, 1]} : vector<20x128xf32> to vector<20x32xf32>
    %17 = vector.extract_strided_slice %15 {offsets = [0, 0], sizes = [20, 8], strides = [1, 1]} : vector<20x32xf32> to vector<20x8xf32>
    %18 = vector.extract_strided_slice %15 {offsets = [0, 8], sizes = [20, 8], strides = [1, 1]} : vector<20x32xf32> to vector<20x8xf32>
    %19 = vector.extract_strided_slice %15 {offsets = [0, 16], sizes = [20, 8], strides = [1, 1]} : vector<20x32xf32> to vector<20x8xf32>
    %20 = vector.extract_strided_slice %15 {offsets = [0, 24], sizes = [20, 8], strides = [1, 1]} : vector<20x32xf32> to vector<20x8xf32>
    %21 = tpu.concatenate %17, %18, %19, %20 in 0 : vector<20x8xf32>, vector<20x8xf32>, vector<20x8xf32>, vector<20x8xf32> -> vector<80x8xf32>
    %22 = vector.shape_cast %21 : vector<80x8xf32> to vector<8x10x8xf32>
    %23 = vector.extract_strided_slice %16 {offsets = [0, 0], sizes = [20, 8], strides = [1, 1]} : vector<20x32xf32> to vector<20x8xf32>
    %24 = vector.extract_strided_slice %16 {offsets = [0, 8], sizes = [20, 8], strides = [1, 1]} : vector<20x32xf32> to vector<20x8xf32>
    %25 = vector.extract_strided_slice %16 {offsets = [0, 16], sizes = [20, 8], strides = [1, 1]} : vector<20x32xf32> to vector<20x8xf32>
    %26 = vector.extract_strided_slice %16 {offsets = [0, 24], sizes = [20, 8], strides = [1, 1]} : vector<20x32xf32> to vector<20x8xf32>
    %27 = tpu.concatenate %23, %24, %25, %26 in 0 : vector<20x8xf32>, vector<20x8xf32>, vector<20x8xf32>, vector<20x8xf32> -> vector<80x8xf32>
    %28 = vector.shape_cast %27 : vector<80x8xf32> to vector<8x10x8xf32>
    %29 = vector.extract_strided_slice %14 {offsets = [0, 64], sizes = [20, 32], strides = [1, 1]} : vector<20x128xf32> to vector<20x32xf32>
    %30 = vector.extract_strided_slice %14 {offsets = [0, 96], sizes = [20, 32], strides = [1, 1]} : vector<20x128xf32> to vector<20x32xf32>
    %31 = vector.extract_strided_slice %29 {offsets = [0, 0], sizes = [20, 8], strides = [1, 1]} : vector<20x32xf32> to vector<20x8xf32>
    %32 = vector.extract_strided_slice %29 {offsets = [0, 8], sizes = [20, 8], strides = [1, 1]} : vector<20x32xf32> to vector<20x8xf32>
    %33 = vector.extract_strided_slice %29 {offsets = [0, 16], sizes = [20, 8], strides = [1, 1]} : vector<20x32xf32> to vector<20x8xf32>
    %34 = vector.extract_strided_slice %29 {offsets = [0, 24], sizes = [20, 8], strides = [1, 1]} : vector<20x32xf32> to vector<20x8xf32>
    %35 = tpu.concatenate %31, %32, %33, %34 in 0 : vector<20x8xf32>, vector<20x8xf32>, vector<20x8xf32>, vector<20x8xf32> -> vector<80x8xf32>
    %36 = vector.shape_cast %35 : vector<80x8xf32> to vector<8x10x8xf32>
    %37 = vector.extract_strided_slice %30 {offsets = [0, 0], sizes = [20, 8], strides = [1, 1]} : vector<20x32xf32> to vector<20x8xf32>
    %38 = vector.extract_strided_slice %30 {offsets = [0, 8], sizes = [20, 8], strides = [1, 1]} : vector<20x32xf32> to vector<20x8xf32>
    %39 = vector.extract_strided_slice %30 {offsets = [0, 16], sizes = [20, 8], strides = [1, 1]} : vector<20x32xf32> to vector<20x8xf32>
    %40 = vector.extract_strided_slice %30 {offsets = [0, 24], sizes = [20, 8], strides = [1, 1]} : vector<20x32xf32> to vector<20x8xf32>
    %41 = tpu.concatenate %37, %38, %39, %40 in 0 : vector<20x8xf32>, vector<20x8xf32>, vector<20x8xf32>, vector<20x8xf32> -> vector<80x8xf32>
    %42 = vector.shape_cast %41 : vector<80x8xf32> to vector<8x10x8xf32>
    %c0_19 = arith.constant 0 : index
    %c0_20 = arith.constant 0 : index
    %c288 = arith.constant 288 : index
    %43 = vector.load %arg9[%c0_19, %c0_20, %c288] : memref<2x1x480xf32, #tpu.memory_space<vmem>>, vector<1x1x32xf32>
    %44 = vector.shape_cast %43 : vector<1x1x32xf32> to vector<1x32xf32>
    %c0_21 = arith.constant 0 : index
    %c0_22 = arith.constant 0 : index
    %c320 = arith.constant 320 : index
    %45 = vector.load %arg9[%c0_21, %c0_22, %c320] : memref<2x1x480xf32, #tpu.memory_space<vmem>>, vector<1x1x32xf32>
    %46 = vector.shape_cast %45 : vector<1x1x32xf32> to vector<1x32xf32>
    %cst_23 = arith.constant dense<0.000000e+00> : vector<2x8xf32>
    %47 = vector.multi_reduction <add>, %5, %cst_23 [2] : vector<2x8x32xf32> to vector<2x8xf32>
    %48 = vector.shape_cast %47 : vector<2x8xf32> to vector<2x8x1xf32>
    %cst_24 = arith.constant 3.200000e+01 : f32
    %49 = vector.broadcast %cst_24 : f32 to vector<2x8x1xf32>
    %50 = arith.divf %48, %49 : vector<2x8x1xf32>
    %51 = vector.broadcast %50 : vector<2x8x1xf32> to vector<2x8x32xf32>
    %52 = arith.subf %5, %51 : vector<2x8x32xf32>
    %53 = arith.mulf %52, %52 : vector<2x8x32xf32>
    %cst_25 = arith.constant dense<0.000000e+00> : vector<2x8xf32>
    %54 = vector.multi_reduction <add>, %53, %cst_25 [2] : vector<2x8x32xf32> to vector<2x8xf32>
    %55 = vector.shape_cast %54 : vector<2x8xf32> to vector<2x8x1xf32>
    %cst_26 = arith.constant 3.200000e+01 : f32
    %56 = vector.broadcast %cst_26 : f32 to vector<2x8x1xf32>
    %57 = arith.divf %55, %56 : vector<2x8x1xf32>
    %58 = vector.broadcast %50 : vector<2x8x1xf32> to vector<2x8x32xf32>
    %59 = arith.subf %5, %58 : vector<2x8x32xf32>
    %cst_27 = arith.constant 9.99999974E-6 : f32
    %60 = vector.broadcast %cst_27 : f32 to vector<2x8x1xf32>
    %61 = arith.addf %57, %60 : vector<2x8x1xf32>
    %62 = math.rsqrt %61 : vector<2x8x1xf32>
    %63 = vector.broadcast %62 : vector<2x8x1xf32> to vector<2x8x32xf32>
    %64 = arith.mulf %59, %63 : vector<2x8x32xf32>
    %65 = vector.shape_cast %44 : vector<1x32xf32> to vector<1x1x32xf32>
    %66 = vector.broadcast %65 : vector<1x1x32xf32> to vector<2x8x32xf32>
    %67 = arith.mulf %64, %66 : vector<2x8x32xf32>
    %68 = vector.shape_cast %46 : vector<1x32xf32> to vector<1x1x32xf32>
    %69 = vector.broadcast %68 : vector<1x1x32xf32> to vector<2x8x32xf32>
    %70 = arith.addf %67, %69 : vector<2x8x32xf32>
    %71 = vector.shape_cast %70 : vector<2x8x32xf32> to vector<16x32xf32>
    %c0_28 = arith.constant 0 : index
    %c0_29 = arith.constant 0 : index
    %c0_30 = arith.constant 0 : index
    %72 = vector.load %arg5[%c0_28, %c0_29, %c0_30] : memref<2x32x256xf32, #tpu.memory_space<vmem>>, vector<1x32x96xf32>
    %73 = vector.shape_cast %72 : vector<1x32x96xf32> to vector<32x96xf32>
    %cst_31 = arith.constant dense<0.000000e+00> : vector<16x96xf32>
    %74 = tpu.matmul %71, %73, %cst_31 {dimension_numbers = #tpu.dot_dimension_numbers<[1], [0], [0], [1], [0, 0, 1, 1], [], []>} : vector<16x32xf32>, vector<32x96xf32>, vector<16x96xf32> -> vector<16x96xf32>
    %c0_32 = arith.constant 0 : index
    %c0_33 = arith.constant 0 : index
    %c0_34 = arith.constant 0 : index
    %75 = vector.load %arg9[%c0_32, %c0_33, %c0_34] : memref<2x1x480xf32, #tpu.memory_space<vmem>>, vector<1x1x96xf32>
    %76 = vector.shape_cast %75 : vector<1x1x96xf32> to vector<1x96xf32>
    %77 = vector.broadcast %76 : vector<1x96xf32> to vector<16x96xf32>
    %78 = arith.addf %74, %77 : vector<16x96xf32>
    %79 = vector.extract_strided_slice %78 {offsets = [0, 0], sizes = [16, 32], strides = [1, 1]} : vector<16x96xf32> to vector<16x32xf32>
    %80 = vector.extract_strided_slice %79 {offsets = [0, 0], sizes = [16, 8], strides = [1, 1]} : vector<16x32xf32> to vector<16x8xf32>
    %81 = vector.extract_strided_slice %79 {offsets = [0, 8], sizes = [16, 8], strides = [1, 1]} : vector<16x32xf32> to vector<16x8xf32>
    %82 = vector.extract_strided_slice %79 {offsets = [0, 16], sizes = [16, 8], strides = [1, 1]} : vector<16x32xf32> to vector<16x8xf32>
    %83 = vector.extract_strided_slice %79 {offsets = [0, 24], sizes = [16, 8], strides = [1, 1]} : vector<16x32xf32> to vector<16x8xf32>
    %84 = tpu.concatenate %80, %81, %82, %83 in 0 : vector<16x8xf32>, vector<16x8xf32>, vector<16x8xf32>, vector<16x8xf32> -> vector<64x8xf32>
    %85 = vector.shape_cast %84 : vector<64x8xf32> to vector<8x8x8xf32>
    %86 = vector.extract_strided_slice %78 {offsets = [0, 32], sizes = [16, 32], strides = [1, 1]} : vector<16x96xf32> to vector<16x32xf32>
    %87 = vector.extract_strided_slice %86 {offsets = [0, 0], sizes = [16, 8], strides = [1, 1]} : vector<16x32xf32> to vector<16x8xf32>
    %88 = vector.extract_strided_slice %86 {offsets = [0, 8], sizes = [16, 8], strides = [1, 1]} : vector<16x32xf32> to vector<16x8xf32>
    %89 = vector.extract_strided_slice %86 {offsets = [0, 16], sizes = [16, 8], strides = [1, 1]} : vector<16x32xf32> to vector<16x8xf32>
    %90 = vector.extract_strided_slice %86 {offsets = [0, 24], sizes = [16, 8], strides = [1, 1]} : vector<16x32xf32> to vector<16x8xf32>
    %91 = tpu.concatenate %87, %88, %89, %90 in 0 : vector<16x8xf32>, vector<16x8xf32>, vector<16x8xf32>, vector<16x8xf32> -> vector<64x8xf32>
    %92 = vector.shape_cast %91 : vector<64x8xf32> to vector<8x8x8xf32>
    %93 = vector.extract_strided_slice %78 {offsets = [0, 64], sizes = [16, 32], strides = [1, 1]} : vector<16x96xf32> to vector<16x32xf32>
    %94 = vector.extract_strided_slice %93 {offsets = [0, 0], sizes = [16, 8], strides = [1, 1]} : vector<16x32xf32> to vector<16x8xf32>
    %95 = vector.extract_strided_slice %93 {offsets = [0, 8], sizes = [16, 8], strides = [1, 1]} : vector<16x32xf32> to vector<16x8xf32>
    %96 = vector.extract_strided_slice %93 {offsets = [0, 16], sizes = [16, 8], strides = [1, 1]} : vector<16x32xf32> to vector<16x8xf32>
    %97 = vector.extract_strided_slice %93 {offsets = [0, 24], sizes = [16, 8], strides = [1, 1]} : vector<16x32xf32> to vector<16x8xf32>
    %98 = tpu.concatenate %94, %95, %96, %97 in 0 : vector<16x8xf32>, vector<16x8xf32>, vector<16x8xf32>, vector<16x8xf32> -> vector<64x8xf32>
    %99 = vector.shape_cast %98 : vector<64x8xf32> to vector<8x8x8xf32>
    "tpu.trace_start"() <{level = 10 : i32, message = "bqd,bkd->bqk"}> : () -> ()
    %cst_35 = arith.constant dense<0.000000e+00> : vector<8x8x8xf32>
    %100 = tpu.matmul %85, %92, %cst_35 {dimension_numbers = #tpu.dot_dimension_numbers<[2], [2], [1], [1], [0, 0, 0, 1, 1, 1], [0], [0]>} : vector<8x8x8xf32>, vector<8x8x8xf32>, vector<8x8x8xf32> -> vector<8x8x8xf32>
    "tpu.trace_stop"() : () -> ()
    %101 = arith.addf %100, %6 : vector<8x8x8xf32>
    %cst_36 = arith.constant dense<0xFF800000> : vector<8x8xf32>
    %102 = vector.multi_reduction <maximumf>, %101, %cst_36 [2] : vector<8x8x8xf32> to vector<8x8xf32>
    %103 = vector.shape_cast %102 : vector<8x8xf32> to vector<8x8x1xf32>
    %104 = vector.broadcast %103 : vector<8x8x1xf32> to vector<8x8x8xf32>
    %105 = arith.subf %101, %104 : vector<8x8x8xf32>
    %106 = math.exp %105 : vector<8x8x8xf32>
    %cst_37 = arith.constant dense<0.000000e+00> : vector<8x8xf32>
    %107 = vector.multi_reduction <add>, %106, %cst_37 [2] : vector<8x8x8xf32> to vector<8x8xf32>
    %108 = vector.shape_cast %107 : vector<8x8xf32> to vector<8x8x1xf32>
    %109 = tpu.reciprocal %108 {approx = true} : vector<8x8x1xf32> -> vector<8x8x1xf32>
    %110 = vector.broadcast %109 : vector<8x8x1xf32> to vector<8x8x8xf32>
    %111 = arith.mulf %106, %110 : vector<8x8x8xf32>
    "tpu.trace_start"() <{level = 10 : i32, message = "bqk,bkd->bqd"}> : () -> ()
    %cst_38 = arith.constant dense<0.000000e+00> : vector<8x8x8xf32>
    %112 = tpu.matmul %111, %99, %cst_38 {dimension_numbers = #tpu.dot_dimension_numbers<[2], [1], [1], [2], [0, 0, 0, 1, 1, 2], [0], [0]>} : vector<8x8x8xf32>, vector<8x8x8xf32>, vector<8x8x8xf32> -> vector<8x8x8xf32>
    "tpu.trace_stop"() : () -> ()
    %113 = vector.extract_strided_slice %112 {offsets = [0, 0, 0], sizes = [2, 8, 8], strides = [1, 1, 1]} : vector<8x8x8xf32> to vector<2x8x8xf32>
    %114 = vector.shape_cast %113 : vector<2x8x8xf32> to vector<16x8xf32>
    %115 = vector.extract_strided_slice %112 {offsets = [2, 0, 0], sizes = [2, 8, 8], strides = [1, 1, 1]} : vector<8x8x8xf32> to vector<2x8x8xf32>
    %116 = vector.shape_cast %115 : vector<2x8x8xf32> to vector<16x8xf32>
    %117 = vector.extract_strided_slice %112 {offsets = [4, 0, 0], sizes = [2, 8, 8], strides = [1, 1, 1]} : vector<8x8x8xf32> to vector<2x8x8xf32>
    %118 = vector.shape_cast %117 : vector<2x8x8xf32> to vector<16x8xf32>
    %119 = vector.extract_strided_slice %112 {offsets = [6, 0, 0], sizes = [2, 8, 8], strides = [1, 1, 1]} : vector<8x8x8xf32> to vector<2x8x8xf32>
    %120 = vector.shape_cast %119 : vector<2x8x8xf32> to vector<16x8xf32>
    %121 = tpu.concatenate %114, %116, %118, %120 in 1 : vector<16x8xf32>, vector<16x8xf32>, vector<16x8xf32>, vector<16x8xf32> -> vector<16x32xf32>
    %c0_39 = arith.constant 0 : index
    %c0_40 = arith.constant 0 : index
    %c96 = arith.constant 96 : index
    %122 = vector.load %arg5[%c0_39, %c0_40, %c96] : memref<2x32x256xf32, #tpu.memory_space<vmem>>, vector<1x32x32xf32>
    %123 = vector.shape_cast %122 : vector<1x32x32xf32> to vector<32x32xf32>
    %cst_41 = arith.constant dense<0.000000e+00> : vector<16x32xf32>
    %124 = tpu.matmul %121, %123, %cst_41 {dimension_numbers = #tpu.dot_dimension_numbers<[1], [0], [0], [1], [0, 0, 1, 1], [], []>} : vector<16x32xf32>, vector<32x32xf32>, vector<16x32xf32> -> vector<16x32xf32>
    %c0_42 = arith.constant 0 : index
    %c0_43 = arith.constant 0 : index
    %c96_44 = arith.constant 96 : index
    %125 = vector.load %arg9[%c0_42, %c0_43, %c96_44] : memref<2x1x480xf32, #tpu.memory_space<vmem>>, vector<1x1x32xf32>
    %126 = vector.shape_cast %125 : vector<1x1x32xf32> to vector<1x32xf32>
    %127 = vector.broadcast %126 : vector<1x32xf32> to vector<16x32xf32>
    %128 = arith.addf %124, %127 : vector<16x32xf32>
    %129 = vector.shape_cast %128 : vector<16x32xf32> to vector<2x8x32xf32>
    %130 = arith.addf %5, %129 : vector<2x8x32xf32>
    %c0_45 = arith.constant 0 : index
    %c0_46 = arith.constant 0 : index
    %c352 = arith.constant 352 : index
    %131 = vector.load %arg9[%c0_45, %c0_46, %c352] : memref<2x1x480xf32, #tpu.memory_space<vmem>>, vector<1x1x32xf32>
    %132 = vector.shape_cast %131 : vector<1x1x32xf32> to vector<1x32xf32>
    %c0_47 = arith.constant 0 : index
    %c0_48 = arith.constant 0 : index
    %c384 = arith.constant 384 : index
    %133 = vector.load %arg9[%c0_47, %c0_48, %c384] : memref<2x1x480xf32, #tpu.memory_space<vmem>>, vector<1x1x32xf32>
    %134 = vector.shape_cast %133 : vector<1x1x32xf32> to vector<1x32xf32>
    %cst_49 = arith.constant dense<0.000000e+00> : vector<2x8xf32>
    %135 = vector.multi_reduction <add>, %130, %cst_49 [2] : vector<2x8x32xf32> to vector<2x8xf32>
    %136 = vector.shape_cast %135 : vector<2x8xf32> to vector<2x8x1xf32>
    %cst_50 = arith.constant 3.200000e+01 : f32
    %137 = vector.broadcast %cst_50 : f32 to vector<2x8x1xf32>
    %138 = arith.divf %136, %137 : vector<2x8x1xf32>
    %139 = vector.broadcast %138 : vector<2x8x1xf32> to vector<2x8x32xf32>
    %140 = arith.subf %130, %139 : vector<2x8x32xf32>
    %141 = arith.mulf %140, %140 : vector<2x8x32xf32>
    %cst_51 = arith.constant dense<0.000000e+00> : vector<2x8xf32>
    %142 = vector.multi_reduction <add>, %141, %cst_51 [2] : vector<2x8x32xf32> to vector<2x8xf32>
    %143 = vector.shape_cast %142 : vector<2x8xf32> to vector<2x8x1xf32>
    %cst_52 = arith.constant 3.200000e+01 : f32
    %144 = vector.broadcast %cst_52 : f32 to vector<2x8x1xf32>
    %145 = arith.divf %143, %144 : vector<2x8x1xf32>
    %146 = vector.broadcast %138 : vector<2x8x1xf32> to vector<2x8x32xf32>
    %147 = arith.subf %130, %146 : vector<2x8x32xf32>
    %cst_53 = arith.constant 9.99999974E-6 : f32
    %148 = vector.broadcast %cst_53 : f32 to vector<2x8x1xf32>
    %149 = arith.addf %145, %148 : vector<2x8x1xf32>
    %150 = math.rsqrt %149 : vector<2x8x1xf32>
    %151 = vector.broadcast %150 : vector<2x8x1xf32> to vector<2x8x32xf32>
    %152 = arith.mulf %147, %151 : vector<2x8x32xf32>
    %153 = vector.shape_cast %132 : vector<1x32xf32> to vector<1x1x32xf32>
    %154 = vector.broadcast %153 : vector<1x1x32xf32> to vector<2x8x32xf32>
    %155 = arith.mulf %152, %154 : vector<2x8x32xf32>
    %156 = vector.shape_cast %134 : vector<1x32xf32> to vector<1x1x32xf32>
    %157 = vector.broadcast %156 : vector<1x1x32xf32> to vector<2x8x32xf32>
    %158 = arith.addf %155, %157 : vector<2x8x32xf32>
    %159 = vector.shape_cast %158 : vector<2x8x32xf32> to vector<16x32xf32>
    %c0_54 = arith.constant 0 : index
    %c0_55 = arith.constant 0 : index
    %c128 = arith.constant 128 : index
    %160 = vector.load %arg5[%c0_54, %c0_55, %c128] : memref<2x32x256xf32, #tpu.memory_space<vmem>>, vector<1x32x32xf32>
    %161 = vector.shape_cast %160 : vector<1x32x32xf32> to vector<32x32xf32>
    %cst_56 = arith.constant dense<0.000000e+00> : vector<16x32xf32>
    %162 = tpu.matmul %159, %161, %cst_56 {dimension_numbers = #tpu.dot_dimension_numbers<[1], [0], [0], [1], [0, 0, 1, 1], [], []>} : vector<16x32xf32>, vector<32x32xf32>, vector<16x32xf32> -> vector<16x32xf32>
    %c0_57 = arith.constant 0 : index
    %c0_58 = arith.constant 0 : index
    %c128_59 = arith.constant 128 : index
    %163 = vector.load %arg9[%c0_57, %c0_58, %c128_59] : memref<2x1x480xf32, #tpu.memory_space<vmem>>, vector<1x1x32xf32>
    %164 = vector.shape_cast %163 : vector<1x1x32xf32> to vector<1x32xf32>
    %165 = vector.broadcast %164 : vector<1x32xf32> to vector<16x32xf32>
    %166 = arith.addf %162, %165 : vector<16x32xf32>
    %167 = vector.extract_strided_slice %166 {offsets = [0, 0], sizes = [16, 8], strides = [1, 1]} : vector<16x32xf32> to vector<16x8xf32>
    %168 = vector.extract_strided_slice %166 {offsets = [0, 8], sizes = [16, 8], strides = [1, 1]} : vector<16x32xf32> to vector<16x8xf32>
    %169 = vector.extract_strided_slice %166 {offsets = [0, 16], sizes = [16, 8], strides = [1, 1]} : vector<16x32xf32> to vector<16x8xf32>
    %170 = vector.extract_strided_slice %166 {offsets = [0, 24], sizes = [16, 8], strides = [1, 1]} : vector<16x32xf32> to vector<16x8xf32>
    %171 = tpu.concatenate %167, %168, %169, %170 in 0 : vector<16x8xf32>, vector<16x8xf32>, vector<16x8xf32>, vector<16x8xf32> -> vector<64x8xf32>
    %172 = vector.shape_cast %171 : vector<64x8xf32> to vector<8x8x8xf32>
    "tpu.trace_start"() <{level = 10 : i32, message = "bqd,bkd->bqk"}> : () -> ()
    %cst_60 = arith.constant dense<0.000000e+00> : vector<8x8x10xf32>
    %173 = tpu.matmul %172, %22, %cst_60 {dimension_numbers = #tpu.dot_dimension_numbers<[2], [2], [1], [1], [0, 0, 0, 1, 1, 1], [0], [0]>} : vector<8x8x8xf32>, vector<8x10x8xf32>, vector<8x8x10xf32> -> vector<8x8x10xf32>
    "tpu.trace_stop"() : () -> ()
    %174 = arith.addf %173, %7 : vector<8x8x10xf32>
    %cst_61 = arith.constant dense<0xFF800000> : vector<8x8xf32>
    %175 = vector.multi_reduction <maximumf>, %174, %cst_61 [2] : vector<8x8x10xf32> to vector<8x8xf32>
    %176 = vector.shape_cast %175 : vector<8x8xf32> to vector<8x8x1xf32>
    %177 = vector.broadcast %176 : vector<8x8x1xf32> to vector<8x8x10xf32>
    %178 = arith.subf %174, %177 : vector<8x8x10xf32>
    %179 = math.exp %178 : vector<8x8x10xf32>
    %cst_62 = arith.constant dense<0.000000e+00> : vector<8x8xf32>
    %180 = vector.multi_reduction <add>, %179, %cst_62 [2] : vector<8x8x10xf32> to vector<8x8xf32>
    %181 = vector.shape_cast %180 : vector<8x8xf32> to vector<8x8x1xf32>
    %182 = tpu.reciprocal %181 {approx = true} : vector<8x8x1xf32> -> vector<8x8x1xf32>
    %183 = vector.broadcast %182 : vector<8x8x1xf32> to vector<8x8x10xf32>
    %184 = arith.mulf %179, %183 : vector<8x8x10xf32>
    "tpu.trace_start"() <{level = 10 : i32, message = "bqk,bkd->bqd"}> : () -> ()
    %cst_63 = arith.constant dense<0.000000e+00> : vector<8x8x8xf32>
    %185 = tpu.matmul %184, %28, %cst_63 {dimension_numbers = #tpu.dot_dimension_numbers<[2], [1], [1], [2], [0, 0, 0, 1, 1, 2], [0], [0]>} : vector<8x8x10xf32>, vector<8x10x8xf32>, vector<8x8x8xf32> -> vector<8x8x8xf32>
    "tpu.trace_stop"() : () -> ()
    %186 = vector.extract_strided_slice %185 {offsets = [0, 0, 0], sizes = [2, 8, 8], strides = [1, 1, 1]} : vector<8x8x8xf32> to vector<2x8x8xf32>
    %187 = vector.shape_cast %186 : vector<2x8x8xf32> to vector<16x8xf32>
    %188 = vector.extract_strided_slice %185 {offsets = [2, 0, 0], sizes = [2, 8, 8], strides = [1, 1, 1]} : vector<8x8x8xf32> to vector<2x8x8xf32>
    %189 = vector.shape_cast %188 : vector<2x8x8xf32> to vector<16x8xf32>
    %190 = vector.extract_strided_slice %185 {offsets = [4, 0, 0], sizes = [2, 8, 8], strides = [1, 1, 1]} : vector<8x8x8xf32> to vector<2x8x8xf32>
    %191 = vector.shape_cast %190 : vector<2x8x8xf32> to vector<16x8xf32>
    %192 = vector.extract_strided_slice %185 {offsets = [6, 0, 0], sizes = [2, 8, 8], strides = [1, 1, 1]} : vector<8x8x8xf32> to vector<2x8x8xf32>
    %193 = vector.shape_cast %192 : vector<2x8x8xf32> to vector<16x8xf32>
    %194 = tpu.concatenate %187, %189, %191, %193 in 1 : vector<16x8xf32>, vector<16x8xf32>, vector<16x8xf32>, vector<16x8xf32> -> vector<16x32xf32>
    %c0_64 = arith.constant 0 : index
    %c0_65 = arith.constant 0 : index
    %c160 = arith.constant 160 : index
    %195 = vector.load %arg5[%c0_64, %c0_65, %c160] : memref<2x32x256xf32, #tpu.memory_space<vmem>>, vector<1x32x32xf32>
    %196 = vector.shape_cast %195 : vector<1x32x32xf32> to vector<32x32xf32>
    %cst_66 = arith.constant dense<0.000000e+00> : vector<16x32xf32>
    %197 = tpu.matmul %194, %196, %cst_66 {dimension_numbers = #tpu.dot_dimension_numbers<[1], [0], [0], [1], [0, 0, 1, 1], [], []>} : vector<16x32xf32>, vector<32x32xf32>, vector<16x32xf32> -> vector<16x32xf32>
    %c0_67 = arith.constant 0 : index
    %c0_68 = arith.constant 0 : index
    %c160_69 = arith.constant 160 : index
    %198 = vector.load %arg9[%c0_67, %c0_68, %c160_69] : memref<2x1x480xf32, #tpu.memory_space<vmem>>, vector<1x1x32xf32>
    %199 = vector.shape_cast %198 : vector<1x1x32xf32> to vector<1x32xf32>
    %200 = vector.broadcast %199 : vector<1x32xf32> to vector<16x32xf32>
    %201 = arith.addf %197, %200 : vector<16x32xf32>
    %202 = vector.shape_cast %201 : vector<16x32xf32> to vector<2x8x32xf32>
    %203 = arith.addf %130, %202 : vector<2x8x32xf32>
    %c0_70 = arith.constant 0 : index
    %c0_71 = arith.constant 0 : index
    %c416 = arith.constant 416 : index
    %204 = vector.load %arg9[%c0_70, %c0_71, %c416] : memref<2x1x480xf32, #tpu.memory_space<vmem>>, vector<1x1x32xf32>
    %205 = vector.shape_cast %204 : vector<1x1x32xf32> to vector<1x32xf32>
    %c0_72 = arith.constant 0 : index
    %c0_73 = arith.constant 0 : index
    %c448 = arith.constant 448 : index
    %206 = vector.load %arg9[%c0_72, %c0_73, %c448] : memref<2x1x480xf32, #tpu.memory_space<vmem>>, vector<1x1x32xf32>
    %207 = vector.shape_cast %206 : vector<1x1x32xf32> to vector<1x32xf32>
    %cst_74 = arith.constant dense<0.000000e+00> : vector<2x8xf32>
    %208 = vector.multi_reduction <add>, %203, %cst_74 [2] : vector<2x8x32xf32> to vector<2x8xf32>
    %209 = vector.shape_cast %208 : vector<2x8xf32> to vector<2x8x1xf32>
    %cst_75 = arith.constant 3.200000e+01 : f32
    %210 = vector.broadcast %cst_75 : f32 to vector<2x8x1xf32>
    %211 = arith.divf %209, %210 : vector<2x8x1xf32>
    %212 = vector.broadcast %211 : vector<2x8x1xf32> to vector<2x8x32xf32>
    %213 = arith.subf %203, %212 : vector<2x8x32xf32>
    %214 = arith.mulf %213, %213 : vector<2x8x32xf32>
    %cst_76 = arith.constant dense<0.000000e+00> : vector<2x8xf32>
    %215 = vector.multi_reduction <add>, %214, %cst_76 [2] : vector<2x8x32xf32> to vector<2x8xf32>
    %216 = vector.shape_cast %215 : vector<2x8xf32> to vector<2x8x1xf32>
    %cst_77 = arith.constant 3.200000e+01 : f32
    %217 = vector.broadcast %cst_77 : f32 to vector<2x8x1xf32>
    %218 = arith.divf %216, %217 : vector<2x8x1xf32>
    %219 = vector.broadcast %211 : vector<2x8x1xf32> to vector<2x8x32xf32>
    %220 = arith.subf %203, %219 : vector<2x8x32xf32>
    %cst_78 = arith.constant 9.99999974E-6 : f32
    %221 = vector.broadcast %cst_78 : f32 to vector<2x8x1xf32>
    %222 = arith.addf %218, %221 : vector<2x8x1xf32>
    %223 = math.rsqrt %222 : vector<2x8x1xf32>
    %224 = vector.broadcast %223 : vector<2x8x1xf32> to vector<2x8x32xf32>
    %225 = arith.mulf %220, %224 : vector<2x8x32xf32>
    %226 = vector.shape_cast %205 : vector<1x32xf32> to vector<1x1x32xf32>
    %227 = vector.broadcast %226 : vector<1x1x32xf32> to vector<2x8x32xf32>
    %228 = arith.mulf %225, %227 : vector<2x8x32xf32>
    %229 = vector.shape_cast %207 : vector<1x32xf32> to vector<1x1x32xf32>
    %230 = vector.broadcast %229 : vector<1x1x32xf32> to vector<2x8x32xf32>
    %231 = arith.addf %228, %230 : vector<2x8x32xf32>
    %232 = vector.shape_cast %231 : vector<2x8x32xf32> to vector<16x32xf32>
    %c0_79 = arith.constant 0 : index
    %c0_80 = arith.constant 0 : index
    %c192 = arith.constant 192 : index
    %233 = vector.load %arg5[%c0_79, %c0_80, %c192] : memref<2x32x256xf32, #tpu.memory_space<vmem>>, vector<1x32x64xf32>
    %234 = vector.shape_cast %233 : vector<1x32x64xf32> to vector<32x64xf32>
    %cst_81 = arith.constant dense<0.000000e+00> : vector<16x64xf32>
    %235 = tpu.matmul %232, %234, %cst_81 {dimension_numbers = #tpu.dot_dimension_numbers<[1], [0], [0], [1], [0, 0, 1, 1], [], []>} : vector<16x32xf32>, vector<32x64xf32>, vector<16x64xf32> -> vector<16x64xf32>
    %c0_82 = arith.constant 0 : index
    %c0_83 = arith.constant 0 : index
    %c192_84 = arith.constant 192 : index
    %236 = vector.load %arg9[%c0_82, %c0_83, %c192_84] : memref<2x1x480xf32, #tpu.memory_space<vmem>>, vector<1x1x64xf32>
    %237 = vector.shape_cast %236 : vector<1x1x64xf32> to vector<1x64xf32>
    %238 = vector.broadcast %237 : vector<1x64xf32> to vector<16x64xf32>
    %239 = arith.addf %235, %238 : vector<16x64xf32>
    %cst_85 = arith.constant 0.000000e+00 : f32
    %240 = vector.broadcast %cst_85 : f32 to vector<16x64xf32>
    %241 = arith.maximumf %239, %240 : vector<16x64xf32>
    %c0_86 = arith.constant 0 : index
    %c0_87 = arith.constant 0 : index
    %242 = vector.load %arg6[%c0_86, %c0_87] : memref<64x64xf32, #tpu.memory_space<vmem>>, vector<64x32xf32>
    %cst_88 = arith.constant dense<0.000000e+00> : vector<16x32xf32>
    %243 = tpu.matmul %241, %242, %cst_88 {dimension_numbers = #tpu.dot_dimension_numbers<[1], [0], [0], [1], [0, 0, 1, 1], [], []>} : vector<16x64xf32>, vector<64x32xf32>, vector<16x32xf32> -> vector<16x32xf32>
    %c0_89 = arith.constant 0 : index
    %c0_90 = arith.constant 0 : index
    %c256 = arith.constant 256 : index
    %244 = vector.load %arg9[%c0_89, %c0_90, %c256] : memref<2x1x480xf32, #tpu.memory_space<vmem>>, vector<1x1x32xf32>
    %245 = vector.shape_cast %244 : vector<1x1x32xf32> to vector<1x32xf32>
    %246 = vector.broadcast %245 : vector<1x32xf32> to vector<16x32xf32>
    %247 = arith.addf %243, %246 : vector<16x32xf32>
    %248 = vector.shape_cast %247 : vector<16x32xf32> to vector<2x8x32xf32>
    %249 = arith.addf %203, %248 : vector<2x8x32xf32>
    %c1 = arith.constant 1 : index
    %c0_91 = arith.constant 0 : index
    %c288_92 = arith.constant 288 : index
    %250 = vector.load %arg9[%c1, %c0_91, %c288_92] : memref<2x1x480xf32, #tpu.memory_space<vmem>>, vector<1x1x32xf32>
    %251 = vector.shape_cast %250 : vector<1x1x32xf32> to vector<1x32xf32>
    %c1_93 = arith.constant 1 : index
    %c0_94 = arith.constant 0 : index
    %c320_95 = arith.constant 320 : index
    %252 = vector.load %arg9[%c1_93, %c0_94, %c320_95] : memref<2x1x480xf32, #tpu.memory_space<vmem>>, vector<1x1x32xf32>
    %253 = vector.shape_cast %252 : vector<1x1x32xf32> to vector<1x32xf32>
    %cst_96 = arith.constant dense<0.000000e+00> : vector<2x8xf32>
    %254 = vector.multi_reduction <add>, %249, %cst_96 [2] : vector<2x8x32xf32> to vector<2x8xf32>
    %255 = vector.shape_cast %254 : vector<2x8xf32> to vector<2x8x1xf32>
    %cst_97 = arith.constant 3.200000e+01 : f32
    %256 = vector.broadcast %cst_97 : f32 to vector<2x8x1xf32>
    %257 = arith.divf %255, %256 : vector<2x8x1xf32>
    %258 = vector.broadcast %257 : vector<2x8x1xf32> to vector<2x8x32xf32>
    %259 = arith.subf %249, %258 : vector<2x8x32xf32>
    %260 = arith.mulf %259, %259 : vector<2x8x32xf32>
    %cst_98 = arith.constant dense<0.000000e+00> : vector<2x8xf32>
    %261 = vector.multi_reduction <add>, %260, %cst_98 [2] : vector<2x8x32xf32> to vector<2x8xf32>
    %262 = vector.shape_cast %261 : vector<2x8xf32> to vector<2x8x1xf32>
    %cst_99 = arith.constant 3.200000e+01 : f32
    %263 = vector.broadcast %cst_99 : f32 to vector<2x8x1xf32>
    %264 = arith.divf %262, %263 : vector<2x8x1xf32>
    %265 = vector.broadcast %257 : vector<2x8x1xf32> to vector<2x8x32xf32>
    %266 = arith.subf %249, %265 : vector<2x8x32xf32>
    %cst_100 = arith.constant 9.99999974E-6 : f32
    %267 = vector.broadcast %cst_100 : f32 to vector<2x8x1xf32>
    %268 = arith.addf %264, %267 : vector<2x8x1xf32>
    %269 = math.rsqrt %268 : vector<2x8x1xf32>
    %270 = vector.broadcast %269 : vector<2x8x1xf32> to vector<2x8x32xf32>
    %271 = arith.mulf %266, %270 : vector<2x8x32xf32>
    %272 = vector.shape_cast %251 : vector<1x32xf32> to vector<1x1x32xf32>
    %273 = vector.broadcast %272 : vector<1x1x32xf32> to vector<2x8x32xf32>
    %274 = arith.mulf %271, %273 : vector<2x8x32xf32>
    %275 = vector.shape_cast %253 : vector<1x32xf32> to vector<1x1x32xf32>
    %276 = vector.broadcast %275 : vector<1x1x32xf32> to vector<2x8x32xf32>
    %277 = arith.addf %274, %276 : vector<2x8x32xf32>
    %278 = vector.shape_cast %277 : vector<2x8x32xf32> to vector<16x32xf32>
    %c1_101 = arith.constant 1 : index
    %c0_102 = arith.constant 0 : index
    %c0_103 = arith.constant 0 : index
    %279 = vector.load %arg5[%c1_101, %c0_102, %c0_103] : memref<2x32x256xf32, #tpu.memory_space<vmem>>, vector<1x32x96xf32>
    %280 = vector.shape_cast %279 : vector<1x32x96xf32> to vector<32x96xf32>
    %cst_104 = arith.constant dense<0.000000e+00> : vector<16x96xf32>
    %281 = tpu.matmul %278, %280, %cst_104 {dimension_numbers = #tpu.dot_dimension_numbers<[1], [0], [0], [1], [0, 0, 1, 1], [], []>} : vector<16x32xf32>, vector<32x96xf32>, vector<16x96xf32> -> vector<16x96xf32>
    %c1_105 = arith.constant 1 : index
    %c0_106 = arith.constant 0 : index
    %c0_107 = arith.constant 0 : index
    %282 = vector.load %arg9[%c1_105, %c0_106, %c0_107] : memref<2x1x480xf32, #tpu.memory_space<vmem>>, vector<1x1x96xf32>
    %283 = vector.shape_cast %282 : vector<1x1x96xf32> to vector<1x96xf32>
    %284 = vector.broadcast %283 : vector<1x96xf32> to vector<16x96xf32>
    %285 = arith.addf %281, %284 : vector<16x96xf32>
    %286 = vector.extract_strided_slice %285 {offsets = [0, 0], sizes = [16, 32], strides = [1, 1]} : vector<16x96xf32> to vector<16x32xf32>
    %287 = vector.extract_strided_slice %286 {offsets = [0, 0], sizes = [16, 8], strides = [1, 1]} : vector<16x32xf32> to vector<16x8xf32>
    %288 = vector.extract_strided_slice %286 {offsets = [0, 8], sizes = [16, 8], strides = [1, 1]} : vector<16x32xf32> to vector<16x8xf32>
    %289 = vector.extract_strided_slice %286 {offsets = [0, 16], sizes = [16, 8], strides = [1, 1]} : vector<16x32xf32> to vector<16x8xf32>
    %290 = vector.extract_strided_slice %286 {offsets = [0, 24], sizes = [16, 8], strides = [1, 1]} : vector<16x32xf32> to vector<16x8xf32>
    %291 = tpu.concatenate %287, %288, %289, %290 in 0 : vector<16x8xf32>, vector<16x8xf32>, vector<16x8xf32>, vector<16x8xf32> -> vector<64x8xf32>
    %292 = vector.shape_cast %291 : vector<64x8xf32> to vector<8x8x8xf32>
    %293 = vector.extract_strided_slice %285 {offsets = [0, 32], sizes = [16, 32], strides = [1, 1]} : vector<16x96xf32> to vector<16x32xf32>
    %294 = vector.extract_strided_slice %293 {offsets = [0, 0], sizes = [16, 8], strides = [1, 1]} : vector<16x32xf32> to vector<16x8xf32>
    %295 = vector.extract_strided_slice %293 {offsets = [0, 8], sizes = [16, 8], strides = [1, 1]} : vector<16x32xf32> to vector<16x8xf32>
    %296 = vector.extract_strided_slice %293 {offsets = [0, 16], sizes = [16, 8], strides = [1, 1]} : vector<16x32xf32> to vector<16x8xf32>
    %297 = vector.extract_strided_slice %293 {offsets = [0, 24], sizes = [16, 8], strides = [1, 1]} : vector<16x32xf32> to vector<16x8xf32>
    %298 = tpu.concatenate %294, %295, %296, %297 in 0 : vector<16x8xf32>, vector<16x8xf32>, vector<16x8xf32>, vector<16x8xf32> -> vector<64x8xf32>
    %299 = vector.shape_cast %298 : vector<64x8xf32> to vector<8x8x8xf32>
    %300 = vector.extract_strided_slice %285 {offsets = [0, 64], sizes = [16, 32], strides = [1, 1]} : vector<16x96xf32> to vector<16x32xf32>
    %301 = vector.extract_strided_slice %300 {offsets = [0, 0], sizes = [16, 8], strides = [1, 1]} : vector<16x32xf32> to vector<16x8xf32>
    %302 = vector.extract_strided_slice %300 {offsets = [0, 8], sizes = [16, 8], strides = [1, 1]} : vector<16x32xf32> to vector<16x8xf32>
    %303 = vector.extract_strided_slice %300 {offsets = [0, 16], sizes = [16, 8], strides = [1, 1]} : vector<16x32xf32> to vector<16x8xf32>
    %304 = vector.extract_strided_slice %300 {offsets = [0, 24], sizes = [16, 8], strides = [1, 1]} : vector<16x32xf32> to vector<16x8xf32>
    %305 = tpu.concatenate %301, %302, %303, %304 in 0 : vector<16x8xf32>, vector<16x8xf32>, vector<16x8xf32>, vector<16x8xf32> -> vector<64x8xf32>
    %306 = vector.shape_cast %305 : vector<64x8xf32> to vector<8x8x8xf32>
    "tpu.trace_start"() <{level = 10 : i32, message = "bqd,bkd->bqk"}> : () -> ()
    %cst_108 = arith.constant dense<0.000000e+00> : vector<8x8x8xf32>
    %307 = tpu.matmul %292, %299, %cst_108 {dimension_numbers = #tpu.dot_dimension_numbers<[2], [2], [1], [1], [0, 0, 0, 1, 1, 1], [0], [0]>} : vector<8x8x8xf32>, vector<8x8x8xf32>, vector<8x8x8xf32> -> vector<8x8x8xf32>
    "tpu.trace_stop"() : () -> ()
    %308 = arith.addf %307, %6 : vector<8x8x8xf32>
    %cst_109 = arith.constant dense<0xFF800000> : vector<8x8xf32>
    %309 = vector.multi_reduction <maximumf>, %308, %cst_109 [2] : vector<8x8x8xf32> to vector<8x8xf32>
    %310 = vector.shape_cast %309 : vector<8x8xf32> to vector<8x8x1xf32>
    %311 = vector.broadcast %310 : vector<8x8x1xf32> to vector<8x8x8xf32>
    %312 = arith.subf %308, %311 : vector<8x8x8xf32>
    %313 = math.exp %312 : vector<8x8x8xf32>
    %cst_110 = arith.constant dense<0.000000e+00> : vector<8x8xf32>
    %314 = vector.multi_reduction <add>, %313, %cst_110 [2] : vector<8x8x8xf32> to vector<8x8xf32>
    %315 = vector.shape_cast %314 : vector<8x8xf32> to vector<8x8x1xf32>
    %316 = tpu.reciprocal %315 {approx = true} : vector<8x8x1xf32> -> vector<8x8x1xf32>
    %317 = vector.broadcast %316 : vector<8x8x1xf32> to vector<8x8x8xf32>
    %318 = arith.mulf %313, %317 : vector<8x8x8xf32>
    "tpu.trace_start"() <{level = 10 : i32, message = "bqk,bkd->bqd"}> : () -> ()
    %cst_111 = arith.constant dense<0.000000e+00> : vector<8x8x8xf32>
    %319 = tpu.matmul %318, %306, %cst_111 {dimension_numbers = #tpu.dot_dimension_numbers<[2], [1], [1], [2], [0, 0, 0, 1, 1, 2], [0], [0]>} : vector<8x8x8xf32>, vector<8x8x8xf32>, vector<8x8x8xf32> -> vector<8x8x8xf32>
    "tpu.trace_stop"() : () -> ()
    %320 = vector.extract_strided_slice %319 {offsets = [0, 0, 0], sizes = [2, 8, 8], strides = [1, 1, 1]} : vector<8x8x8xf32> to vector<2x8x8xf32>
    %321 = vector.shape_cast %320 : vector<2x8x8xf32> to vector<16x8xf32>
    %322 = vector.extract_strided_slice %319 {offsets = [2, 0, 0], sizes = [2, 8, 8], strides = [1, 1, 1]} : vector<8x8x8xf32> to vector<2x8x8xf32>
    %323 = vector.shape_cast %322 : vector<2x8x8xf32> to vector<16x8xf32>
    %324 = vector.extract_strided_slice %319 {offsets = [4, 0, 0], sizes = [2, 8, 8], strides = [1, 1, 1]} : vector<8x8x8xf32> to vector<2x8x8xf32>
    %325 = vector.shape_cast %324 : vector<2x8x8xf32> to vector<16x8xf32>
    %326 = vector.extract_strided_slice %319 {offsets = [6, 0, 0], sizes = [2, 8, 8], strides = [1, 1, 1]} : vector<8x8x8xf32> to vector<2x8x8xf32>
    %327 = vector.shape_cast %326 : vector<2x8x8xf32> to vector<16x8xf32>
    %328 = tpu.concatenate %321, %323, %325, %327 in 1 : vector<16x8xf32>, vector<16x8xf32>, vector<16x8xf32>, vector<16x8xf32> -> vector<16x32xf32>
    %c1_112 = arith.constant 1 : index
    %c0_113 = arith.constant 0 : index
    %c96_114 = arith.constant 96 : index
    %329 = vector.load %arg5[%c1_112, %c0_113, %c96_114] : memref<2x32x256xf32, #tpu.memory_space<vmem>>, vector<1x32x32xf32>
    %330 = vector.shape_cast %329 : vector<1x32x32xf32> to vector<32x32xf32>
    %cst_115 = arith.constant dense<0.000000e+00> : vector<16x32xf32>
    %331 = tpu.matmul %328, %330, %cst_115 {dimension_numbers = #tpu.dot_dimension_numbers<[1], [0], [0], [1], [0, 0, 1, 1], [], []>} : vector<16x32xf32>, vector<32x32xf32>, vector<16x32xf32> -> vector<16x32xf32>
    %c1_116 = arith.constant 1 : index
    %c0_117 = arith.constant 0 : index
    %c96_118 = arith.constant 96 : index
    %332 = vector.load %arg9[%c1_116, %c0_117, %c96_118] : memref<2x1x480xf32, #tpu.memory_space<vmem>>, vector<1x1x32xf32>
    %333 = vector.shape_cast %332 : vector<1x1x32xf32> to vector<1x32xf32>
    %334 = vector.broadcast %333 : vector<1x32xf32> to vector<16x32xf32>
    %335 = arith.addf %331, %334 : vector<16x32xf32>
    %336 = vector.shape_cast %335 : vector<16x32xf32> to vector<2x8x32xf32>
    %337 = arith.addf %249, %336 : vector<2x8x32xf32>
    %c1_119 = arith.constant 1 : index
    %c0_120 = arith.constant 0 : index
    %c352_121 = arith.constant 352 : index
    %338 = vector.load %arg9[%c1_119, %c0_120, %c352_121] : memref<2x1x480xf32, #tpu.memory_space<vmem>>, vector<1x1x32xf32>
    %339 = vector.shape_cast %338 : vector<1x1x32xf32> to vector<1x32xf32>
    %c1_122 = arith.constant 1 : index
    %c0_123 = arith.constant 0 : index
    %c384_124 = arith.constant 384 : index
    %340 = vector.load %arg9[%c1_122, %c0_123, %c384_124] : memref<2x1x480xf32, #tpu.memory_space<vmem>>, vector<1x1x32xf32>
    %341 = vector.shape_cast %340 : vector<1x1x32xf32> to vector<1x32xf32>
    %cst_125 = arith.constant dense<0.000000e+00> : vector<2x8xf32>
    %342 = vector.multi_reduction <add>, %337, %cst_125 [2] : vector<2x8x32xf32> to vector<2x8xf32>
    %343 = vector.shape_cast %342 : vector<2x8xf32> to vector<2x8x1xf32>
    %cst_126 = arith.constant 3.200000e+01 : f32
    %344 = vector.broadcast %cst_126 : f32 to vector<2x8x1xf32>
    %345 = arith.divf %343, %344 : vector<2x8x1xf32>
    %346 = vector.broadcast %345 : vector<2x8x1xf32> to vector<2x8x32xf32>
    %347 = arith.subf %337, %346 : vector<2x8x32xf32>
    %348 = arith.mulf %347, %347 : vector<2x8x32xf32>
    %cst_127 = arith.constant dense<0.000000e+00> : vector<2x8xf32>
    %349 = vector.multi_reduction <add>, %348, %cst_127 [2] : vector<2x8x32xf32> to vector<2x8xf32>
    %350 = vector.shape_cast %349 : vector<2x8xf32> to vector<2x8x1xf32>
    %cst_128 = arith.constant 3.200000e+01 : f32
    %351 = vector.broadcast %cst_128 : f32 to vector<2x8x1xf32>
    %352 = arith.divf %350, %351 : vector<2x8x1xf32>
    %353 = vector.broadcast %345 : vector<2x8x1xf32> to vector<2x8x32xf32>
    %354 = arith.subf %337, %353 : vector<2x8x32xf32>
    %cst_129 = arith.constant 9.99999974E-6 : f32
    %355 = vector.broadcast %cst_129 : f32 to vector<2x8x1xf32>
    %356 = arith.addf %352, %355 : vector<2x8x1xf32>
    %357 = math.rsqrt %356 : vector<2x8x1xf32>
    %358 = vector.broadcast %357 : vector<2x8x1xf32> to vector<2x8x32xf32>
    %359 = arith.mulf %354, %358 : vector<2x8x32xf32>
    %360 = vector.shape_cast %339 : vector<1x32xf32> to vector<1x1x32xf32>
    %361 = vector.broadcast %360 : vector<1x1x32xf32> to vector<2x8x32xf32>
    %362 = arith.mulf %359, %361 : vector<2x8x32xf32>
    %363 = vector.shape_cast %341 : vector<1x32xf32> to vector<1x1x32xf32>
    %364 = vector.broadcast %363 : vector<1x1x32xf32> to vector<2x8x32xf32>
    %365 = arith.addf %362, %364 : vector<2x8x32xf32>
    %366 = vector.shape_cast %365 : vector<2x8x32xf32> to vector<16x32xf32>
    %c1_130 = arith.constant 1 : index
    %c0_131 = arith.constant 0 : index
    %c128_132 = arith.constant 128 : index
    %367 = vector.load %arg5[%c1_130, %c0_131, %c128_132] : memref<2x32x256xf32, #tpu.memory_space<vmem>>, vector<1x32x32xf32>
    %368 = vector.shape_cast %367 : vector<1x32x32xf32> to vector<32x32xf32>
    %cst_133 = arith.constant dense<0.000000e+00> : vector<16x32xf32>
    %369 = tpu.matmul %366, %368, %cst_133 {dimension_numbers = #tpu.dot_dimension_numbers<[1], [0], [0], [1], [0, 0, 1, 1], [], []>} : vector<16x32xf32>, vector<32x32xf32>, vector<16x32xf32> -> vector<16x32xf32>
    %c1_134 = arith.constant 1 : index
    %c0_135 = arith.constant 0 : index
    %c128_136 = arith.constant 128 : index
    %370 = vector.load %arg9[%c1_134, %c0_135, %c128_136] : memref<2x1x480xf32, #tpu.memory_space<vmem>>, vector<1x1x32xf32>
    %371 = vector.shape_cast %370 : vector<1x1x32xf32> to vector<1x32xf32>
    %372 = vector.broadcast %371 : vector<1x32xf32> to vector<16x32xf32>
    %373 = arith.addf %369, %372 : vector<16x32xf32>
    %374 = vector.extract_strided_slice %373 {offsets = [0, 0], sizes = [16, 8], strides = [1, 1]} : vector<16x32xf32> to vector<16x8xf32>
    %375 = vector.extract_strided_slice %373 {offsets = [0, 8], sizes = [16, 8], strides = [1, 1]} : vector<16x32xf32> to vector<16x8xf32>
    %376 = vector.extract_strided_slice %373 {offsets = [0, 16], sizes = [16, 8], strides = [1, 1]} : vector<16x32xf32> to vector<16x8xf32>
    %377 = vector.extract_strided_slice %373 {offsets = [0, 24], sizes = [16, 8], strides = [1, 1]} : vector<16x32xf32> to vector<16x8xf32>
    %378 = tpu.concatenate %374, %375, %376, %377 in 0 : vector<16x8xf32>, vector<16x8xf32>, vector<16x8xf32>, vector<16x8xf32> -> vector<64x8xf32>
    %379 = vector.shape_cast %378 : vector<64x8xf32> to vector<8x8x8xf32>
    "tpu.trace_start"() <{level = 10 : i32, message = "bqd,bkd->bqk"}> : () -> ()
    %cst_137 = arith.constant dense<0.000000e+00> : vector<8x8x10xf32>
    %380 = tpu.matmul %379, %36, %cst_137 {dimension_numbers = #tpu.dot_dimension_numbers<[2], [2], [1], [1], [0, 0, 0, 1, 1, 1], [0], [0]>} : vector<8x8x8xf32>, vector<8x10x8xf32>, vector<8x8x10xf32> -> vector<8x8x10xf32>
    "tpu.trace_stop"() : () -> ()
    %381 = arith.addf %380, %7 : vector<8x8x10xf32>
    %cst_138 = arith.constant dense<0xFF800000> : vector<8x8xf32>
    %382 = vector.multi_reduction <maximumf>, %381, %cst_138 [2] : vector<8x8x10xf32> to vector<8x8xf32>
    %383 = vector.shape_cast %382 : vector<8x8xf32> to vector<8x8x1xf32>
    %384 = vector.broadcast %383 : vector<8x8x1xf32> to vector<8x8x10xf32>
    %385 = arith.subf %381, %384 : vector<8x8x10xf32>
    %386 = math.exp %385 : vector<8x8x10xf32>
    %cst_139 = arith.constant dense<0.000000e+00> : vector<8x8xf32>
    %387 = vector.multi_reduction <add>, %386, %cst_139 [2] : vector<8x8x10xf32> to vector<8x8xf32>
    %388 = vector.shape_cast %387 : vector<8x8xf32> to vector<8x8x1xf32>
    %389 = tpu.reciprocal %388 {approx = true} : vector<8x8x1xf32> -> vector<8x8x1xf32>
    %390 = vector.broadcast %389 : vector<8x8x1xf32> to vector<8x8x10xf32>
    %391 = arith.mulf %386, %390 : vector<8x8x10xf32>
    "tpu.trace_start"() <{level = 10 : i32, message = "bqk,bkd->bqd"}> : () -> ()
    %cst_140 = arith.constant dense<0.000000e+00> : vector<8x8x8xf32>
    %392 = tpu.matmul %391, %42, %cst_140 {dimension_numbers = #tpu.dot_dimension_numbers<[2], [1], [1], [2], [0, 0, 0, 1, 1, 2], [0], [0]>} : vector<8x8x10xf32>, vector<8x10x8xf32>, vector<8x8x8xf32> -> vector<8x8x8xf32>
    "tpu.trace_stop"() : () -> ()
    %393 = vector.extract_strided_slice %392 {offsets = [0, 0, 0], sizes = [2, 8, 8], strides = [1, 1, 1]} : vector<8x8x8xf32> to vector<2x8x8xf32>
    %394 = vector.shape_cast %393 : vector<2x8x8xf32> to vector<16x8xf32>
    %395 = vector.extract_strided_slice %392 {offsets = [2, 0, 0], sizes = [2, 8, 8], strides = [1, 1, 1]} : vector<8x8x8xf32> to vector<2x8x8xf32>
    %396 = vector.shape_cast %395 : vector<2x8x8xf32> to vector<16x8xf32>
    %397 = vector.extract_strided_slice %392 {offsets = [4, 0, 0], sizes = [2, 8, 8], strides = [1, 1, 1]} : vector<8x8x8xf32> to vector<2x8x8xf32>
    %398 = vector.shape_cast %397 : vector<2x8x8xf32> to vector<16x8xf32>
    %399 = vector.extract_strided_slice %392 {offsets = [6, 0, 0], sizes = [2, 8, 8], strides = [1, 1, 1]} : vector<8x8x8xf32> to vector<2x8x8xf32>
    %400 = vector.shape_cast %399 : vector<2x8x8xf32> to vector<16x8xf32>
    %401 = tpu.concatenate %394, %396, %398, %400 in 1 : vector<16x8xf32>, vector<16x8xf32>, vector<16x8xf32>, vector<16x8xf32> -> vector<16x32xf32>
    %c1_141 = arith.constant 1 : index
    %c0_142 = arith.constant 0 : index
    %c160_143 = arith.constant 160 : index
    %402 = vector.load %arg5[%c1_141, %c0_142, %c160_143] : memref<2x32x256xf32, #tpu.memory_space<vmem>>, vector<1x32x32xf32>
    %403 = vector.shape_cast %402 : vector<1x32x32xf32> to vector<32x32xf32>
    %cst_144 = arith.constant dense<0.000000e+00> : vector<16x32xf32>
    %404 = tpu.matmul %401, %403, %cst_144 {dimension_numbers = #tpu.dot_dimension_numbers<[1], [0], [0], [1], [0, 0, 1, 1], [], []>} : vector<16x32xf32>, vector<32x32xf32>, vector<16x32xf32> -> vector<16x32xf32>
    %c1_145 = arith.constant 1 : index
    %c0_146 = arith.constant 0 : index
    %c160_147 = arith.constant 160 : index
    %405 = vector.load %arg9[%c1_145, %c0_146, %c160_147] : memref<2x1x480xf32, #tpu.memory_space<vmem>>, vector<1x1x32xf32>
    %406 = vector.shape_cast %405 : vector<1x1x32xf32> to vector<1x32xf32>
    %407 = vector.broadcast %406 : vector<1x32xf32> to vector<16x32xf32>
    %408 = arith.addf %404, %407 : vector<16x32xf32>
    %409 = vector.shape_cast %408 : vector<16x32xf32> to vector<2x8x32xf32>
    %410 = arith.addf %337, %409 : vector<2x8x32xf32>
    %c1_148 = arith.constant 1 : index
    %c0_149 = arith.constant 0 : index
    %c416_150 = arith.constant 416 : index
    %411 = vector.load %arg9[%c1_148, %c0_149, %c416_150] : memref<2x1x480xf32, #tpu.memory_space<vmem>>, vector<1x1x32xf32>
    %412 = vector.shape_cast %411 : vector<1x1x32xf32> to vector<1x32xf32>
    %c1_151 = arith.constant 1 : index
    %c0_152 = arith.constant 0 : index
    %c448_153 = arith.constant 448 : index
    %413 = vector.load %arg9[%c1_151, %c0_152, %c448_153] : memref<2x1x480xf32, #tpu.memory_space<vmem>>, vector<1x1x32xf32>
    %414 = vector.shape_cast %413 : vector<1x1x32xf32> to vector<1x32xf32>
    %cst_154 = arith.constant dense<0.000000e+00> : vector<2x8xf32>
    %415 = vector.multi_reduction <add>, %410, %cst_154 [2] : vector<2x8x32xf32> to vector<2x8xf32>
    %416 = vector.shape_cast %415 : vector<2x8xf32> to vector<2x8x1xf32>
    %cst_155 = arith.constant 3.200000e+01 : f32
    %417 = vector.broadcast %cst_155 : f32 to vector<2x8x1xf32>
    %418 = arith.divf %416, %417 : vector<2x8x1xf32>
    %419 = vector.broadcast %418 : vector<2x8x1xf32> to vector<2x8x32xf32>
    %420 = arith.subf %410, %419 : vector<2x8x32xf32>
    %421 = arith.mulf %420, %420 : vector<2x8x32xf32>
    %cst_156 = arith.constant dense<0.000000e+00> : vector<2x8xf32>
    %422 = vector.multi_reduction <add>, %421, %cst_156 [2] : vector<2x8x32xf32> to vector<2x8xf32>
    %423 = vector.shape_cast %422 : vector<2x8xf32> to vector<2x8x1xf32>
    %cst_157 = arith.constant 3.200000e+01 : f32
    %424 = vector.broadcast %cst_157 : f32 to vector<2x8x1xf32>
    %425 = arith.divf %423, %424 : vector<2x8x1xf32>
    %426 = vector.broadcast %418 : vector<2x8x1xf32> to vector<2x8x32xf32>
    %427 = arith.subf %410, %426 : vector<2x8x32xf32>
    %cst_158 = arith.constant 9.99999974E-6 : f32
    %428 = vector.broadcast %cst_158 : f32 to vector<2x8x1xf32>
    %429 = arith.addf %425, %428 : vector<2x8x1xf32>
    %430 = math.rsqrt %429 : vector<2x8x1xf32>
    %431 = vector.broadcast %430 : vector<2x8x1xf32> to vector<2x8x32xf32>
    %432 = arith.mulf %427, %431 : vector<2x8x32xf32>
    %433 = vector.shape_cast %412 : vector<1x32xf32> to vector<1x1x32xf32>
    %434 = vector.broadcast %433 : vector<1x1x32xf32> to vector<2x8x32xf32>
    %435 = arith.mulf %432, %434 : vector<2x8x32xf32>
    %436 = vector.shape_cast %414 : vector<1x32xf32> to vector<1x1x32xf32>
    %437 = vector.broadcast %436 : vector<1x1x32xf32> to vector<2x8x32xf32>
    %438 = arith.addf %435, %437 : vector<2x8x32xf32>
    %439 = vector.shape_cast %438 : vector<2x8x32xf32> to vector<16x32xf32>
    %c1_159 = arith.constant 1 : index
    %c0_160 = arith.constant 0 : index
    %c192_161 = arith.constant 192 : index
    %440 = vector.load %arg5[%c1_159, %c0_160, %c192_161] : memref<2x32x256xf32, #tpu.memory_space<vmem>>, vector<1x32x64xf32>
    %441 = vector.shape_cast %440 : vector<1x32x64xf32> to vector<32x64xf32>
    %cst_162 = arith.constant dense<0.000000e+00> : vector<16x64xf32>
    %442 = tpu.matmul %439, %441, %cst_162 {dimension_numbers = #tpu.dot_dimension_numbers<[1], [0], [0], [1], [0, 0, 1, 1], [], []>} : vector<16x32xf32>, vector<32x64xf32>, vector<16x64xf32> -> vector<16x64xf32>
    %c1_163 = arith.constant 1 : index
    %c0_164 = arith.constant 0 : index
    %c192_165 = arith.constant 192 : index
    %443 = vector.load %arg9[%c1_163, %c0_164, %c192_165] : memref<2x1x480xf32, #tpu.memory_space<vmem>>, vector<1x1x64xf32>
    %444 = vector.shape_cast %443 : vector<1x1x64xf32> to vector<1x64xf32>
    %445 = vector.broadcast %444 : vector<1x64xf32> to vector<16x64xf32>
    %446 = arith.addf %442, %445 : vector<16x64xf32>
    %cst_166 = arith.constant 0.000000e+00 : f32
    %447 = vector.broadcast %cst_166 : f32 to vector<16x64xf32>
    %448 = arith.maximumf %446, %447 : vector<16x64xf32>
    %c0_167 = arith.constant 0 : index
    %c32 = arith.constant 32 : index
    %449 = vector.load %arg6[%c0_167, %c32] : memref<64x64xf32, #tpu.memory_space<vmem>>, vector<64x32xf32>
    %cst_168 = arith.constant dense<0.000000e+00> : vector<16x32xf32>
    %450 = tpu.matmul %448, %449, %cst_168 {dimension_numbers = #tpu.dot_dimension_numbers<[1], [0], [0], [1], [0, 0, 1, 1], [], []>} : vector<16x64xf32>, vector<64x32xf32>, vector<16x32xf32> -> vector<16x32xf32>
    %c1_169 = arith.constant 1 : index
    %c0_170 = arith.constant 0 : index
    %c256_171 = arith.constant 256 : index
    %451 = vector.load %arg9[%c1_169, %c0_170, %c256_171] : memref<2x1x480xf32, #tpu.memory_space<vmem>>, vector<1x1x32xf32>
    %452 = vector.shape_cast %451 : vector<1x1x32xf32> to vector<1x32xf32>
    %453 = vector.broadcast %452 : vector<1x32xf32> to vector<16x32xf32>
    %454 = arith.addf %450, %453 : vector<16x32xf32>
    %455 = vector.shape_cast %454 : vector<16x32xf32> to vector<2x8x32xf32>
    %456 = arith.addf %410, %455 : vector<2x8x32xf32>
    %c0_172 = arith.constant 0 : index
    %c0_173 = arith.constant 0 : index
    %457 = vector.load %arg10[%c0_172, %c0_173] : memref<2x32xf32, #tpu.memory_space<vmem>>, vector<1x32xf32>
    %c1_174 = arith.constant 1 : index
    %c0_175 = arith.constant 0 : index
    %458 = vector.load %arg10[%c1_174, %c0_175] : memref<2x32xf32, #tpu.memory_space<vmem>>, vector<1x32xf32>
    %cst_176 = arith.constant dense<0.000000e+00> : vector<2x8xf32>
    %459 = vector.multi_reduction <add>, %456, %cst_176 [2] : vector<2x8x32xf32> to vector<2x8xf32>
    %460 = vector.shape_cast %459 : vector<2x8xf32> to vector<2x8x1xf32>
    %cst_177 = arith.constant 3.200000e+01 : f32
    %461 = vector.broadcast %cst_177 : f32 to vector<2x8x1xf32>
    %462 = arith.divf %460, %461 : vector<2x8x1xf32>
    %463 = vector.broadcast %462 : vector<2x8x1xf32> to vector<2x8x32xf32>
    %464 = arith.subf %456, %463 : vector<2x8x32xf32>
    %465 = arith.mulf %464, %464 : vector<2x8x32xf32>
    %cst_178 = arith.constant dense<0.000000e+00> : vector<2x8xf32>
    %466 = vector.multi_reduction <add>, %465, %cst_178 [2] : vector<2x8x32xf32> to vector<2x8xf32>
    %467 = vector.shape_cast %466 : vector<2x8xf32> to vector<2x8x1xf32>
    %cst_179 = arith.constant 3.200000e+01 : f32
    %468 = vector.broadcast %cst_179 : f32 to vector<2x8x1xf32>
    %469 = arith.divf %467, %468 : vector<2x8x1xf32>
    %470 = vector.broadcast %462 : vector<2x8x1xf32> to vector<2x8x32xf32>
    %471 = arith.subf %456, %470 : vector<2x8x32xf32>
    %cst_180 = arith.constant 9.99999974E-6 : f32
    %472 = vector.broadcast %cst_180 : f32 to vector<2x8x1xf32>
    %473 = arith.addf %469, %472 : vector<2x8x1xf32>
    %474 = math.rsqrt %473 : vector<2x8x1xf32>
    %475 = vector.broadcast %474 : vector<2x8x1xf32> to vector<2x8x32xf32>
    %476 = arith.mulf %471, %475 : vector<2x8x32xf32>
    %477 = vector.shape_cast %457 : vector<1x32xf32> to vector<1x1x32xf32>
    %478 = vector.broadcast %477 : vector<1x1x32xf32> to vector<2x8x32xf32>
    %479 = arith.mulf %476, %478 : vector<2x8x32xf32>
    %480 = vector.shape_cast %458 : vector<1x32xf32> to vector<1x1x32xf32>
    %481 = vector.broadcast %480 : vector<1x1x32xf32> to vector<2x8x32xf32>
    %482 = arith.addf %479, %481 : vector<2x8x32xf32>
    %c0_181 = arith.constant 0 : index
    %c0_182 = arith.constant 0 : index
    %c0_183 = arith.constant 0 : index
    %483 = vector.load %arg11[%c0_181, %c0_182, %c0_183] : memref<2x8x32xf32, #tpu.memory_space<vmem>>, vector<2x8x32xf32>
    tpu.vector_store %arg11[%c0_181, %c0_182, %c0_183], %482 {strides = array<i32>} : memref<2x8x32xf32, #tpu.memory_space<vmem>>, vector<2x8x32xf32>,
    return
  }
}

</mosaic_0001>

<bundles_post_ra>
// kernel: decoder_forward.1
= control target key start
LH: loop header
LB: loop body
LE: loop exit
PB: predicated region body
PF: predicated region fallthrough
CT: control target
= control target key end

     0   :  { %s10923_s0 = inlined_call_operand.vmem [shape: f32[2,8,32], index: 0, kind: input, shape index: {}]   ;;  %s10924_s1 = inlined_call_operand.vmem [shape: f32[2,10,32], index: 1, kind: input, shape index: {}]   ;;  %s10925_s2 = inlined_call_operand.vmem [shape: f32[1,8,32], index: 2, kind: input, shape index: {}]   ;;  %s10926_s3 = inlined_call_operand.vmem [shape: f32[8,8,8], index: 3, kind: input, shape index: {}]   ;;  %s10927_s4 = inlined_call_operand.vmem [shape: f32[8,8,10], index: 4, kind: input, shape index: {}]   ;;  %s10928_s5 = inlined_call_operand.vmem [shape: f32[2,32,256], index: 5, kind: input, shape index: {}]   ;;  %s10929_s6 = inlined_call_operand.vmem [shape: f32[64,64], index: 6, kind: input, shape index: {}]   ;;  %s10930_s7 = inlined_call_operand.vmem [shape: f32[32,128], index: 7, kind: input, shape index: {}]   ;;  %s10931_s8 = inlined_call_operand.vmem [shape: f32[1,128], index: 8, kind: input, shape index: {}]   ;;  %s10932_s9 = inlined_call_operand.vmem [shape: f32[2,1,480], index: 9, kind: input, shape index: {}]   ;;  %s10933_s10 = inlined_call_operand.vmem [shape: f32[2,32], index: 10, kind: input, shape index: {}]   ;;  %s10934_s11 = inlined_call_operand.hbm [shape: f32[2,8,32], index: 11, kind: output, shape index: {}]  }
   0x1   :  { %v39_v0 = vld [vmem:[%s10923_s0] sm:$0xff]  ;;  %v40_v2 = vld [vmem:[%s10923_s0 + $0x8] sm:$0xff] }
   0x2   :  { %v43_v1 = vld [vmem:[%s10925_s2] sm:$0xff]  ;;  %v41_v3 = vmul.f32 5.656854, %v39_v0  ;;  %v42_v4 = vmul.f32 5.656854, %v40_v2 }
   0x3   :  { %16 = vsyncpa [#allocation3], 0  ;;  %vm171_vm0 = vcmask 261120   ;;  %v9468_v9 = vld [vmem:[%s10932_s9 + $0x2] ss:$0 sm:$0xff]  ;;  %s9372_s0 = smov 96   ;;  %v74_v22 = vlaneseq }
   0x4   :  { %v9457_v5 = vadd.f32 %v43_v1, %v41_v3  ;;  %v9459_v6 = vadd.f32 %v43_v1, %v42_v4  ;;  %v9373_v20 = vmov 1983009808   ;;  %v62_v25 = vld [vmem:[%s10924_s1] sm:$0xff]  ;;  %v119_v29 = vld [vmem:[%s10930_s7 + $0x8] sm:$0xff]  ;;  %v9374_v33 = vmov 0.0|0.0   ;;  %v64_v36 = vld [vmem:[%s10924_s1 + $0x10] sm:$0xff] }
   0x5   :  { %v72_v21 = vunpack.c.l.s4 %v9373_v20  ;;  %v75_v24 = vshrl.u32 %v74_v22, 7  ;;  %v70_v26 = vcombine.high %v62_v25, %v62_v25  ;;  %v118_v28 = vld [vmem:[%s10930_s7] sm:$0xff]  ;;  %8708 = vmatprep.subr.bf16.mxu0 %v9374_v33  ;;  %8954 = vmatprep.subr.bf16.mxu1 %v9374_v33  ;;  %v120_v37 = vld [vmem:[%s10930_s7 + $0x10] sm:$0xff]  ;;  %v121_v38 = vld [vmem:[%s10930_s7 + $0x18] sm:$0xff]  ;;  %v94_v41 = vcombine.high %v64_v36, %v64_v36  ;;  %s9375_s7 = smov 64   ;;  %s9378_s30 = smov 112  }
   0x6   :  { %v463_v7 = vsel %vm171_vm0, %v9457_v5, 0.0  ;;  %v466_v8 = vsel %vm171_vm0, %v9459_v6, 0.0  ;;  %v8709_v32 = vpack.c.bf16 %v119_v29, %v118_v28  ;;  %v8712_v42 = vpack.c.bf16 %v121_v38, %v120_v37  ;;  %v7709_v47 = vld.sshfl [vmem:[%s10924_s1 + $0x8] sm:$0x3 pattern:$0x76325410] }
   0x7   :  { %464 = vadd.xlane.f32.xlu0 %v463_v7  ;;  %v73_v23 = vunpack.c.0.s8 %v72_v21  ;;  %vm9376_vm1 = vmmov 0   ;;  %v9377_v51 = vmov 0.0   ;;  %v7710_v57 = vld.sshfl [vmem:[%s10924_s1 + $0x18] sm:$0x3 pattern:$0x76325410] }
   0x8   :  { %8710 = vmatpush3.bf16.msra.mxu0 %v8709_v32  ;;  %8956 = vmatpush3.bf16.msra.mxu1 %v8709_v32  ;;  %v9536_v59 = vld [vmem:[%s10928_s5] sm:$0xff]  ;;  %v9541_v60 = vld [vmem:[%s10928_s5 + $0x10] sm:$0xff]  ;;  %s9379_s12 = smov 120   ;;  %s9380_s13 = smov 104   ;;  %vm613_vm2 = vcmask 64512   ;;  %vm1942_vm3 = vcmask 130048  }
   0x9   :  { %v9487_v27 = vsub.s32 %v73_v23, %v75_v24  ;;  %8711 = vmatprep.subr.bf16.mxu0 %v9374_v33  ;;  %8955 = vmatprep.subr.bf16.mxu1 %v9374_v33  ;;  %v8714_v62 = vpack.c.bf16 %v9541_v60, %v9536_v59  ;;  %v9552_v63 = vld [vmem:[%s10928_s5 + $0x20] sm:$0xff]  ;;  %v9557_v0 = vld [vmem:[%s10928_s5 + $0x30] sm:$0xff]  ;;  %s9381_s28 = smov 32   ;;  %s9383_s29 = smov 16   ;;  %vm1945_vm4 = vcmask 195584   ;;  %vm9821_vm5 = vmpackc.low %vm613_vm2, %vm613_vm2  ;;  %vm261_vm6 = vcmask 1043456  }
   0xa   :  { %8167 = vmatprep.mubr.msk.f32.mxu0 %vm9376_vm1, %v9377_v51  ;;  %8170 = vmatprep.mubr.msk.f32.mxu1 %vm9376_vm1, %v9377_v51  ;;  %v8718_v1 = vpack.c.bf16 %v9557_v0, %v9552_v63  ;;  %v7711_v23 = vld [vmem:[%s10931_s8] ss:$0 sm:$0xff]  ;;  %s9382_s8 = smov 8   ;;  %s9384_s14 = smov 24   ;;  %vm3012_vm7 = vcmask 80896   ;;  %vm3109_vm8 = vcmask 1041408  }
   0xb   :  { %467 = vadd.xlane.f32.xlu0 %v466_v8  ;;  %v77_v30 = vrot.slane %v62_v25, %v9487_v27  ;;  %v84_v31 = vrot.slane %v70_v26, %v9487_v27  ;;  %v101_v43 = vrot.slane %v64_v36, %v9487_v27  ;;  %v108_v46 = vrot.slane %v94_v41, %v9487_v27  ;;  %s9386_s15 = smov [#allocation2]  }
   0xc   :  { %8713 = vmatpush3.bf16.msra.mxu0 %v8712_v42  ;;  %8957 = vmatpush3.bf16.msra.mxu1 %v8712_v42  ;;  %vm9385_vm9 = vmmov 1   ;;  %vm4039_vm11 = vcmask 523264   ;;  %s7698_s16 = sshll.u32 %s9386_s15, 4  ;;  %s7699_s16 = int_to_ptr.vmem [resolvable:$true] %s7698_s16 }
   0xd   :  { %v85_v34 = vcombine.high %v77_v30, %v77_v30  ;;  %v86_v35 = vcombine.high %v84_v31, %v84_v31  ;;  %v109_v48 = vcombine.high %v101_v43, %v101_v43  ;;  %v146_v50 = vcombine.low %v7709_v47, %v101_v43  ;;  %8197 = vmatprep.subr.mxu0 %v9377_v51  ;;  %vm10124_vm10 = vmpackc.low %vm3109_vm8, %vm9385_vm9  ;;  %s9348_s17 = scalar_lea.vmem %s7699_s16, 256  ;;  %p9353_p1 = scmp.lt.s32.totalorder %s7699_s16, %s7699_s16 }
   0xe   :  { %v110_v55 = vcombine.high %v108_v46, %v108_v46  ;;  %8715 = vmatprep.subr.bf16.mxu1 %v8714_v62  ;;  %p9349_p0 = scmp.ne.s32.totalorder %s7699_s16, %s9348_s17  ;;  %p9354_p2 = scmp.lt.s32.totalorder %s9348_s17, %s9348_s17 }
   0xf   :  { %v129_v39 = vcombine.low %v77_v30, %v85_v34  ;;  %v130_v40 = vcombine.low %v84_v31, %v86_v35  ;;  %v147_v52 = vcombine.low %v109_v48, %v108_v46  ;;  %v154_v53 = vrot.slane %v146_v50, %v9487_v27  ;;  %v9601_v46 = vld [vmem:[%s10932_s9] ss:$0 sm:$0xff] }
  0x10   :  { %v163_v58 = vcombine.low %v110_v55, %v7710_v57  ;;  %p9355_p3 = por %p9354_p2, %p9353_p1 }
  0x11   :  { %v137_v44 = vrot.slane %v129_v39, %v9487_v27  ;;  %v144_v45 = vrot.slane %v130_v40, %v9487_v27  ;;  %v161_v54 = vrot.slane %v147_v52, %v9487_v27 }
  0x12   :  { %v170_v61 = vrot.slane %v163_v58, %v9487_v27  ;;  %p9356_p4 = pnand %p9355_p3, %p9349_p0 }
  0x13   :  { %v145_v49 = vcombine.low %v137_v44, %v144_v45  ;;  %v162_v56 = vcombine.low %v154_v53, %v161_v54 }
  0x15   :  { %8168 = vmatmul.mubr.msk.f32.vlgmr.msra.gmra.mrb[0].mxu0 %vm171_vm0, %v145_v49  ;;  %8171 = vmatmul.mubr.msk.f32.vlgmr.msra.gmra.mrb[0].mxu1 %vm171_vm0, %v162_v56 }
  0x16   :  { %8199 = vmatprep.mubr.msk.f32.mxu0 %vm9376_vm1, %v9377_v51  ;;  %8173 = vmatprep.mubr.msk.f32.mxu1 %vm9376_vm1, %v9377_v51 }
  0x17   :  { %8717 = vmatpush3.bf16.msra.mxu1 %v8714_v62 }
  0x18   :  { %8719 = vmatprep.subr.bf16.mxu1 %v8718_v1 }
  0x19   :  { %8174 = vmatmul.mubr.msk.f32.gmra.mrb[2].mxu1 %vm171_vm0, %v170_v61 }
  0x1b   :  { %8721 = vmatpush3.bf16.msra.mxu1 %v8718_v1 }
  0x1c   :  { %8187 = vmatprep.subr.mxu1 %v9377_v51 }
  0x21   :  { %495 = vrot.lane.b32.xlu0 %v9468_v9, %s9372_s0 }
  0x94   :  { %v465_v10 = vpop.xlane.xlu0 %464 }
  0x95   :  { %v470_v11 = vmul.f32 0.03125, %v465_v10 }
  0x97   :  { %v9473_v12 = vsub.f32 %v9457_v5, %v470_v11 }
  0x98   :  { %v468_v13 = vpop.xlane.xlu0 %467 }
  0x99   :  { %v471_v14 = vmul.f32 0.03125, %v468_v13  ;;  %v474_v15 = vmul.f32 %v9473_v12, %v9473_v12 }
  0x9b   :  { %v9478_v16 = vsub.f32 %v9459_v6, %v471_v14  ;;  %v476_v17 = vsel %vm171_vm0, %v474_v15, 0.0 }
  0x9c   :  { %477 = vadd.xlane.f32.xlu1 %v476_v17  ;;  %v496_v13 = vpop.permute.xlu0 %495 }
  0x9d   :  { %v475_v18 = vmul.f32 %v9478_v16, %v9478_v16 }
  0x9f   :  { %v479_v19 = vsel %vm171_vm0, %v475_v18, 0.0 }
  0xa0   :  { %480 = vadd.xlane.f32.xlu1 %v479_v19 }
  0xb1   :  { %500 = vrot.lane.b32.xlu1 %v9468_v9, %s9375_s7 }
  0xe8   :  { %v249_v30 = vpop.f32.mrb[0].mxu1 }
  0xe9   :  { %v9578_v31 = vadd.f32 %v7711_v23, %v249_v30  ;;  %v8172_v32 = vpop.f32.mrb[1].mxu1 }
  0xeb   :  { %v9583_v39 = vrot.slane %v9578_v31, %v9487_v27 }
  0xec   :  { %v254_v37 = vpop.f32.mrb[2].mxu1 }
  0xed   :  { %v9585_v40 = vadd.f32 %v7711_v23, %v254_v37  ;;  %v8175_v41 = vpop.f32.mrb[3].mxu1  ;;  %v9592_v44 = vrot.slane %v9583_v39, %v9487_v27 }
 0x129   :  { %v478_v2 = vpop.xlane.xlu1 %477 }
 0x12a   :  { %v482_v3 = vmul.f32 0.03125, %v478_v2 }
 0x12c   :  { %v484_v4 = vadd.f32 1e-05, %v482_v3 }
 0x12d   :  { %v481_v7 = vpop.xlane.xlu1 %480 }
 0x12e   :  { %9176 = vrsqrt.f32 %v484_v4  ;;  %v483_v8 = vmul.f32 0.03125, %v481_v7 }
 0x130   :  { %v485_v10 = vadd.f32 1e-05, %v483_v8  ;;  %v46_v8 = vld [vmem:[%s10926_s3] sm:$0xff] }
 0x131   :  { %v501_v15 = vpop.permute.xlu1 %500 }
 0x132   :  { %9178 = vrsqrt.f32 %v485_v10 }
 0x138   :  { %v9177_v11 = vpop.eup %9176 }
 0x139   :  { %v488_v14 = vmul.f32 %v9177_v11, %v9473_v12  ;;  %v244_v12 = vpop.f32.mrb[0].mxu0 }
 0x13a   :  { %v9571_v24 = vadd.f32 %v7711_v23, %v244_v12  ;;  %v8169_v25 = vpop.f32.mrb[1].mxu0  ;;  %v49_v23 = vld [vmem:[%s10926_s3 + $0x18] sm:$0xff]  ;;  %v48_v12 = vld [vmem:[%s10926_s3 + $0x10] sm:$0xff] }
 0x13b   :  { %v498_v17 = vmul.f32 %v496_v13, %v488_v14 }
 0x13c   :  { %v9179_v18 = vpop.eup %9178  ;;  %v299_v26 = vrot.slane %v9571_v24, %v9487_v27 }
 0x13d   :  { %v489_v19 = vmul.f32 %v9179_v18, %v9478_v16  ;;  %v503_v20 = vadd.f32 %v501_v15, %v498_v17  ;;  %v292_v16 = vcombine.high %v9571_v24, %v9571_v24 }
 0x13e   :  { %v307_v29 = vcombine.high %v299_v26, %v299_v26 }
 0x13f   :  { %v499_v21 = vmul.f32 %v496_v13, %v489_v19  ;;  %8184 = vmatprep.mubr.msk.f32.mxu1 %vm171_vm0, %v503_v20  ;;  %v306_v28 = vrot.slane %v292_v16, %v9487_v27 }
 0x140   :  { %v2212_v35 = vcombine.low %v299_v26, %v307_v29 }
 0x141   :  { %v504_v22 = vadd.f32 %v501_v15, %v499_v21  ;;  %v308_v34 = vcombine.high %v306_v28, %v306_v28  ;;  %v47_v15 = vld [vmem:[%s10926_s3 + $0x8] sm:$0xff] }
 0x142   :  { %v2220_v38 = vrot.slane %v2212_v35, %v9487_v27  ;;  %v50_v35 = vld [vmem:[%s10926_s3 + $0x20] sm:$0xff] }
 0x143   :  { %8185 = vmatmul.mubr.msk.f32.vlgmr.msra.gmra.mrb[4].mxu1 %vm171_vm0, %v504_v22  ;;  %v2213_v36 = vcombine.low %v306_v28, %v308_v34  ;;  %v51_v34 = vld [vmem:[%s10926_s3 + $0x28] sm:$0xff] }
 0x144   :  { %8189 = vmatprep.mubr.msk.f32.mxu1 %vm9376_vm1, %v9377_v51 }
 0x145   :  { %v2227_v42 = vrot.slane %v2213_v36, %v9487_v27 }
 0x147   :  { %v9588_v43 = vcombine.low %v2220_v38, %v2227_v42 }
 0x149   :  { %v9596_v45 = vpack.i.bf16 %v9592_v44, %v9588_v43 }
 0x216   :  { %v8186_v47 = vpop.f32.mrb[4].mxu1 }
 0x217   :  { %v588_v48 = vpop.f32.mrb[5].mxu1  ;;  %v9611_v50 = vadd.f32 %v8186_v47, %v9601_v46 }
 0x218   :  { %v9604_v49 = vadd.f32 %v9601_v46, %v588_v48 }
 0x21a   :  { %603 = vrot.lane.b32.xlu0 %v9604_v49, %s9378_s30  ;;  %599 = vrot.lane.b32.xlu1 %v9604_v49, %s9379_s12 }
 0x21e   :  { %607 = vrot.lane.b32.xlu0 %v9604_v49, %s9380_s13  ;;  %601 = vrot.lane.b32.xlu1 %v9611_v50, %s9379_s12 }
 0x222   :  { %611 = vrot.lane.b32.xlu0 %v9604_v49, %s9372_s0  ;;  %605 = vrot.lane.b32.xlu1 %v9611_v50, %s9378_s30 }
 0x226   :  { %609 = vrot.lane.b32.xlu1 %v9611_v50, %s9380_s13 }
 0x22a   :  { %688 = vrot.lane.b32.xlu1 %v9611_v50, %s9372_s0 }
 0x28c   :  { %v9625_v52 = vpop.permute.xlu0 %603  ;;  %v9627_v53 = vpop.permute.xlu1 %599 }
 0x28d   :  { %764 = vrot.lane.b32.xlu0 %v9627_v53, %s9372_s0 }
 0x290   :  { %v9631_v54 = vpop.permute.xlu0 %607  ;;  %v9633_v55 = vpop.permute.xlu1 %601 }
 0x291   :  { %916 = vrot.lane.b32.xlu0 %v9625_v52, %s9372_s0  ;;  %840 = vrot.lane.b32.xlu1 %v9633_v55, %s9372_s0 }
 0x294   :  { %v612_v56 = vpop.permute.xlu0 %611  ;;  %v9639_v57 = vpop.permute.xlu1 %605 }
 0x295   :  { %8188 = vmatpush3.xpose.msk.msra.mxu1 %vm613_vm2, %v612_v56  ;;  %1068 = vrot.lane.b32.xlu0 %v9631_v54, %s9372_s0  ;;  %v53_v56 = vld [vmem:[%s10926_s3 + $0x38] sm:$0xff] }
 0x296   :  { %992 = vrot.lane.b32.xlu1 %v9639_v57, %s9372_s0  ;;  %8192 = vmatprep.subr.mxu1 %v9377_v51 }
 0x298   :  { %8190 = vmatmul.mubr.msk.f32.vlgmr.msra.gmra.mrb[6].mxu1 %vm613_vm2, %v9604_v49  ;;  %v9649_v58 = vpop.permute.xlu1 %609 }
 0x299   :  { %8194 = vmatprep.mubr.msk.f32.mxu1 %vm9376_vm1, %v9377_v51 }
 0x29a   :  { %1144 = vrot.lane.b32.xlu1 %v9649_v58, %s9372_s0 }
 0x29c   :  { %v689_v61 = vpop.permute.xlu1 %688 }
 0x29d   :  { %8193 = vmatpush3.xpose.msk.msra.mxu1 %vm613_vm2, %v689_v61  ;;  %v52_v61 = vld [vmem:[%s10926_s3 + $0x30] sm:$0xff] }
 0x29e   :  { %8202 = vmatprep.subr.mxu1 %v9377_v51 }
 0x2a0   :  { %8195 = vmatmul.mubr.msk.f32.vlgmr.msra.gmra.mrb[8].mxu1 %vm613_vm2, %v9611_v50 }
 0x2a1   :  { %8204 = vmatprep.mubr.msk.f32.mxu1 %vm9376_vm1, %v9377_v51 }
 0x2ff   :  { %v765_v62 = vpop.permute.xlu0 %764 }
 0x300   :  { %8198 = vmatpush3.xpose.msk.msra.mxu0 %vm613_vm2, %v765_v62 }
 0x301   :  { %8207 = vmatprep.subr.mxu0 %v9377_v51 }
 0x303   :  { %8200 = vmatmul.mubr.msk.f32.vlgmr.msra.gmra.mrb[2].mxu0 %vm613_vm2, %v9627_v53  ;;  %v917_v1 = vpop.permute.xlu0 %916  ;;  %v841_v2 = vpop.permute.xlu1 %840 }
 0x304   :  { %8203 = vmatpush3.xpose.msk.msra.mxu1 %vm613_vm2, %v841_v2  ;;  %8208 = vmatpush3.xpose.msk.msra.mxu0 %vm613_vm2, %v917_v1 }
 0x305   :  { %8209 = vmatprep.mubr.msk.f32.mxu0 %vm9376_vm1, %v9377_v51  ;;  %8217 = vmatprep.subr.mxu0 %v9377_v51 }
 0x306   :  { %8212 = vmatprep.subr.mxu1 %v9377_v51 }
 0x307   :  { %8210 = vmatmul.mubr.msk.f32.vlgmr.msra.gmra.mrb[4].mxu0 %vm613_vm2, %v9625_v52  ;;  %v1069_v3 = vpop.permute.xlu0 %1068  ;;  %8205 = vmatmul.mubr.msk.f32.vlgmr.msra.gmra.mrb[10].mxu1 %vm613_vm2, %v9633_v55 }
 0x308   :  { %v993_v4 = vpop.permute.xlu1 %992  ;;  %8218 = vmatpush3.xpose.msk.msra.mxu0 %vm613_vm2, %v1069_v3  ;;  %8214 = vmatprep.mubr.msk.f32.mxu1 %vm9376_vm1, %v9377_v51 }
 0x309   :  { %8213 = vmatpush3.xpose.msk.msra.mxu1 %vm613_vm2, %v993_v4  ;;  %8219 = vmatprep.mubr.msk.f32.mxu0 %vm9376_vm1, %v9377_v51 }
 0x30a   :  { %8222 = vmatprep.subr.mxu1 %v9377_v51  ;;  %8227 = vmatprep.subr.mxu0 %v9377_v51 }
 0x30b   :  { %8220 = vmatmul.mubr.msk.f32.vlgmr.msra.gmra.mrb[6].mxu0 %vm613_vm2, %v9631_v54 }
 0x30c   :  { %8215 = vmatmul.mubr.msk.f32.vlgmr.msra.gmra.mrb[12].mxu1 %vm613_vm2, %v9639_v57  ;;  %v1145_v7 = vpop.permute.xlu1 %1144  ;;  %8229 = vmatprep.mubr.msk.f32.mxu0 %vm9376_vm1, %v9377_v51 }
 0x30d   :  { %8223 = vmatpush3.xpose.msk.msra.mxu1 %vm613_vm2, %v1145_v7  ;;  %8224 = vmatprep.mubr.msk.f32.mxu1 %vm9376_vm1, %v9377_v51 }
 0x30e   :  { %8232 = vmatprep.subr.mxu1 %v9377_v51 }
 0x310   :  { %8225 = vmatmul.mubr.msk.f32.vlgmr.msra.gmra.mrb[14].mxu1 %vm613_vm2, %v9649_v58 }
 0x311   :  { %8234 = vmatprep.mubr.msk.f32.mxu1 %vm9376_vm1, %v9377_v51 }
 0x36b   :  { %v684_v10 = vpop.f32.mrb[6].mxu1 }
 0x36c   :  { %v685_v11 = vadd.f32 %v684_v10, %v46_v8  ;;  %v8191_v13 = vpop.f32.mrb[7].mxu1 }
 0x36e   :  { %v1220_v14 = vsel %vm613_vm2, %v685_v11, -inf }
 0x36f   :  { %1221 = vmax.xlane.f32.xlu0 %v1220_v14 }
 0x373   :  { %v760_v17 = vpop.f32.mrb[8].mxu1 }
 0x374   :  { %v761_v18 = vadd.f32 %v760_v17, %v47_v15  ;;  %v8196_v19 = vpop.f32.mrb[9].mxu1 }
 0x376   :  { %v1223_v20 = vsel %vm613_vm2, %v761_v18, -inf }
 0x377   :  { %1224 = vmax.xlane.f32.xlu1 %v1223_v20 }
 0x3d6   :  { %v836_v21 = vpop.f32.mrb[2].mxu0 }
 0x3d7   :  { %v8201_v22 = vpop.f32.mrb[3].mxu0  ;;  %v837_v30 = vadd.f32 %v836_v21, %v48_v12 }
 0x3d9   :  { %v1226_v48 = vsel %vm613_vm2, %v837_v30, -inf }
 0x3da   :  { %v912_v25 = vpop.f32.mrb[10].mxu1  ;;  %v988_v16 = vpop.f32.mrb[4].mxu0 }
 0x3db   :  { %v913_v26 = vadd.f32 %v912_v25, %v49_v23  ;;  %v8206_v28 = vpop.f32.mrb[11].mxu1  ;;  %v8211_v29 = vpop.f32.mrb[5].mxu0  ;;  %v989_v47 = vadd.f32 %v988_v16, %v50_v35 }
 0x3dd   :  { %v1229_v32 = vsel %vm613_vm2, %v913_v26, -inf  ;;  %v1232_v7 = vsel %vm613_vm2, %v989_v47, -inf }
 0x3de   :  { %v1140_v36 = vpop.f32.mrb[6].mxu0  ;;  %1230 = vmax.xlane.f32.xlu0 %v1229_v32 }
 0x3df   :  { %v1064_v37 = vpop.f32.mrb[12].mxu1  ;;  %v8221_v38 = vpop.f32.mrb[7].mxu0  ;;  %v1141_v4 = vadd.f32 %v1140_v36, %v52_v61 }
 0x3e0   :  { %v1065_v41 = vadd.f32 %v1064_v37, %v51_v34  ;;  %v8216_v42 = vpop.f32.mrb[13].mxu1 }
 0x3e1   :  { %v1238_v10 = vsel %vm613_vm2, %v1141_v4, -inf }
 0x3e2   :  { %1227 = vmax.xlane.f32.xlu0 %v1226_v48  ;;  %v1235_v62 = vsel %vm613_vm2, %v1065_v41, -inf }
 0x3e3   :  { %1236 = vmax.xlane.f32.xlu1 %v1235_v62  ;;  %v1216_v1 = vpop.f32.mrb[14].mxu1 }
 0x3e4   :  { %v1217_v2 = vadd.f32 %v1216_v1, %v53_v56  ;;  %v8226_v3 = vpop.f32.mrb[15].mxu1 }
 0x3e6   :  { %1233 = vmax.xlane.f32.xlu0 %v1232_v7  ;;  %v1241_v8 = vsel %vm613_vm2, %v1217_v2, -inf }
 0x3e7   :  { %1242 = vmax.xlane.f32.xlu1 %v1241_v8 }
 0x3ea   :  { %1239 = vmax.xlane.f32.xlu0 %v1238_v10 }
 0x3f8   :  { %1384 = vrot.lane.b32.xlu1 %v9611_v50, %s9375_s7 }
 0x3fc   :  { %1460 = vrot.lane.b32.xlu1 %v9627_v53, %s9375_s7  ;;  %v1222_v13 = vpop.xlane.xlu0 %1221 }
 0x3fd   :  { %v1244_v14 = vsub.f32 %v685_v11, %v1222_v13 }
 0x3ff   :  { %v1252_v17 = vmul.f32 1.442695, %v1244_v14 }
 0x400   :  { %1536 = vrot.lane.b32.xlu1 %v9633_v55, %s9375_s7  ;;  %1308 = vrot.lane.b32.xlu0 %v9604_v49, %s9375_s7 }
 0x401   :  { %9180 = vpow2.f32 %v1252_v17 }
 0x404   :  { %1688 = vrot.lane.b32.xlu1 %v9639_v57, %s9375_s7  ;;  %1612 = vrot.lane.b32.xlu0 %v9625_v52, %s9375_s7  ;;  %v1225_v15 = vpop.xlane.xlu1 %1224 }
 0x405   :  { %v1245_v50 = vsub.f32 %v761_v18, %v1225_v15 }
 0x407   :  { %v1254_v19 = vmul.f32 1.442695, %v1245_v50 }
 0x409   :  { %9182 = vpow2.f32 %v1254_v19 }
 0x40b   :  { %v9741_v53 = vpop.eup %9180 }
 0x40c   :  { %v1268_v55 = vsel %vm613_vm2, %v9741_v53, 0.0 }
 0x413   :  { %v9745_v49 = vpop.eup %9182 }
 0x414   :  { %v1271_v57 = vsel %vm613_vm2, %v9745_v49, 0.0 }
 0x423   :  { %1269 = vadd.xlane.f32.xlu0 %v1268_v55 }
 0x428   :  { %1272 = vadd.xlane.f32.xlu1 %v1271_v57 }
 0x46b   :  { %v1231_v52 = vpop.xlane.xlu0 %1230 }
 0x46c   :  { %v1247_v11 = vsub.f32 %v913_v26, %v1231_v52 }
 0x46e   :  { %v1258_v20 = vmul.f32 1.442695, %v1247_v11 }
 0x46f   :  { %v1228_v21 = vpop.xlane.xlu0 %1227 }
 0x470   :  { %9184 = vpow2.f32 %v1258_v20  ;;  %v1246_v18 = vsub.f32 %v837_v30, %v1228_v21  ;;  %v1237_v22 = vpop.xlane.xlu1 %1236 }
 0x471   :  { %v1249_v23 = vsub.f32 %v1065_v41, %v1237_v22  ;;  %v8979_v22 = vpack.i.bf16 %v9557_v0, %v9552_v63 }
 0x472   :  { %v1256_v12 = vmul.f32 1.442695, %v1246_v18  ;;  %v8974_v18 = vpack.i.bf16 %v9541_v60, %v9536_v59 }
 0x473   :  { %v1262_v25 = vmul.f32 1.442695, %v1249_v23  ;;  %v1234_v16 = vpop.xlane.xlu0 %1233 }
 0x474   :  { %9186 = vpow2.f32 %v1256_v12  ;;  %v1248_v28 = vsub.f32 %v989_v47, %v1234_v16  ;;  %v1243_v29 = vpop.xlane.xlu1 %1242 }
 0x475   :  { %9188 = vpow2.f32 %v1262_v25  ;;  %v1251_v32 = vsub.f32 %v1217_v2, %v1243_v29 }
 0x476   :  { %v1260_v34 = vmul.f32 1.442695, %v1248_v28 }
 0x477   :  { %v1266_v35 = vmul.f32 1.442695, %v1251_v32  ;;  %v1240_v36 = vpop.xlane.xlu0 %1239 }
 0x478   :  { %9190 = vpow2.f32 %v1260_v34  ;;  %v1250_v37 = vsub.f32 %v1141_v4, %v1240_v36  ;;  %v1385_v26 = vpop.permute.xlu1 %1384 }
 0x479   :  { %9192 = vpow2.f32 %v1266_v35  ;;  %8233 = vmatpush3.msra.mxu1 %v1385_v26 }
 0x47a   :  { %v9185_v38 = vpop.eup %9184  ;;  %v1264_v30 = vmul.f32 1.442695, %v1250_v37  ;;  %8242 = vmatprep.subr.mxu1 %v9377_v51 }
 0x47b   :  { %v1309_v41 = vpop.permute.xlu0 %1308  ;;  %v1277_v42 = vsel %vm613_vm2, %v9185_v38, 0.0 }
 0x47c   :  { %9194 = vpow2.f32 %v1264_v30  ;;  %8228 = vmatpush3.msra.mxu0 %v1309_v41  ;;  %1278 = vadd.xlane.f32.xlu1 %v1277_v42  ;;  %v1461_v8 = vpop.permute.xlu1 %1460 }
 0x47d   :  { %8237 = vmatprep.subr.mxu0 %v9377_v51 }
 0x47e   :  { %v9187_v47 = vpop.eup %9186 }
 0x47f   :  { %v9189_v48 = vpop.eup %9188  ;;  %v1274_v56 = vsel %vm613_vm2, %v9187_v47, 0.0  ;;  %v1613_v13 = vpop.permute.xlu0 %1612 }
 0x480   :  { %1275 = vadd.xlane.f32.xlu0 %v1274_v56  ;;  %v1283_v61 = vsel %vm613_vm2, %v9189_v48, 0.0  ;;  %v1537_v10 = vpop.permute.xlu1 %1536 }
 0x481   :  { %1284 = vadd.xlane.f32.xlu1 %v1283_v61 }
 0x482   :  { %v9754_v62 = vpop.eup %9190 }
 0x483   :  { %v9756_v1 = vpop.eup %9192  ;;  %v1280_v2 = vsel %vm613_vm2, %v9754_v62, 0.0 }
 0x484   :  { %1281 = vadd.xlane.f32.xlu0 %v1280_v2  ;;  %v1289_v3 = vsel %vm613_vm2, %v9756_v1, 0.0  ;;  %v1689_v15 = vpop.permute.xlu1 %1688 }
 0x485   :  { %1290 = vadd.xlane.f32.xlu1 %v1289_v3 }
 0x486   :  { %v9762_v4 = vpop.eup %9194 }
 0x487   :  { %v1286_v7 = vsel %vm613_vm2, %v9762_v4, 0.0 }
 0x488   :  { %1287 = vadd.xlane.f32.xlu0 %v1286_v7 }
 0x496   :  { %1840 = vrot.lane.b32.xlu1 %v9649_v58, %s9375_s7 }
 0x49a   :  { %8980 = vrot.lane.b32.xlu1 %v8979_v22, %s9381_s28 }
 0x49e   :  { %1764 = vrot.lane.b32.xlu0 %v9631_v54, %s9375_s7 }
 0x4a2   :  { %8975 = vrot.lane.b32.xlu0 %v8974_v18, %s9381_s28  ;;  %v8739_v18 = vpack.c.bf16 %v9592_v44, %v9588_v43 }
 0x4b0   :  { %v1270_v14 = vpop.xlane.xlu0 %1269 }
 0x4b1   :  { %9196 = vrcp.f32 %v1270_v14 }
 0x4b5   :  { %v1273_v17 = vpop.xlane.xlu1 %1272 }
 0x4b6   :  { %9198 = vrcp.f32 %v1273_v17 }
 0x4bb   :  { %v9197_v50 = vpop.eup %9196 }
 0x4bc   :  { %v1300_v19 = vmul.f32 %v9197_v50, %v9741_v53 }
 0x4be   :  { %8230 = vmatmul.mubr.msk.f32.vlgmr.msra.gmra.mrb[8].mxu0 %vm613_vm2, %v1300_v19 }
 0x4bf   :  { %8238 = vmatpush3.msra.mxu0 %v1461_v8  ;;  %8239 = vmatprep.mubr.msk.f32.mxu0 %vm9376_vm1, %v9377_v51 }
 0x4c0   :  { %v9199_v58 = vpop.eup %9198  ;;  %8247 = vmatprep.subr.mxu0 %v9377_v51 }
 0x4c1   :  { %v1301_v54 = vmul.f32 %v9199_v58, %v9745_v49 }
 0x4c3   :  { %8235 = vmatmul.mubr.msk.f32.vlgmr.msra.gmra.mrb[16].mxu1 %vm613_vm2, %v1301_v54 }
 0x4c4   :  { %8243 = vmatpush3.msra.mxu1 %v1537_v10  ;;  %8244 = vmatprep.mubr.msk.f32.mxu1 %vm9376_vm1, %v9377_v51 }
 0x4c5   :  { %8252 = vmatprep.subr.mxu1 %v9377_v51 }
 0x509   :  { %v1279_v53 = vpop.xlane.xlu1 %1278 }
 0x50a   :  { %9200 = vrcp.f32 %v1279_v53 }
 0x50d   :  { %v1276_v55 = vpop.xlane.xlu0 %1275 }
 0x50e   :  { %9202 = vrcp.f32 %v1276_v55  ;;  %v1285_v57 = vpop.xlane.xlu1 %1284 }
 0x50f   :  { %9204 = vrcp.f32 %v1285_v57 }
 0x511   :  { %v1282_v52 = vpop.xlane.xlu0 %1281 }
 0x512   :  { %9206 = vrcp.f32 %v1282_v52  ;;  %v1291_v11 = vpop.xlane.xlu1 %1290 }
 0x513   :  { %9208 = vrcp.f32 %v1291_v11 }
 0x514   :  { %v9201_v20 = vpop.eup %9200 }
 0x515   :  { %v1288_v49 = vpop.xlane.xlu0 %1287  ;;  %v1303_v21 = vmul.f32 %v9201_v20, %v9185_v38 }
 0x516   :  { %9210 = vrcp.f32 %v1288_v49  ;;  %v1841_v60 = vpop.permute.xlu1 %1840 }
 0x517   :  { %8245 = vmatmul.mubr.msk.f32.vlgmr.msra.gmra.mrb[18].mxu1 %vm613_vm2, %v1303_v21 }
 0x518   :  { %v9203_v23 = vpop.eup %9202  ;;  %8253 = vmatpush3.msra.mxu1 %v1689_v15  ;;  %8254 = vmatprep.mubr.msk.f32.mxu1 %vm9376_vm1, %v9377_v51 }
 0x519   :  { %v9205_v12 = vpop.eup %9204  ;;  %8262 = vmatprep.subr.mxu1 %v9377_v51  ;;  %v1302_v25 = vmul.f32 %v9203_v23, %v9187_v47  ;;  %v1765_v29 = vpop.permute.xlu0 %1764 }
 0x51a   :  { %v1305_v16 = vmul.f32 %v9205_v12, %v9189_v48  ;;  %v8981_v42 = vpop.permute.xlu1 %8980 }
 0x51b   :  { %8240 = vmatmul.mubr.msk.f32.vlgmr.msra.gmra.mrb[10].mxu0 %vm613_vm2, %v1302_v25  ;;  %v8983_v47 = vunpack.i.h.bf16 %v8981_v42  ;;  %v8982_v48 = vunpack.i.l.bf16 %v8981_v42 }
 0x51c   :  { %v9207_v59 = vpop.eup %9206  ;;  %8248 = vmatpush3.msra.mxu0 %v1613_v13  ;;  %8255 = vmatmul.mubr.msk.f32.vlgmr.msra.gmra.mrb[20].mxu1 %vm613_vm2, %v1305_v16 }
 0x51d   :  { %v9209_v63 = vpop.eup %9208  ;;  %8263 = vmatpush3.msra.mxu1 %v1841_v60  ;;  %8249 = vmatprep.mubr.msk.f32.mxu0 %vm9376_vm1, %v9377_v51  ;;  %v1304_v0 = vmul.f32 %v9207_v59, %v9754_v62  ;;  %v8976_v38 = vpop.permute.xlu0 %8975  ;;  %v8726_v61 = vpack.c.bf16 %v8983_v47, %v8982_v48 }
 0x51e   :  { %8257 = vmatprep.subr.mxu0 %v9377_v51  ;;  %8264 = vmatprep.mubr.msk.f32.mxu1 %vm9376_vm1, %v9377_v51  ;;  %v1307_v28 = vmul.f32 %v9209_v63, %v9756_v1  ;;  %v8978_v30 = vunpack.i.h.bf16 %v8976_v38  ;;  %v8977_v41 = vunpack.i.l.bf16 %v8976_v38  ;;  %v262_v63 = vrot.slane %v9571_v24, 4 }
 0x51f   :  { %8250 = vmatmul.mubr.msk.f32.vlgmr.msra.gmra.mrb[12].mxu0 %vm613_vm2, %v1304_v0  ;;  %v263_v0 = vrot.slane %v9578_v31, 4 }
 0x520   :  { %v9211_v32 = vpop.eup %9210  ;;  %8258 = vmatpush3.msra.mxu0 %v1765_v29  ;;  %8265 = vmatmul.mubr.msk.f32.vlgmr.msra.gmra.mrb[22].mxu1 %vm613_vm2, %v1307_v28  ;;  %v8722_v56 = vpack.c.bf16 %v8978_v30, %v8977_v41 }
 0x521   :  { %8259 = vmatprep.mubr.msk.f32.mxu0 %vm9376_vm1, %v9377_v51  ;;  %v1306_v34 = vmul.f32 %v9211_v32, %v9762_v4 }
 0x522   :  { %8723 = vmatprep.subr.bf16.mxu0 %v8722_v56 }
 0x523   :  { %8260 = vmatmul.mubr.msk.f32.vlgmr.msra.gmra.mrb[14].mxu0 %vm613_vm2, %v1306_v34 }
 0x524   :  { %8725 = vmatpush3.bf16.msra.mxu0 %v8722_v56 }
 0x525   :  { %8727 = vmatprep.subr.bf16.mxu0 %v8726_v61 }
 0x528   :  { %8729 = vmatpush3.bf16.msra.mxu0 %v8726_v61 }
 0x529   :  { %8738 = vmatprep.subr.bf16.mxu0 %v9374_v33 }
 0x591   :  { %v1380_v35 = vpop.f32.mrb[8].mxu0 }
 0x592   :  { %v8231_v36 = vpop.f32.mrb[9].mxu0 }
 0x596   :  { %v1456_v37 = vpop.f32.mrb[16].mxu1 }
 0x597   :  { %v8236_v26 = vpop.f32.mrb[17].mxu1 }
 0x5ea   :  { %v1608_v62 = vpop.f32.mrb[18].mxu1 }
 0x5eb   :  { %1920 = vrot.lane.b32.xlu1 %v1608_v62, %s9382_s8  ;;  %v8246_v1 = vpop.f32.mrb[19].mxu1 }
 0x5ee   :  { %v1532_v2 = vpop.f32.mrb[10].mxu0 }
 0x5ef   :  { %v1760_v3 = vpop.f32.mrb[20].mxu1  ;;  %1918 = vrot.lane.b32.xlu0 %v1532_v2, %s9382_s8  ;;  %v8241_v4 = vpop.f32.mrb[11].mxu0 }
 0x5f0   :  { %1928 = vrot.lane.b32.xlu1 %v1760_v3, %s9383_s29  ;;  %v8256_v7 = vpop.f32.mrb[21].mxu1 }
 0x5f2   :  { %v1684_v8 = vpop.f32.mrb[12].mxu0 }
 0x5f3   :  { %v1912_v10 = vpop.f32.mrb[22].mxu1  ;;  %1926 = vrot.lane.b32.xlu0 %v1684_v8, %s9383_s29  ;;  %v8251_v13 = vpop.f32.mrb[13].mxu0 }
 0x5f4   :  { %1936 = vrot.lane.b32.xlu1 %v1912_v10, %s9384_s14  ;;  %v8266_v14 = vpop.f32.mrb[23].mxu1 }
 0x5f6   :  { %v1836_v15 = vpop.f32.mrb[14].mxu0 }
 0x5f7   :  { %1934 = vrot.lane.b32.xlu0 %v1836_v15, %s9384_s14  ;;  %v8261_v17 = vpop.f32.mrb[15].mxu0 }
 0x5f8   :  { %v9894_v17 = vld [vmem:[%s10928_s5 + $0x8] sm:$0xff] }
 0x5fb   :  { %1974 = vrot.lane.b32.xlu0 %v9601_v46, %s9381_s28 }
 0x65d   :  { %v1921_v50 = vpop.permute.xlu1 %1920 }
 0x65e   :  { %v1941_v57 = vsel %vm613_vm2, %v1456_v37, %v1921_v50  ;;  %v9899_v50 = vld [vmem:[%s10928_s5 + $0x18] sm:$0xff] }
 0x661   :  { %v1919_v19 = vpop.permute.xlu0 %1918 }
 0x662   :  { %v1929_v58 = vpop.permute.xlu1 %1928  ;;  %v1940_v53 = vsel %vm613_vm2, %v1380_v35, %v1919_v19  ;;  %v8730_v19 = vpack.c.bf16 %v9899_v50, %v9894_v17 }
 0x663   :  { %v1944_v20 = vsel %vm1942_vm3, %v1941_v57, %v1929_v58  ;;  %v9907_v58 = vld [vmem:[%s10928_s5 + $0x28] sm:$0xff] }
 0x664   :  { %8731 = vmatprep.subr.bf16.mxu1 %v8730_v19 }
 0x665   :  { %v1927_v54 = vpop.permute.xlu0 %1926  ;;  %8733 = vmatpush3.bf16.msra.mxu1 %v8730_v19 }
 0x666   :  { %v1937_v55 = vpop.permute.xlu1 %1936  ;;  %v1943_v52 = vsel %vm1942_vm3, %v1940_v53, %v1927_v54  ;;  %v9912_v54 = vld [vmem:[%s10928_s5 + $0x38] sm:$0xff] }
 0x667   :  { %v1947_v21 = vsel %vm1945_vm4, %v1944_v20, %v1937_v55  ;;  %v8734_v53 = vpack.c.bf16 %v9912_v54, %v9907_v58 }
 0x669   :  { %v1935_v11 = vpop.permute.xlu0 %1934  ;;  %8735 = vmatprep.subr.bf16.mxu1 %v8734_v53 }
 0x66a   :  { %v1946_v49 = vsel %vm1945_vm4, %v1943_v52, %v1935_v11  ;;  %8737 = vmatpush3.bf16.msra.mxu1 %v8734_v53  ;;  %v309_v11 = vcombine.high %v9578_v31, %v9578_v31 }
 0x66b   :  { %8275 = vmatprep.mubr.msk.f32.mxu0 %vm171_vm0, %v1946_v49  ;;  %8742 = vmatprep.subr.bf16.mxu1 %v9374_v33 }
 0x66c   :  { %8276 = vmatmul.mubr.msk.f32.vlgmr.msra.gmra.mrb[16].mxu0 %vm171_vm0, %v1947_v21 }
 0x66d   :  { %8741 = vmatpush3.bf16.xpose.msk.msra.mxu0 %vm9821_vm5, %v8739_v18  ;;  %8293 = vmatprep.mubr.msk.f32.mxu0 %vm9376_vm1, %v9377_v51  ;;  %v1975_v22 = vpop.permute.xlu0 %1974 }
 0x66e   :  { %8746 = vmatprep.subr.bf16.mxu0 %v9374_v33 }
 0x73f   :  { %v8277_v23 = vpop.f32.mrb[16].mxu0 }
 0x740   :  { %v2055_v12 = vadd.f32 %v8277_v23, %v1975_v22  ;;  %v2049_v25 = vpop.f32.mrb[17].mxu0 }
 0x741   :  { %v2050_v16 = vadd.f32 %v2049_v25, %v1975_v22 }
 0x742   :  { %v9836_v59 = vadd.f32 %v2055_v12, %v9459_v6  ;;  %v265_v6 = vrot.slane %v9585_v40, 4  ;;  %v324_v12 = vcombine.high %v9583_v39, %v9583_v39 }
 0x743   :  { %v9839_v43 = vadd.f32 %v2050_v16, %v9457_v5  ;;  %v264_v5 = vsel %vm261_vm6, %v262_v63, %v263_v0  ;;  %v323_v16 = vrot.slane %v309_v11, %v9487_v27 }
 0x744   :  { %v2065_v44 = vsel %vm171_vm0, %v9836_v59, 0.0  ;;  %v266_v28 = vsel %vm261_vm6, %v263_v0, %v265_v6 }
 0x745   :  { %2066 = vadd.xlane.f32.xlu0 %v2065_v44  ;;  %v2062_v60 = vsel %vm171_vm0, %v9839_v43, 0.0 }
 0x746   :  { %2063 = vadd.xlane.f32.xlu1 %v2062_v60 }
 0x757   :  { %2093 = vrot.lane.b32.xlu1 %v9468_v9, %s9381_s28 }
 0x75b   :  { %269 = vrot.lane.b32.xlu1 %v264_v5, %s9379_s12 }
 0x75f   :  { %271 = vrot.lane.b32.xlu1 %v266_v28, %s9379_s12 }
 0x763   :  { %274 = vrot.lane.b32.xlu1 %v9571_v24, %s9378_s30 }
 0x767   :  { %278 = vrot.lane.b32.xlu1 %v9585_v40, %s9378_s30 }
 0x76b   :  { %283 = vrot.lane.b32.xlu1 %v264_v5, %s9380_s13 }
 0x7d2   :  { %v2067_v9 = vpop.xlane.xlu0 %2066 }
 0x7d3   :  { %v2069_v29 = vmul.f32 0.03125, %v2067_v9  ;;  %v2064_v32 = vpop.xlane.xlu1 %2063 }
 0x7d4   :  { %v2068_v34 = vmul.f32 0.03125, %v2064_v32 }
 0x7d5   :  { %v9860_v35 = vsub.f32 %v9836_v59, %v2069_v29 }
 0x7d6   :  { %v9863_v36 = vsub.f32 %v9839_v43, %v2068_v34  ;;  %v325_v34 = vcombine.high %v323_v16, %v323_v16 }
 0x7d7   :  { %v9865_v37 = vpop.permute.xlu1 %2093  ;;  %v2073_v38 = vmul.f32 %v9860_v35, %v9860_v35 }
 0x7d8   :  { %v2072_v24 = vmul.f32 %v9863_v36, %v9863_v36 }
 0x7d9   :  { %v2077_v47 = vsel %vm171_vm0, %v2073_v38, 0.0 }
 0x7da   :  { %v2074_v26 = vsel %vm171_vm0, %v2072_v24, 0.0 }
 0x7db   :  { %2075 = vadd.xlane.f32.xlu0 %v2074_v26  ;;  %v270_v30 = vpop.permute.xlu1 %269 }
 0x7dc   :  { %v343_v41 = vcombine.high %v270_v30, %v270_v30  ;;  %v350_v22 = vrot.slane %v270_v30, %v9487_v27 }
 0x7de   :  { %v9873_v42 = vrot.slane %v343_v41, %v9487_v27 }
 0x7df   :  { %2078 = vadd.xlane.f32.xlu0 %v2077_v47  ;;  %v272_v48 = vpop.permute.xlu1 %271 }
 0x7e0   :  { %v359_v56 = vcombine.high %v9873_v42, %v9873_v42  ;;  %v360_v61 = vcombine.high %v272_v48, %v272_v48  ;;  %v367_v62 = vrot.slane %v272_v48, %v9487_v27 }
 0x7e2   :  { %v374_v1 = vrot.slane %v360_v61, %v9487_v27  ;;  %v375_v2 = vcombine.high %v367_v62, %v367_v62  ;;  %v2512_v3 = vcombine.low %v359_v56, %v367_v62 }
 0x7e3   :  { %v275_v55 = vpop.permute.xlu1 %274 }
 0x7e4   :  { %v376_v4 = vcombine.high %v374_v1, %v374_v1  ;;  %v2513_v7 = vcombine.low %v375_v2, %v374_v1  ;;  %v2520_v8 = vrot.slane %v2512_v3, %v9487_v27  ;;  %v377_v57 = vcombine.high %v275_v55, %v275_v55 }
 0x7e5   :  { %v384_v49 = vrot.slane %v275_v55, %v9487_v27  ;;  %v9939_v2 = vrot.slane %v9873_v42, %v9487_v27 }
 0x7e6   :  { %v2527_v10 = vrot.slane %v2513_v7, %v9487_v27  ;;  %v9885_v14 = vrot.slane %v376_v4, %v9487_v27  ;;  %v391_v52 = vrot.slane %v377_v57, %v9487_v27 }
 0x7e7   :  { %v279_v20 = vpop.permute.xlu1 %278  ;;  %v392_v44 = vcombine.high %v384_v49, %v384_v49 }
 0x7e8   :  { %v9882_v13 = vcombine.low %v2520_v8, %v2527_v10  ;;  %v393_v23 = vcombine.high %v391_v52, %v391_v52 }
 0x7e9   :  { %v2612_v9 = vcombine.low %v384_v49, %v392_v44 }
 0x7ea   :  { %v9889_v15 = vpack.i.bf16 %v9885_v14, %v9882_v13  ;;  %v2613_v6 = vcombine.low %v391_v52, %v393_v23 }
 0x7eb   :  { %v2620_v48 = vrot.slane %v2612_v9, %v9487_v27 }
 0x7ec   :  { %v2627_v26 = vrot.slane %v2613_v6, %v9487_v27 }
 0x7ee   :  { %v9943_v8 = vcombine.low %v2620_v48, %v2627_v26 }
 0x7f5   :  { %267 = vrot.lane.b32.xlu0 %v262_v63, %s9379_s12 }
 0x7f9   :  { %276 = vrot.lane.b32.xlu0 %v9578_v31, %s9378_s30  ;;  %v358_v31 = vcombine.high %v350_v22, %v350_v22 }
 0x7fb   :  { %v2413_v24 = vcombine.low %v350_v22, %v358_v31 }
 0x7fd   :  { %281 = vrot.lane.b32.xlu0 %v262_v63, %s9380_s13  ;;  %v284_v63 = vpop.permute.xlu1 %283  ;;  %v2427_v7 = vrot.slane %v2413_v24, %v9487_v27 }
 0x7fe   :  { %v435_v29 = vrot.slane %v284_v63, %v9487_v27  ;;  %v428_v41 = vcombine.high %v284_v63, %v284_v63 }
 0x800   :  { %v443_v56 = vcombine.high %v435_v29, %v435_v29  ;;  %v442_v55 = vrot.slane %v428_v41, %v9487_v27 }
 0x801   :  { %285 = vrot.lane.b32.xlu0 %v266_v28, %s9380_s13  ;;  %v2312_v28 = vcombine.low %v324_v12, %v323_v16 }
 0x802   :  { %v2813_v11 = vcombine.low %v435_v29, %v443_v56 }
 0x803   :  { %v2320_v47 = vrot.slane %v2312_v28, %v9487_v27 }
 0x868   :  { %v2076_v21 = vpop.xlane.xlu0 %2075 }
 0x869   :  { %v2080_v18 = vmul.f32 0.03125, %v2076_v21 }
 0x86b   :  { %v2082_v25 = vadd.f32 1e-05, %v2080_v18 }
 0x86c   :  { %v2079_v60 = vpop.xlane.xlu0 %2078 }
 0x86d   :  { %9212 = vrsqrt.f32 %v2082_v25  ;;  %v2081_v0 = vmul.f32 0.03125, %v2079_v60 }
 0x86f   :  { %v2083_v5 = vadd.f32 1e-05, %v2081_v0  ;;  %v9959_v0 = vld [vmem:[%s10932_s9 + $0x3] ss:$0 sm:$0xff] }
 0x870   :  { %v268_v32 = vpop.permute.xlu0 %267 }
 0x871   :  { %9214 = vrsqrt.f32 %v2083_v5  ;;  %v288_v39 = vsel %vm261_vm6, %v9585_v40, %v268_v32  ;;  %v444_v5 = vcombine.high %v442_v55, %v442_v55 }
 0x872   :  { %v326_v38 = vcombine.high %v288_v39, %v288_v39  ;;  %v333_v30 = vrot.slane %v288_v39, %v9487_v27 }
 0x874   :  { %v340_v61 = vrot.slane %v326_v38, %v9487_v27  ;;  %v2313_v62 = vcombine.low %v325_v34, %v333_v30  ;;  %v277_v1 = vpop.permute.xlu0 %276  ;;  %v341_v40 = vcombine.high %v333_v30, %v333_v30 }
 0x875   :  { %v394_v3 = vcombine.high %v277_v1, %v277_v1  ;;  %v401_v4 = vrot.slane %v277_v1, %v9487_v27 }
 0x876   :  { %v342_v10 = vcombine.high %v340_v61, %v340_v61  ;;  %v2327_v19 = vrot.slane %v2313_v62, %v9487_v27  ;;  %v2335_v23 = vrot.slane %v341_v40, %v9487_v27 }
 0x877   :  { %v9213_v53 = vpop.eup %9212  ;;  %v408_v57 = vrot.slane %v394_v3, %v9487_v27  ;;  %v409_v52 = vcombine.high %v401_v4, %v401_v4  ;;  %v9949_v42 = vrot.slane %v401_v4, %v9487_v27 }
 0x878   :  { %v2328_v49 = vcombine.low %v2320_v47, %v2327_v19  ;;  %v2412_v21 = vcombine.low %v340_v61, %v342_v10  ;;  %v282_v18 = vpop.permute.xlu0 %281  ;;  %v2086_v22 = vmul.f32 %v9213_v53, %v9863_v36  ;;  %v9963_v36 = vrot.slane %v442_v55, %v9487_v27 }
 0x879   :  { %v2712_v12 = vcombine.low %v409_v52, %v408_v57  ;;  %v410_v25 = vcombine.high %v408_v57, %v408_v57  ;;  %v289_v16 = vsel %vm261_vm6, %v279_v20, %v282_v18  ;;  %v9969_v20 = vpack.i.bf16 %v9949_v42, %v9943_v8 }
 0x87a   :  { %v2420_v44 = vrot.slane %v2412_v21, %v9487_v27  ;;  %v411_v60 = vcombine.high %v289_v16, %v289_v16  ;;  %v418_v63 = vrot.slane %v289_v16, %v9487_v27  ;;  %v2096_v31 = vmul.f32 %v9865_v37, %v2086_v22 }
 0x87b   :  { %v9215_v6 = vpop.eup %9214  ;;  %v9965_v28 = vpack.i.bf16 %v2335_v23, %v2328_v49  ;;  %v2720_v41 = vrot.slane %v2712_v12, %v9487_v27  ;;  %v8743_v57 = vpack.c.bf16 %v2335_v23, %v2328_v49  ;;  %v10006_v12 = vld [vmem:[%s10932_s9 + $0x1] ss:$0 sm:$0xff] }
 0x87c   :  { %v2428_v9 = vcombine.low %v2420_v44, %v2427_v7  ;;  %v425_v29 = vrot.slane %v411_v60, %v9487_v27  ;;  %v426_v32 = vcombine.high %v418_v63, %v418_v63  ;;  %v2713_v34 = vcombine.low %v410_v25, %v418_v63  ;;  %v286_v39 = vpop.permute.xlu0 %285 }
 0x87d   :  { %v445_v24 = vcombine.high %v286_v39, %v286_v39  ;;  %v452_v26 = vrot.slane %v286_v39, %v9487_v27  ;;  %v2087_v38 = vmul.f32 %v9215_v6, %v9860_v35  ;;  %v2104_v30 = vadd.f32 %v9959_v0, %v2096_v31 }
 0x87e   :  { %v427_v47 = vcombine.high %v425_v29, %v425_v29  ;;  %v2727_v48 = vrot.slane %v2713_v34, %v9487_v27  ;;  %v2735_v56 = vrot.slane %v426_v32, %v9487_v27  ;;  %v9982_v35 = vpack.i.bf16 %v9939_v2, %v2428_v9  ;;  %v54_v34 = vld [vmem:[%s10927_s4] sm:$0xff] }
 0x87f   :  { %v459_v61 = vrot.slane %v445_v24, %v9487_v27  ;;  %v460_v62 = vcombine.high %v452_v26, %v452_v26  ;;  %v2912_v1 = vcombine.low %v444_v5, %v452_v26  ;;  %v2097_v40 = vmul.f32 %v9865_v37, %v2087_v38  ;;  %8286 = vmatprep.mubr.msk.f32.mxu1 %vm171_vm0, %v2104_v30 }
 0x880   :  { %v2728_v3 = vcombine.low %v2720_v41, %v2727_v48  ;;  %v2812_v4 = vcombine.low %v425_v29, %v427_v47  ;;  %v2827_v7 = vrot.slane %v2813_v11, %v9487_v27  ;;  %v8747_v63 = vpack.c.bf16 %v9939_v2, %v2428_v9  ;;  %v55_v29 = vld [vmem:[%s10927_s4 + $0x8] sm:$0xff]  ;;  %v56_v48 = vld [vmem:[%s10927_s4 + $0x10] sm:$0xff] }
 0x881   :  { %v461_v10 = vcombine.high %v459_v61, %v459_v61  ;;  %v2913_v19 = vcombine.low %v460_v62, %v459_v61  ;;  %v2105_v53 = vadd.f32 %v9959_v0, %v2097_v40  ;;  %v2920_v37 = vrot.slane %v2912_v1, %v9487_v27  ;;  %v57_v61 = vld [vmem:[%s10927_s4 + $0x18] sm:$0xff] }
 0x882   :  { %v2820_v55 = vrot.slane %v2812_v4, %v9487_v27  ;;  %v9987_v52 = vpack.i.bf16 %v2735_v56, %v2728_v3  ;;  %v8755_v31 = vpack.c.bf16 %v9949_v42, %v9943_v8 }
 0x883   :  { %v2927_v21 = vrot.slane %v2913_v19, %v9487_v27  ;;  %8287 = vmatmul.mubr.msk.f32.vlgmr.msra.gmra.mrb[24].mxu1 %vm171_vm0, %v2105_v53  ;;  %v2935_v22 = vrot.slane %v461_v10, %v9487_v27  ;;  %v8751_v27 = vpack.c.bf16 %v9885_v14, %v9882_v13  ;;  %v8759_v14 = vpack.c.bf16 %v2735_v56, %v2728_v3  ;;  %v59_v10 = vld [vmem:[%s10927_s4 + $0x28] sm:$0xff]  ;;  %v58_v19 = vld [vmem:[%s10927_s4 + $0x20] sm:$0xff] }
 0x884   :  { %v2828_v18 = vcombine.low %v2820_v55, %v2827_v7  ;;  %8745 = vmatpush3.bf16.xpose.msk.msra.mxu1 %vm9821_vm5, %v8743_v57  ;;  %8300 = vmatprep.mubr.msk.f32.mxu1 %vm9376_vm1, %v9377_v51 }
 0x885   :  { %v2928_v11 = vcombine.low %v2920_v37, %v2927_v21  ;;  %8750 = vmatprep.subr.bf16.mxu1 %v9374_v33 }
 0x886   :  { %v9999_v49 = vpack.i.bf16 %v9963_v36, %v2828_v18  ;;  %v8763_v5 = vpack.c.bf16 %v9963_v36, %v2828_v18 }
 0x887   :  { %v10001_v23 = vpack.i.bf16 %v2935_v22, %v2928_v11  ;;  %v8767_v8 = vpack.c.bf16 %v2935_v22, %v2928_v11 }
 0x956   :  { %v8288_v25 = vpop.f32.mrb[24].mxu1 }
 0x957   :  { %v2195_v16 = vadd.f32 %v8288_v25, %v10006_v12  ;;  %v2189_v44 = vpop.f32.mrb[25].mxu1 }
 0x958   :  { %v2190_v60 = vadd.f32 %v10006_v12, %v2189_v44  ;;  %v60_v44 = vld [vmem:[%s10927_s4 + $0x30] sm:$0xff] }
 0x959   :  { %2202 = vrot.lane.b32.xlu0 %v2195_v16, %s9379_s12  ;;  %8301 = vmatmul.mubr.msk.f32.vlgmr.msra.gmra.mrb[26].mxu1 %vm613_vm2, %v2195_v16 }
 0x95a   :  { %8753 = vmatpush3.bf16.xpose.msk.msra.mxu1 %vm9821_vm5, %v8751_v27  ;;  %2200 = vrot.lane.b32.xlu1 %v2190_v60, %s9379_s12 }
 0x95b   :  { %8294 = vmatmul.mubr.msk.f32.vlgmr.msra.gmra.mrb[18].mxu0 %vm613_vm2, %v2190_v60  ;;  %8314 = vmatprep.mubr.msk.f32.mxu1 %vm9376_vm1, %v9377_v51 }
 0x95c   :  { %8749 = vmatpush3.bf16.xpose.msk.msra.mxu0 %vm9821_vm5, %v8747_v63  ;;  %8758 = vmatprep.subr.bf16.mxu1 %v9374_v33 }
 0x95d   :  { %2206 = vrot.lane.b32.xlu0 %v2195_v16, %s9378_s30  ;;  %8307 = vmatprep.mubr.msk.f32.mxu0 %vm9376_vm1, %v9377_v51 }
 0x95e   :  { %2204 = vrot.lane.b32.xlu1 %v2190_v60, %s9378_s30  ;;  %8754 = vmatprep.subr.bf16.mxu0 %v9374_v33 }
 0x961   :  { %2210 = vrot.lane.b32.xlu0 %v2195_v16, %s9380_s13  ;;  %v61_v16 = vld [vmem:[%s10927_s4 + $0x38] sm:$0xff] }
 0x962   :  { %2208 = vrot.lane.b32.xlu1 %v2190_v60, %s9380_s13 }
 0x9cb   :  { %v2203_v13 = vpop.permute.xlu0 %2202 }
 0x9cc   :  { %8315 = vmatmul.mubr.msk.f32.vlgmr.msra.gmra.mrb[28].mxu1 %vm613_vm2, %v2203_v13  ;;  %v2201_v2 = vpop.permute.xlu1 %2200 }
 0x9cd   :  { %8761 = vmatpush3.bf16.xpose.msk.msra.mxu1 %vm9821_vm5, %v8759_v14  ;;  %8308 = vmatmul.mubr.msk.f32.vlgmr.msra.gmra.mrb[20].mxu0 %vm613_vm2, %v2201_v2 }
 0x9ce   :  { %8757 = vmatpush3.bf16.xpose.msk.msra.mxu0 %vm9821_vm5, %v8755_v31  ;;  %8328 = vmatprep.mubr.msk.f32.mxu1 %vm9376_vm1, %v9377_v51 }
 0x9cf   :  { %8321 = vmatprep.mubr.msk.f32.mxu0 %vm9376_vm1, %v9377_v51  ;;  %8766 = vmatprep.subr.bf16.mxu1 %v9374_v33  ;;  %v2207_v6 = vpop.permute.xlu0 %2206 }
 0x9d0   :  { %8762 = vmatprep.subr.bf16.mxu0 %v9374_v33  ;;  %v2205_v42 = vpop.permute.xlu1 %2204 }
 0x9d3   :  { %v2211_v9 = vpop.permute.xlu0 %2210 }
 0x9d4   :  { %8329 = vmatmul.mubr.msk.f32.vlgmr.msra.gmra.mrb[30].mxu1 %vm613_vm2, %v2207_v6  ;;  %v2209_v36 = vpop.permute.xlu1 %2208 }
 0x9d5   :  { %8322 = vmatmul.mubr.msk.f32.vlgmr.msra.gmra.mrb[22].mxu0 %vm613_vm2, %v2205_v42  ;;  %8769 = vmatpush3.bf16.xpose.msk.msra.mxu1 %vm9821_vm5, %v8767_v8 }
 0x9d6   :  { %8765 = vmatpush3.bf16.xpose.msk.msra.mxu0 %vm9821_vm5, %v8763_v5  ;;  %8342 = vmatprep.mubr.msk.f32.mxu1 %vm9376_vm1, %v9377_v51 }
 0x9d7   :  { %8335 = vmatprep.mubr.msk.f32.mxu0 %vm9376_vm1, %v9377_v51  ;;  %8774 = vmatprep.subr.bf16.mxu1 %v9374_v33 }
 0x9d8   :  { %8770 = vmatprep.subr.bf16.mxu0 %v9374_v33 }
 0x9dc   :  { %8343 = vmatmul.mubr.msk.f32.vlgmr.msra.gmra.mrb[32].mxu1 %vm613_vm2, %v2211_v9 }
 0x9dd   :  { %8336 = vmatmul.mubr.msk.f32.vlgmr.msra.gmra.mrb[24].mxu0 %vm613_vm2, %v2209_v36  ;;  %8356 = vmatprep.mubr.msk.f32.mxu1 %vm9376_vm1, %v9377_v51 }
 0x9de   :  { %8349 = vmatprep.mubr.msk.f32.mxu0 %vm9376_vm1, %v9377_v51 }
 0xa2c   :  { %v2408_v32 = vpop.f32.mrb[26].mxu1 }
 0xa2d   :  { %v2409_v39 = vadd.f32 %v2408_v32, %v55_v29  ;;  %v8302_v24 = vpop.f32.mrb[27].mxu1 }
 0xa2e   :  { %v2308_v26 = vpop.f32.mrb[18].mxu0 }
 0xa2f   :  { %v2309_v38 = vadd.f32 %v2308_v26, %v54_v34  ;;  %v8295_v30 = vpop.f32.mrb[19].mxu0  ;;  %v3016_v41 = vsel %vm3012_vm7, %v2409_v39, -inf }
 0xa30   :  { %3017 = vmax.xlane.f32.xlu0 %v3016_v41 }
 0xa31   :  { %v3013_v47 = vsel %vm3012_vm7, %v2309_v38, -inf }
 0xa32   :  { %3014 = vmax.xlane.f32.xlu1 %v3013_v47 }
 0xa9f   :  { %v2608_v56 = vpop.f32.mrb[28].mxu1 }
 0xaa0   :  { %v2508_v62 = vpop.f32.mrb[20].mxu0  ;;  %v8316_v1 = vpop.f32.mrb[29].mxu1  ;;  %v2609_v4 = vadd.f32 %v2608_v56, %v57_v61 }
 0xaa1   :  { %v2509_v40 = vadd.f32 %v2508_v62, %v56_v48  ;;  %v8309_v3 = vpop.f32.mrb[21].mxu0 }
 0xaa2   :  { %v3022_v55 = vsel %vm3012_vm7, %v2609_v4, -inf }
 0xaa3   :  { %v3019_v7 = vsel %vm3012_vm7, %v2509_v40, -inf }
 0xaa4   :  { %3020 = vmax.xlane.f32.xlu0 %v3019_v7 }
 0xaa7   :  { %v2808_v53 = vpop.f32.mrb[30].mxu1 }
 0xaa8   :  { %v2809_v57 = vadd.f32 %v2808_v53, %v59_v10  ;;  %v2708_v37 = vpop.f32.mrb[22].mxu0  ;;  %v8330_v21 = vpop.f32.mrb[31].mxu1  ;;  %3023 = vmax.xlane.f32.xlu0 %v3022_v55 }
 0xaa9   :  { %v2709_v18 = vadd.f32 %v2708_v37, %v58_v19  ;;  %v8323_v11 = vpop.f32.mrb[23].mxu0 }
 0xaaa   :  { %v3028_v25 = vsel %vm3012_vm7, %v2809_v57, -inf }
 0xaab   :  { %v3025_v22 = vsel %vm3012_vm7, %v2709_v18, -inf }
 0xaac   :  { %3026 = vmax.xlane.f32.xlu1 %v3025_v22  ;;  %3029 = vmax.xlane.f32.xlu0 %v3028_v25 }
 0xaaf   :  { %v3008_v60 = vpop.f32.mrb[32].mxu1 }
 0xab0   :  { %v3009_v27 = vadd.f32 %v3008_v60, %v61_v16  ;;  %v2908_v63 = vpop.f32.mrb[24].mxu0  ;;  %v8344_v13 = vpop.f32.mrb[33].mxu1 }
 0xab1   :  { %v2909_v14 = vadd.f32 %v2908_v63, %v60_v44  ;;  %v8337_v2 = vpop.f32.mrb[25].mxu0 }
 0xab2   :  { %v3034_v31 = vsel %vm3012_vm7, %v3009_v27, -inf }
 0xab3   :  { %3035 = vmax.xlane.f32.xlu0 %v3034_v31  ;;  %v3031_v6 = vsel %vm3012_vm7, %v2909_v14, -inf }
 0xab4   :  { %3032 = vmax.xlane.f32.xlu1 %v3031_v6 }
 0xabd   :  { %v3018_v8 = vpop.xlane.xlu0 %3017 }
 0xabe   :  { %v3038_v42 = vsub.f32 %v2409_v39, %v3018_v8 }
 0xabf   :  { %v3015_v9 = vpop.xlane.xlu1 %3014 }
 0xac0   :  { %v3047_v5 = vmul.f32 1.442695, %v3038_v42  ;;  %v3037_v36 = vsub.f32 %v2309_v38, %v3015_v9 }
 0xac2   :  { %9216 = vpow2.f32 %v3047_v5  ;;  %v3045_v29 = vmul.f32 1.442695, %v3037_v36 }
 0xac4   :  { %9218 = vpow2.f32 %v3045_v29 }
 0xac5   :  { %8985 = vrot.lane.b32.xlu1 %v9596_v45, %s9372_s0 }
 0xac9   :  { %8990 = vrot.lane.b32.xlu0 %v9965_v28, %s9372_s0  ;;  %8995 = vrot.lane.b32.xlu1 %v9982_v35, %s9372_s0 }
 0xacc   :  { %v10108_v32 = vpop.eup %9216 }
 0xacd   :  { %9010 = vrot.lane.b32.xlu0 %v9987_v52, %s9372_s0  ;;  %9000 = vrot.lane.b32.xlu1 %v9889_v15, %s9372_s0  ;;  %v3064_v34 = vsel %vm3012_vm7, %v10108_v32, 0.0 }
 0xace   :  { %v10112_v24 = vpop.eup %9218 }
 0xacf   :  { %v3061_v26 = vsel %vm3012_vm7, %v10112_v24, 0.0 }
 0xad1   :  { %9005 = vrot.lane.b32.xlu1 %v9969_v20, %s9372_s0 }
 0xaec   :  { %3065 = vadd.xlane.f32.xlu0 %v3064_v34 }
 0xaf5   :  { %3062 = vadd.xlane.f32.xlu1 %v3061_v26 }
 0xb31   :  { %v3021_v30 = vpop.xlane.xlu0 %3020 }
 0xb32   :  { %v3039_v39 = vsub.f32 %v2509_v40, %v3021_v30 }
 0xb34   :  { %v3049_v41 = vmul.f32 1.442695, %v3039_v39 }
 0xb35   :  { %v3024_v47 = vpop.xlane.xlu0 %3023 }
 0xb36   :  { %9220 = vpow2.f32 %v3049_v41  ;;  %v3040_v38 = vsub.f32 %v2609_v4, %v3024_v47 }
 0xb38   :  { %v3051_v48 = vmul.f32 1.442695, %v3040_v38 }
 0xb39   :  { %v3027_v56 = vpop.xlane.xlu1 %3026  ;;  %v3030_v61 = vpop.xlane.xlu0 %3029 }
 0xb3a   :  { %9222 = vpow2.f32 %v3051_v48  ;;  %v3041_v62 = vsub.f32 %v2709_v18, %v3027_v56  ;;  %v3042_v1 = vsub.f32 %v2809_v57, %v3030_v61 }
 0xb3c   :  { %v3053_v3 = vmul.f32 1.442695, %v3041_v62  ;;  %v3055_v7 = vmul.f32 1.442695, %v3042_v1 }
 0xb3e   :  { %9224 = vpow2.f32 %v3053_v3 }
 0xb3f   :  { %9226 = vpow2.f32 %v3055_v7 }
 0xb40   :  { %v10116_v10 = vpop.eup %9220  ;;  %v3036_v19 = vpop.xlane.xlu0 %3035 }
 0xb41   :  { %v3044_v53 = vsub.f32 %v3009_v27, %v3036_v19  ;;  %v3033_v55 = vpop.xlane.xlu1 %3032  ;;  %v3067_v40 = vsel %vm3012_vm7, %v10116_v10, 0.0 }
 0xb42   :  { %v3043_v37 = vsub.f32 %v2909_v14, %v3033_v55  ;;  %3068 = vadd.xlane.f32.xlu1 %v3067_v40 }
 0xb43   :  { %v3059_v4 = vmul.f32 1.442695, %v3044_v53 }
 0xb44   :  { %v10120_v21 = vpop.eup %9222  ;;  %v3057_v18 = vmul.f32 1.442695, %v3043_v37  ;;  %v8991_v57 = vpop.permute.xlu0 %8990 }
 0xb45   :  { %9228 = vpow2.f32 %v3059_v4  ;;  %v8993_v11 = vunpack.i.h.bf16 %v8991_v57  ;;  %v8992_v22 = vunpack.i.l.bf16 %v8991_v57  ;;  %v8986_v25 = vpop.permute.xlu1 %8985  ;;  %v3070_v16 = vsel %vm3012_vm7, %v10120_v21, 0.0 }
 0xb46   :  { %9230 = vpow2.f32 %v3057_v18  ;;  %v8988_v44 = vunpack.i.h.bf16 %v8986_v25  ;;  %v8987_v60 = vunpack.i.l.bf16 %v8986_v25  ;;  %3071 = vadd.xlane.f32.xlu0 %v3070_v16 }
 0xb47   :  { %v8775_v63 = vpack.c.bf16 %v8993_v11, %v8992_v22 }
 0xb48   :  { %v10128_v13 = vpop.eup %9224  ;;  %v8771_v14 = vpack.c.bf16 %v8988_v44, %v8987_v60  ;;  %v9011_v29 = vpop.permute.xlu0 %9010 }
 0xb49   :  { %v10130_v2 = vpop.eup %9226  ;;  %8777 = vmatpush3.bf16.msk.msra.mxu1 %vm10124_vm10, %v8775_v63  ;;  %v3073_v31 = vsel %vm3012_vm7, %v10128_v13, 0.0  ;;  %v8996_v36 = vpop.permute.xlu1 %8995  ;;  %v9013_v18 = vunpack.i.h.bf16 %v9011_v29  ;;  %v9012_v57 = vunpack.i.l.bf16 %v9011_v29 }
 0xb4a   :  { %3074 = vadd.xlane.f32.xlu1 %v3073_v31  ;;  %8773 = vmatpush3.bf16.msk.msra.mxu0 %vm10124_vm10, %v8771_v14  ;;  %v3076_v6 = vsel %vm3012_vm7, %v10130_v2, 0.0  ;;  %v8998_v61 = vunpack.i.h.bf16 %v8996_v36  ;;  %v8997_v62 = vunpack.i.l.bf16 %v8996_v36 }
 0xb4b   :  { %3077 = vadd.xlane.f32.xlu0 %v3076_v6  ;;  %8782 = vmatprep.subr.bf16.mxu1 %v9374_v33 }
 0xb4c   :  { %8778 = vmatprep.subr.bf16.mxu0 %v9374_v33  ;;  %v8779_v7 = vpack.c.bf16 %v8998_v61, %v8997_v62 }
 0xb4d   :  { %v9001_v34 = vpop.permute.xlu1 %9000 }
 0xb4e   :  { %v9003_v39 = vunpack.i.h.bf16 %v9001_v34  ;;  %v9002_v41 = vunpack.i.l.bf16 %v9001_v34  ;;  %v10186_v34 = vpack.i.bf16 %v9899_v50, %v9894_v17 }
 0xb4f   :  { %v10142_v8 = vpop.eup %9228 }
 0xb50   :  { %v10144_v42 = vpop.eup %9230  ;;  %v3082_v5 = vsel %vm3012_vm7, %v10142_v8, 0.0  ;;  %v8783_v56 = vpack.c.bf16 %v9003_v39, %v9002_v41  ;;  %v9039_v39 = vpack.i.bf16 %v9912_v54, %v9907_v58 }
 0xb51   :  { %3083 = vadd.xlane.f32.xlu0 %v3082_v5  ;;  %v3079_v9 = vsel %vm3012_vm7, %v10144_v42, 0.0  ;;  %v9006_v30 = vpop.permute.xlu1 %9005 }
 0xb52   :  { %3080 = vadd.xlane.f32.xlu1 %v3079_v9  ;;  %v9008_v55 = vunpack.i.h.bf16 %v9006_v30  ;;  %v9007_v40 = vunpack.i.l.bf16 %v9006_v30 }
 0xb54   :  { %v8787_v11 = vpack.c.bf16 %v9008_v55, %v9007_v40 }
 0xb63   :  { %9015 = vrot.lane.b32.xlu1 %v9999_v49, %s9372_s0 }
 0xb67   :  { %9020 = vrot.lane.b32.xlu0 %v10001_v23, %s9372_s0  ;;  %9025 = vrot.lane.b32.xlu1 %v10186_v34, %s9372_s0 }
 0xb6b   :  { %9030 = vrot.lane.b32.xlu0 %v9039_v39, %s9372_s0 }
 0xb79   :  { %v3066_v26 = vpop.xlane.xlu0 %3065 }
 0xb7a   :  { %9232 = vrcp.f32 %v3066_v26 }
 0xb82   :  { %v3063_v47 = vpop.xlane.xlu1 %3062 }
 0xb83   :  { %9234 = vrcp.f32 %v3063_v47 }
 0xb84   :  { %v9233_v38 = vpop.eup %9232 }
 0xb85   :  { %v3094_v48 = vmul.f32 %v9233_v38, %v10108_v32 }
 0xb87   :  { %8357 = vmatmul.mubr.msk.f32.vlgmr.msra.gmra.mrb[34].mxu1 %vm3012_vm7, %v3094_v48 }
 0xb88   :  { %8785 = vmatpush3.bf16.msk.msra.mxu1 %vm10124_vm10, %v8783_v56  ;;  %8370 = vmatprep.mubr.msk.f32.mxu1 %vm9376_vm1, %v9377_v51 }
 0xb89   :  { %8790 = vmatprep.subr.bf16.mxu1 %v9374_v33 }
 0xb8d   :  { %v9235_v1 = vpop.eup %9234 }
 0xb8e   :  { %v3093_v3 = vmul.f32 %v9235_v1, %v10112_v24 }
 0xb90   :  { %8350 = vmatmul.mubr.msk.f32.vlgmr.msra.gmra.mrb[26].mxu0 %vm3012_vm7, %v3093_v3 }
 0xb91   :  { %8781 = vmatpush3.bf16.msk.msra.mxu0 %vm10124_vm10, %v8779_v7  ;;  %8363 = vmatprep.mubr.msk.f32.mxu0 %vm9376_vm1, %v9377_v51 }
 0xb92   :  { %8786 = vmatprep.subr.bf16.mxu0 %v9374_v33 }
 0xbcf   :  { %v3069_v32 = vpop.xlane.xlu1 %3068 }
 0xbd0   :  { %9236 = vrcp.f32 %v3069_v32 }
 0xbd3   :  { %v3072_v19 = vpop.xlane.xlu0 %3071 }
 0xbd4   :  { %9238 = vrcp.f32 %v3072_v19 }
 0xbd7   :  { %v3075_v53 = vpop.xlane.xlu1 %3074 }
 0xbd8   :  { %9240 = vrcp.f32 %v3075_v53  ;;  %v3078_v24 = vpop.xlane.xlu0 %3077 }
 0xbd9   :  { %9242 = vrcp.f32 %v3078_v24 }
 0xbda   :  { %v9237_v37 = vpop.eup %9236 }
 0xbdb   :  { %v3095_v4 = vmul.f32 %v9237_v37, %v10116_v10  ;;  %v8791_v10 = vpack.c.bf16 %v9013_v18, %v9012_v57 }
 0xbdd   :  { %8364 = vmatmul.mubr.msk.f32.vlgmr.msra.gmra.mrb[28].mxu0 %vm3012_vm7, %v3095_v4 }
 0xbde   :  { %v9239_v22 = vpop.eup %9238  ;;  %v3084_v25 = vpop.xlane.xlu0 %3083  ;;  %8789 = vmatpush3.bf16.msk.msra.mxu0 %vm10124_vm10, %v8787_v11  ;;  %8377 = vmatprep.mubr.msk.f32.mxu0 %vm9376_vm1, %v9377_v51 }
 0xbdf   :  { %9244 = vrcp.f32 %v3084_v25  ;;  %v3081_v16 = vpop.xlane.xlu1 %3080  ;;  %v3096_v44 = vmul.f32 %v9239_v22, %v10120_v21  ;;  %8794 = vmatprep.subr.bf16.mxu0 %v9374_v33 }
 0xbe0   :  { %9246 = vrcp.f32 %v3081_v16 }
 0xbe1   :  { %8371 = vmatmul.mubr.msk.f32.vlgmr.msra.gmra.mrb[36].mxu1 %vm3012_vm7, %v3096_v44 }
 0xbe2   :  { %v9241_v60 = vpop.eup %9240  ;;  %v9021_v63 = vpop.permute.xlu0 %9020  ;;  %8793 = vmatpush3.bf16.msk.msra.mxu1 %vm10124_vm10, %v8791_v10  ;;  %8384 = vmatprep.mubr.msk.f32.mxu1 %vm9376_vm1, %v9377_v51 }
 0xbe3   :  { %v9243_v14 = vpop.eup %9242  ;;  %v9023_v31 = vunpack.i.h.bf16 %v9021_v63  ;;  %v9022_v6 = vunpack.i.l.bf16 %v9021_v63  ;;  %v9016_v5 = vpop.permute.xlu1 %9015  ;;  %v3097_v21 = vmul.f32 %v9241_v60, %v10128_v13  ;;  %8798 = vmatprep.subr.bf16.mxu1 %v9374_v33 }
 0xbe4   :  { %v9018_v9 = vunpack.i.h.bf16 %v9016_v5  ;;  %v9017_v36 = vunpack.i.l.bf16 %v9016_v5  ;;  %v3098_v29 = vmul.f32 %v9243_v14, %v10130_v2 }
 0xbe5   :  { %v8799_v26 = vpack.c.bf16 %v9023_v31, %v9022_v6  ;;  %8378 = vmatmul.mubr.msk.f32.vlgmr.msra.gmra.mrb[30].mxu0 %vm3012_vm7, %v3097_v21 }
 0xbe6   :  { %v8795_v30 = vpack.c.bf16 %v9018_v9, %v9017_v36  ;;  %8385 = vmatmul.mubr.msk.f32.vlgmr.msra.gmra.mrb[38].mxu1 %vm3012_vm7, %v3098_v29  ;;  %8391 = vmatprep.mubr.msk.f32.mxu0 %vm9376_vm1, %v9377_v51  ;;  %v9031_v1 = vpop.permute.xlu0 %9030 }
 0xbe7   :  { %8801 = vmatpush3.bf16.msk.msra.mxu1 %vm10124_vm10, %v8799_v26  ;;  %8398 = vmatprep.mubr.msk.f32.mxu1 %vm9376_vm1, %v9377_v51  ;;  %v9026_v56 = vpop.permute.xlu1 %9025  ;;  %v9032_v3 = vunpack.i.l.bf16 %v9031_v1 }
 0xbe8   :  { %8797 = vmatpush3.bf16.msk.msra.mxu0 %vm10124_vm10, %v8795_v30  ;;  %v9028_v61 = vunpack.i.h.bf16 %v9026_v56  ;;  %v9027_v62 = vunpack.i.l.bf16 %v9026_v56 }
 0xbe9   :  { %v9245_v17 = vpop.eup %9244 }
 0xbea   :  { %v9247_v50 = vpop.eup %9246  ;;  %v3100_v13 = vmul.f32 %v9245_v17, %v10142_v8  ;;  %v9033_v8 = vunpack.i.h.bf16 %v9031_v1  ;;  %v4026_v1 = vld [vmem:[%s10929_s6 + $0x10] sm:$0xff] }
 0xbeb   :  { %v3099_v2 = vmul.f32 %v9247_v50, %v10144_v42  ;;  %v8802_v42 = vpack.c.bf16 %v9028_v61, %v9027_v62  ;;  %v4025_v62 = vld [vmem:[%s10929_s6 + $0x8] sm:$0xff] }
 0xbec   :  { %8399 = vmatmul.mubr.msk.f32.vlgmr.msra.gmra.mrb[40].mxu1 %vm3012_vm7, %v3100_v13  ;;  %v8806_v7 = vpack.c.bf16 %v9033_v8, %v9032_v3 }
 0xbed   :  { %8392 = vmatmul.mubr.msk.f32.vlgmr.msra.gmra.mrb[32].mxu0 %vm3012_vm7, %v3099_v2  ;;  %8803 = vmatprep.subr.bf16.mxu0 %v8802_v42 }
 0xbee   :  { %8805 = vmatpush3.bf16.msra.mxu0 %v8802_v42  ;;  %v4029_v42 = vld [vmem:[%s10929_s6 + $0x28] sm:$0xff] }
 0xbef   :  { %8807 = vmatprep.subr.bf16.mxu0 %v8806_v7 }
 0xbf2   :  { %8809 = vmatpush3.bf16.msra.mxu0 %v8806_v7 }
 0xc5a   :  { %v3258_v41 = vpop.f32.mrb[34].mxu1 }
 0xc5b   :  { %v8358_v47 = vpop.f32.mrb[35].mxu1 }
 0xc63   :  { %v3178_v38 = vpop.f32.mrb[26].mxu0 }
 0xc64   :  { %v8351_v48 = vpop.f32.mrb[27].mxu0 }
 0xcb0   :  { %v3338_v32 = vpop.f32.mrb[28].mxu0 }
 0xcb1   :  { %3744 = vrot.lane.b32.xlu1 %v3338_v32, %s9382_s8  ;;  %v8365_v58 = vpop.f32.mrb[29].mxu0 }
 0xcb4   :  { %v3418_v54 = vpop.f32.mrb[36].mxu1 }
 0xcb5   :  { %3746 = vrot.lane.b32.xlu0 %v3418_v54, %s9382_s8  ;;  %v8372_v19 = vpop.f32.mrb[37].mxu1 }
 0xcb8   :  { %v3498_v53 = vpop.f32.mrb[30].mxu0 }
 0xcb9   :  { %v3578_v55 = vpop.f32.mrb[38].mxu1  ;;  %3752 = vrot.lane.b32.xlu1 %v3498_v53, %s9383_s29  ;;  %v8379_v40 = vpop.f32.mrb[31].mxu0 }
 0xcba   :  { %3754 = vrot.lane.b32.xlu0 %v3578_v55, %s9383_s29  ;;  %v8386_v24 = vpop.f32.mrb[39].mxu1 }
 0xcbf   :  { %v3738_v37 = vpop.f32.mrb[40].mxu1 }
 0xcc0   :  { %3762 = vrot.lane.b32.xlu0 %v3738_v37, %s9384_s14  ;;  %v3658_v4 = vpop.f32.mrb[32].mxu0  ;;  %v8400_v18 = vpop.f32.mrb[41].mxu1 }
 0xcc1   :  { %3760 = vrot.lane.b32.xlu1 %v3658_v4, %s9384_s14  ;;  %v8393_v57 = vpop.f32.mrb[33].mxu0 }
 0xcc5   :  { %3798 = vrot.lane.b32.xlu1 %v10006_v12, %s9372_s0 }
 0xd23   :  { %v3745_v22 = vpop.permute.xlu1 %3744 }
 0xd24   :  { %v3766_v44 = vsel %vm613_vm2, %v3178_v38, %v3745_v22 }
 0xd27   :  { %v3747_v11 = vpop.permute.xlu0 %3746 }
 0xd28   :  { %v3767_v60 = vsel %vm613_vm2, %v3258_v41, %v3747_v11 }
 0xd2b   :  { %v3753_v16 = vpop.permute.xlu1 %3752 }
 0xd2c   :  { %v3755_v25 = vpop.permute.xlu0 %3754  ;;  %v3768_v63 = vsel %vm1942_vm3, %v3766_v44, %v3753_v16 }
 0xd2d   :  { %v3769_v31 = vsel %vm1942_vm3, %v3767_v60, %v3755_v25 }
 0xd32   :  { %v3763_v10 = vpop.permute.xlu0 %3762 }
 0xd33   :  { %v3761_v14 = vpop.permute.xlu1 %3760  ;;  %v3771_v5 = vsel %vm1945_vm4, %v3769_v31, %v3763_v10 }
 0xd34   :  { %v3770_v6 = vsel %vm1945_vm4, %v3768_v63, %v3761_v14 }
 0xd35   :  { %8409 = vmatprep.mubr.msk.f32.mxu0 %vm171_vm0, %v3770_v6 }
 0xd36   :  { %8410 = vmatmul.mubr.msk.f32.vlgmr.msra.gmra.mrb[34].mxu0 %vm171_vm0, %v3771_v5 }
 0xd37   :  { %v3799_v21 = vpop.permute.xlu1 %3798 }
 0xe09   :  { %v8411_v9 = vpop.f32.mrb[34].mxu0 }
 0xe0a   :  { %v3879_v36 = vadd.f32 %v8411_v9, %v3799_v21  ;;  %v3873_v29 = vpop.f32.mrb[35].mxu0  ;;  %v4031_v9 = vld [vmem:[%s10929_s6 + $0x38] sm:$0xff] }
 0xe0b   :  { %v3874_v26 = vadd.f32 %v3873_v29, %v3799_v21  ;;  %v4030_v21 = vld [vmem:[%s10929_s6 + $0x30] sm:$0xff] }
 0xe0c   :  { %v10224_v30 = vadd.f32 %v3879_v36, %v9836_v59  ;;  %v8830_v36 = vpack.c.bf16 %v4031_v9, %v4030_v21  ;;  %v10335_v21 = vld [vmem:[%s10932_s9 + $0x4] ss:$0 sm:$0xff] }
 0xe0d   :  { %v10227_v17 = vadd.f32 %v3874_v26, %v9839_v43 }
 0xe0e   :  { %v3888_v50 = vsel %vm171_vm0, %v10224_v30, 0.0 }
 0xe0f   :  { %3889 = vadd.xlane.f32.xlu1 %v3888_v50  ;;  %v3885_v13 = vsel %vm171_vm0, %v10227_v17, 0.0 }
 0xe10   :  { %3886 = vadd.xlane.f32.xlu0 %v3885_v13 }
 0xe20   :  { %9040 = vrot.lane.b32.xlu1 %v9039_v39, %s9375_s7 }
 0xe24   :  { %3916 = vrot.lane.b32.xlu1 %v9959_v0, %s9372_s0 }
 0xe28   :  { %3921 = vrot.lane.b32.xlu1 %v9959_v0, %s9375_s7  ;;  %v4024_v0 = vld [vmem:[%s10929_s6] sm:$0xff] }
 0xe29   :  { %v8818_v8 = vpack.c.bf16 %v4025_v62, %v4024_v0 }
 0xe2b   :  { %8819 = vmatprep.subr.bf16.mxu0 %v8818_v8 }
 0xe2c   :  { %8821 = vmatpush3.bf16.msra.mxu0 %v8818_v8 }
 0xe9c   :  { %v3890_v59 = vpop.xlane.xlu1 %3889 }
 0xe9d   :  { %v3892_v2 = vmul.f32 0.03125, %v3890_v59  ;;  %v3887_v43 = vpop.xlane.xlu0 %3886 }
 0xe9e   :  { %v3891_v41 = vmul.f32 0.03125, %v3887_v43 }
 0xe9f   :  { %v3894_v47 = vsub.f32 %v10224_v30, %v3892_v2 }
 0xea0   :  { %v3893_v38 = vsub.f32 %v10227_v17, %v3891_v41  ;;  %v9041_v55 = vpop.permute.xlu1 %9040  ;;  %v7797_v41 = vld [vmem:[%s10932_s9 + $0x2] ss:$0 sm:$0xff] }
 0xea1   :  { %v3896_v48 = vmul.f32 %v3894_v47, %v3894_v47  ;;  %v9043_v24 = vunpack.i.h.bf16 %v9041_v55  ;;  %v9042_v37 = vunpack.i.l.bf16 %v9041_v55  ;;  %v10318_v55 = vld [vmem:[%s10928_s5 + $0x60] sm:$0xff] }
 0xea2   :  { %v3895_v61 = vmul.f32 %v3893_v38, %v3893_v38 }
 0xea3   :  { %v3900_v56 = vsel %vm171_vm0, %v3896_v48, 0.0  ;;  %v8814_v22 = vpack.c.bf16 %v9043_v24, %v9042_v37 }
 0xea4   :  { %3901 = vadd.xlane.f32.xlu0 %v3900_v56  ;;  %v3897_v39 = vsel %vm171_vm0, %v3895_v61, 0.0  ;;  %v3917_v16 = vpop.permute.xlu1 %3916 }
 0xea8   :  { %3898 = vadd.xlane.f32.xlu0 %v3897_v39  ;;  %v3922_v31 = vpop.permute.xlu1 %3921 }
 0xebe   :  { %9035 = vrot.lane.b32.xlu0 %v10186_v34, %s9375_s7  ;;  %v4027_v34 = vld [vmem:[%s10929_s6 + $0x18] sm:$0xff] }
 0xebf   :  { %v8822_v3 = vpack.c.bf16 %v4027_v34, %v4026_v1  ;;  %v10293_v1 = vld [vmem:[%s10932_s9 + $0x6] ss:$0 sm:$0xff] }
 0xec1   :  { %8823 = vmatprep.subr.bf16.mxu0 %v8822_v3 }
 0xec2   :  { %3938 = vrot.lane.b32.xlu0 %v10006_v12, %s9375_s7  ;;  %v4028_v12 = vld [vmem:[%s10929_s6 + $0x20] sm:$0xff]  ;;  %8825 = vmatpush3.bf16.msra.mxu0 %v8822_v3 }
 0xec3   :  { %v8826_v7 = vpack.c.bf16 %v4029_v42, %v4028_v12 }
 0xec5   :  { %8827 = vmatprep.subr.bf16.mxu0 %v8826_v7 }
 0xec6   :  { %8829 = vmatpush3.bf16.msra.mxu0 %v8826_v7 }
 0xec7   :  { %8831 = vmatprep.subr.bf16.mxu0 %v8830_v36 }
 0xeca   :  { %8833 = vmatpush3.bf16.msra.mxu0 %v8830_v36 }
 0xecb   :  { %8463 = vmatprep.subr.mxu0 %v9377_v51 }
 0xf31   :  { %v3902_v32 = vpop.xlane.xlu0 %3901 }
 0xf32   :  { %v3904_v58 = vmul.f32 0.03125, %v3902_v32 }
 0xf34   :  { %v3906_v54 = vadd.f32 1e-05, %v3904_v58 }
 0xf35   :  { %v3899_v19 = vpop.xlane.xlu0 %3898 }
 0xf36   :  { %9248 = vrsqrt.f32 %v3906_v54  ;;  %v3903_v53 = vmul.f32 0.03125, %v3899_v19  ;;  %v10306_v54 = vld [vmem:[%s10928_s5 + $0x40] sm:$0xff]  ;;  %v10311_v19 = vld [vmem:[%s10928_s5 + $0x50] sm:$0xff] }
 0xf38   :  { %v3905_v40 = vadd.f32 1e-05, %v3903_v53  ;;  %v8834_v53 = vpack.c.bf16 %v10311_v19, %v10306_v54 }
 0xf39   :  { %v9036_v4 = vpop.permute.xlu0 %9035 }
 0xf3a   :  { %9250 = vrsqrt.f32 %v3905_v40  ;;  %v9038_v18 = vunpack.i.h.bf16 %v9036_v4  ;;  %v9037_v57 = vunpack.i.l.bf16 %v9036_v4  ;;  %v10323_v40 = vld [vmem:[%s10928_s5 + $0x70] sm:$0xff] }
 0xf3b   :  { %v8838_v24 = vpack.c.bf16 %v10323_v40, %v10318_v55 }
 0xf3c   :  { %v8810_v11 = vpack.c.bf16 %v9038_v18, %v9037_v57 }
 0xf3d   :  { %v3939_v29 = vpop.permute.xlu0 %3938 }
 0xf3e   :  { %8811 = vmatprep.subr.bf16.mxu1 %v8810_v11 }
 0xf3f   :  { %8813 = vmatpush3.bf16.msra.mxu1 %v8810_v11 }
 0xf40   :  { %v9249_v25 = vpop.eup %9248  ;;  %8815 = vmatprep.subr.bf16.mxu1 %v8814_v22 }
 0xf41   :  { %v3910_v44 = vmul.f32 %v9249_v25, %v3894_v47 }
 0xf43   :  { %8817 = vmatpush3.bf16.msra.mxu1 %v8814_v22  ;;  %v3920_v63 = vmul.f32 %v3917_v16, %v3910_v44 }
 0xf44   :  { %v9251_v10 = vpop.eup %9250  ;;  %8835 = vmatprep.subr.bf16.mxu1 %v8834_v53 }
 0xf45   :  { %v3909_v60 = vmul.f32 %v9251_v10, %v3893_v38  ;;  %v3925_v5 = vadd.f32 %v3922_v31, %v3920_v63 }
 0xf47   :  { %v3919_v14 = vmul.f32 %v3917_v16, %v3909_v60 }
 0xf49   :  { %v3924_v6 = vadd.f32 %v3922_v31, %v3919_v14 }
 0xf4b   :  { %8420 = vmatprep.mubr.msk.f32.mxu1 %vm171_vm0, %v3924_v6 }
 0xf4c   :  { %8421 = vmatmul.mubr.msk.f32.vlgmr.msra.gmra.mrb[42].mxu1 %vm171_vm0, %v3925_v5 }
 0xf4d   :  { %8837 = vmatpush3.bf16.msra.mxu1 %v8834_v53 }
 0xf4e   :  { %8839 = vmatprep.subr.bf16.mxu1 %v8838_v24 }
 0xf51   :  { %8841 = vmatpush3.bf16.msra.mxu1 %v8838_v24 }
 0xf52   :  { %8453 = vmatprep.subr.mxu1 %v9377_v51 }
0x101f   :  { %v8422_v26 = vpop.f32.mrb[42].mxu1 }
0x1020   :  { %v4019_v50 = vadd.f32 %v8422_v26, %v3939_v29  ;;  %v4013_v13 = vpop.f32.mrb[43].mxu1 }
0x1021   :  { %v4014_v59 = vadd.f32 %v4013_v13, %v3939_v29 }
0x1022   :  { %v4023_v43 = vmax.f32 %v4019_v50, 0.0 }
0x1023   :  { %v4022_v2 = vmax.f32 %v4014_v59, 0.0 }
0x1025   :  { %8439 = vmatprep.mubr.msk.f32.mxu0 %vm4039_vm11, %v4022_v2 }
0x1026   :  { %8440 = vmatmul.mubr.msk.f32.vlgmr.msra.gmra.mrb[36].mxu0 %vm4039_vm11, %v4023_v43 }
0x1027   :  { %8465 = vmatprep.mubr.msk.f32.mxu0 %vm9376_vm1, %v9377_v51 }
0x10f9   :  { %v8441_v47 = vpop.f32.mrb[36].mxu0 }
0x10fa   :  { %v4118_v38 = vadd.f32 %v8441_v47, %v7797_v41  ;;  %v4112_v48 = vpop.f32.mrb[37].mxu0 }
0x10fb   :  { %v4113_v56 = vadd.f32 %v7797_v41, %v4112_v48 }
0x10fc   :  { %v10281_v61 = vadd.f32 %v4118_v38, %v10224_v30 }
0x10fd   :  { %v10284_v39 = vadd.f32 %v4113_v56, %v10227_v17 }
0x10fe   :  { %v4128_v0 = vsel %vm171_vm0, %v10281_v61, 0.0 }
0x10ff   :  { %4129 = vadd.xlane.f32.xlu0 %v4128_v0  ;;  %v4125_v62 = vsel %vm171_vm0, %v10284_v39, 0.0 }
0x1100   :  { %4126 = vadd.xlane.f32.xlu1 %v4125_v62 }
0x1111   :  { %4156 = vrot.lane.b32.xlu1 %v10293_v1, %s9372_s0 }
0x118c   :  { %v4130_v30 = vpop.xlane.xlu0 %4129 }
0x118d   :  { %v4132_v8 = vmul.f32 0.03125, %v4130_v30  ;;  %v4127_v17 = vpop.xlane.xlu1 %4126 }
0x118e   :  { %v4131_v34 = vmul.f32 0.03125, %v4127_v17 }
0x118f   :  { %v4134_v3 = vsub.f32 %v10281_v61, %v4132_v8 }
0x1190   :  { %v4133_v12 = vsub.f32 %v10284_v39, %v4131_v34  ;;  %v9332_v34 = vld [vmem:[%s10926_s3] sm:$0xff] }
0x1191   :  { %v4136_v32 = vmul.f32 %v4134_v3, %v4134_v3  ;;  %v4157_v16 = vpop.permute.xlu1 %4156 }
0x1192   :  { %v4135_v42 = vmul.f32 %v4133_v12, %v4133_v12 }
0x1193   :  { %v4140_v58 = vsel %vm171_vm0, %v4136_v32, 0.0  ;;  %v9333_v32 = vld [vmem:[%s10926_s3 + $0x8] sm:$0xff] }
0x1194   :  { %v4137_v7 = vsel %vm171_vm0, %v4135_v42, 0.0 }
0x1195   :  { %4138 = vadd.xlane.f32.xlu0 %v4137_v7 }
0x1199   :  { %4141 = vadd.xlane.f32.xlu0 %v4140_v58 }
0x11af   :  { %4161 = vrot.lane.b32.xlu0 %v10293_v1, %s9375_s7 }
0x1222   :  { %v4139_v37 = vpop.xlane.xlu0 %4138 }
0x1223   :  { %v4143_v4 = vmul.f32 0.03125, %v4139_v37 }
0x1225   :  { %v4145_v18 = vadd.f32 1e-05, %v4143_v4 }
0x1226   :  { %v4142_v57 = vpop.xlane.xlu0 %4141 }
0x1227   :  { %9252 = vrsqrt.f32 %v4145_v18  ;;  %v4144_v11 = vmul.f32 0.03125, %v4142_v57 }
0x1229   :  { %v4146_v22 = vadd.f32 1e-05, %v4144_v11  ;;  %v9334_v11 = vld [vmem:[%s10926_s3 + $0x10] sm:$0xff] }
0x122a   :  { %v4162_v10 = vpop.permute.xlu0 %4161 }
0x122b   :  { %9254 = vrsqrt.f32 %v4146_v22 }
0x1231   :  { %v9253_v25 = vpop.eup %9252 }
0x1232   :  { %v4149_v44 = vmul.f32 %v9253_v25, %v4133_v12 }
0x1234   :  { %v4159_v60 = vmul.f32 %v4157_v16, %v4149_v44  ;;  %v9335_v44 = vld [vmem:[%s10926_s3 + $0x18] sm:$0xff] }
0x1235   :  { %v9255_v63 = vpop.eup %9254 }
0x1236   :  { %v4150_v14 = vmul.f32 %v9255_v63, %v4134_v3  ;;  %v4164_v31 = vadd.f32 %v4162_v10, %v4159_v60 }
0x1238   :  { %v4160_v6 = vmul.f32 %v4157_v16, %v4150_v14  ;;  %8450 = vmatprep.mubr.msk.f32.mxu1 %vm171_vm0, %v4164_v31  ;;  %v9336_v31 = vld [vmem:[%s10926_s3 + $0x20] sm:$0xff] }
0x123a   :  { %v4165_v5 = vadd.f32 %v4162_v10, %v4160_v6 }
0x123c   :  { %8451 = vmatmul.mubr.msk.f32.vlgmr.msra.gmra.mrb[44].mxu1 %vm171_vm0, %v4165_v5 }
0x123d   :  { %8455 = vmatprep.mubr.msk.f32.mxu1 %vm9376_vm1, %v9377_v51 }
0x130f   :  { %v8452_v9 = vpop.f32.mrb[44].mxu1 }
0x1310   :  { %v10338_v36 = vadd.f32 %v8452_v9, %v10335_v21  ;;  %v4250_v29 = vpop.f32.mrb[45].mxu1 }
0x1311   :  { %v10345_v26 = vadd.f32 %v10335_v21, %v4250_v29  ;;  %v9337_v29 = vld [vmem:[%s10926_s3 + $0x28] sm:$0xff] }
0x1312   :  { %4267 = vrot.lane.b32.xlu0 %v10338_v36, %s9378_s30  ;;  %4263 = vrot.lane.b32.xlu1 %v10338_v36, %s9379_s12 }
0x1316   :  { %4271 = vrot.lane.b32.xlu0 %v10338_v36, %s9380_s13  ;;  %4261 = vrot.lane.b32.xlu1 %v10345_v26, %s9379_s12 }
0x131a   :  { %4349 = vrot.lane.b32.xlu0 %v10338_v36, %s9372_s0  ;;  %4265 = vrot.lane.b32.xlu1 %v10345_v26, %s9378_s30 }
0x131e   :  { %4269 = vrot.lane.b32.xlu1 %v10345_v26, %s9380_s13 }
0x1322   :  { %4273 = vrot.lane.b32.xlu1 %v10345_v26, %s9372_s0 }
0x1384   :  { %v10359_v50 = vpop.permute.xlu1 %4263  ;;  %v10363_v13 = vpop.permute.xlu0 %4267 }
0x1385   :  { %4501 = vrot.lane.b32.xlu0 %v10359_v50, %s9372_s0 }
0x1388   :  { %v10365_v59 = vpop.permute.xlu1 %4261  ;;  %v10371_v2 = vpop.permute.xlu0 %4271 }
0x1389   :  { %4653 = vrot.lane.b32.xlu0 %v10363_v13, %s9372_s0  ;;  %4425 = vrot.lane.b32.xlu1 %v10365_v59, %s9372_s0 }
0x138c   :  { %v10373_v43 = vpop.permute.xlu1 %4265  ;;  %v4350_v38 = vpop.permute.xlu0 %4349 }
0x138d   :  { %4805 = vrot.lane.b32.xlu0 %v10371_v2, %s9372_s0  ;;  %4577 = vrot.lane.b32.xlu1 %v10373_v43, %s9372_s0 }
0x1390   :  { %v10379_v41 = vpop.permute.xlu1 %4269 }
0x1391   :  { %4729 = vrot.lane.b32.xlu1 %v10379_v41, %s9372_s0 }
0x1394   :  { %v4274_v47 = vpop.permute.xlu1 %4273 }
0x1395   :  { %8454 = vmatpush3.xpose.msk.msra.mxu1 %vm613_vm2, %v4274_v47 }
0x1396   :  { %8458 = vmatprep.subr.mxu1 %v9377_v51 }
0x1398   :  { %8456 = vmatmul.mubr.msk.f32.vlgmr.msra.gmra.mrb[46].mxu1 %vm613_vm2, %v10345_v26 }
0x1399   :  { %8459 = vmatpush3.xpose.msk.msra.mxu1 %vm613_vm2, %v4350_v38  ;;  %8460 = vmatprep.mubr.msk.f32.mxu1 %vm9376_vm1, %v9377_v51 }
0x139a   :  { %8468 = vmatprep.subr.mxu1 %v9377_v51 }
0x139c   :  { %8461 = vmatmul.mubr.msk.f32.vlgmr.msra.gmra.mrb[48].mxu1 %vm613_vm2, %v10338_v36 }
0x139d   :  { %8470 = vmatprep.mubr.msk.f32.mxu1 %vm9376_vm1, %v9377_v51 }
0x13f7   :  { %v4502_v48 = vpop.permute.xlu0 %4501 }
0x13f8   :  { %8469 = vmatpush3.xpose.msk.msra.mxu1 %vm613_vm2, %v4502_v48 }
0x13f9   :  { %8478 = vmatprep.subr.mxu1 %v9377_v51 }
0x13fb   :  { %v4654_v56 = vpop.permute.xlu0 %4653  ;;  %8471 = vmatmul.mubr.msk.f32.vlgmr.msra.gmra.mrb[50].mxu1 %vm613_vm2, %v10359_v50  ;;  %v4426_v0 = vpop.permute.xlu1 %4425 }
0x13fc   :  { %8464 = vmatpush3.xpose.msk.msra.mxu0 %vm613_vm2, %v4426_v0  ;;  %8479 = vmatpush3.xpose.msk.msra.mxu1 %vm613_vm2, %v4654_v56  ;;  %v9338_v0 = vld [vmem:[%s10926_s3 + $0x30] sm:$0xff] }
0x13fd   :  { %8480 = vmatprep.mubr.msk.f32.mxu1 %vm9376_vm1, %v9377_v51  ;;  %8473 = vmatprep.subr.mxu0 %v9377_v51 }
0x13fe   :  { %8488 = vmatprep.subr.mxu1 %v9377_v51 }
0x13ff   :  { %v4806_v62 = vpop.permute.xlu0 %4805  ;;  %8466 = vmatmul.mubr.msk.f32.vlgmr.msra.gmra.mrb[38].mxu0 %vm613_vm2, %v10365_v59  ;;  %8481 = vmatmul.mubr.msk.f32.vlgmr.msra.gmra.mrb[52].mxu1 %vm613_vm2, %v10363_v13  ;;  %v4578_v30 = vpop.permute.xlu1 %4577 }
0x1400   :  { %8474 = vmatpush3.xpose.msk.msra.mxu0 %vm613_vm2, %v4578_v30  ;;  %8489 = vmatpush3.xpose.msk.msra.mxu1 %vm613_vm2, %v4806_v62 }
0x1401   :  { %8475 = vmatprep.mubr.msk.f32.mxu0 %vm9376_vm1, %v9377_v51  ;;  %8490 = vmatprep.mubr.msk.f32.mxu1 %vm9376_vm1, %v9377_v51 }
0x1402   :  { %8483 = vmatprep.subr.mxu0 %v9377_v51  ;;  %8498 = vmatprep.subr.mxu1 %v9377_v51 }
0x1403   :  { %8476 = vmatmul.mubr.msk.f32.vlgmr.msra.gmra.mrb[40].mxu0 %vm613_vm2, %v10373_v43  ;;  %8491 = vmatmul.mubr.msk.f32.vlgmr.msra.gmra.mrb[54].mxu1 %vm613_vm2, %v10371_v2  ;;  %v4730_v8 = vpop.permute.xlu1 %4729 }
0x1404   :  { %8484 = vmatpush3.xpose.msk.msra.mxu0 %vm613_vm2, %v4730_v8  ;;  %8485 = vmatprep.mubr.msk.f32.mxu0 %vm9376_vm1, %v9377_v51  ;;  %v9339_v8 = vld [vmem:[%s10926_s3 + $0x38] sm:$0xff] }
0x1405   :  { %8493 = vmatprep.subr.mxu0 %v9377_v51  ;;  %8500 = vmatprep.mubr.msk.f32.mxu1 %vm9376_vm1, %v9377_v51 }
0x1407   :  { %8486 = vmatmul.mubr.msk.f32.vlgmr.msra.gmra.mrb[42].mxu0 %vm613_vm2, %v10379_v41 }
0x1408   :  { %8495 = vmatprep.mubr.msk.f32.mxu0 %vm9376_vm1, %v9377_v51 }
0x146b   :  { %v4345_v17 = vpop.f32.mrb[46].mxu1 }
0x146c   :  { %v4346_v3 = vadd.f32 %v9332_v34, %v4345_v17  ;;  %v8457_v12 = vpop.f32.mrb[47].mxu1 }
0x146e   :  { %v4881_v42 = vsel %vm613_vm2, %v4346_v3, -inf }
0x146f   :  { %4882 = vmax.xlane.f32.xlu1 %v4881_v42  ;;  %v4421_v7 = vpop.f32.mrb[48].mxu1 }
0x1470   :  { %v4422_v58 = vadd.f32 %v9333_v32, %v4421_v7  ;;  %v8462_v53 = vpop.f32.mrb[49].mxu1 }
0x1472   :  { %v4884_v24 = vsel %vm613_vm2, %v4422_v58, -inf }
0x1473   :  { %4885 = vmax.xlane.f32.xlu0 %v4884_v24 }
0x14ce   :  { %v4573_v37 = vpop.f32.mrb[50].mxu1 }
0x14cf   :  { %v8472_v4 = vpop.f32.mrb[51].mxu1  ;;  %v4574_v10 = vadd.f32 %v9335_v44, %v4573_v37 }
0x14d1   :  { %v4890_v38 = vsel %vm613_vm2, %v4574_v10, -inf }
0x14d2   :  { %v4497_v18 = vpop.f32.mrb[38].mxu0  ;;  %v4725_v57 = vpop.f32.mrb[52].mxu1 }
0x14d3   :  { %v4498_v22 = vadd.f32 %v9334_v11, %v4497_v18  ;;  %v8467_v25 = vpop.f32.mrb[39].mxu0  ;;  %v8482_v16 = vpop.f32.mrb[53].mxu1  ;;  %v4726_v47 = vadd.f32 %v9337_v29, %v4725_v57 }
0x14d5   :  { %v4887_v60 = vsel %vm613_vm2, %v4498_v22, -inf  ;;  %v4896_v34 = vsel %vm613_vm2, %v4726_v47, -inf }
0x14d6   :  { %v4877_v63 = vpop.f32.mrb[54].mxu1  ;;  %4888 = vmax.xlane.f32.xlu0 %v4887_v60  ;;  %v4649_v14 = vpop.f32.mrb[40].mxu0 }
0x14d7   :  { %v4650_v6 = vadd.f32 %v9336_v31, %v4649_v14  ;;  %v8477_v5 = vpop.f32.mrb[41].mxu0  ;;  %v8492_v9 = vpop.f32.mrb[55].mxu1  ;;  %v4878_v17 = vadd.f32 %v9339_v8, %v4877_v63 }
0x14d9   :  { %v4893_v48 = vsel %vm613_vm2, %v4650_v6, -inf  ;;  %v4902_v42 = vsel %vm613_vm2, %v4878_v17, -inf }
0x14da   :  { %4891 = vmax.xlane.f32.xlu0 %v4890_v38  ;;  %4894 = vmax.xlane.f32.xlu1 %v4893_v48  ;;  %v4801_v56 = vpop.f32.mrb[42].mxu0 }
0x14db   :  { %v4802_v62 = vadd.f32 %v9338_v0, %v4801_v56  ;;  %v8487_v30 = vpop.f32.mrb[43].mxu0 }
0x14dd   :  { %v4899_v12 = vsel %vm613_vm2, %v4802_v62, -inf }
0x14de   :  { %4897 = vmax.xlane.f32.xlu0 %v4896_v34  ;;  %4900 = vmax.xlane.f32.xlu1 %v4899_v12 }
0x14e2   :  { %4903 = vmax.xlane.f32.xlu0 %v4902_v42 }
0x14ef   :  { %4969 = vrot.lane.b32.xlu1 %v10345_v26, %s9375_s7 }
0x14f3   :  { %5121 = vrot.lane.b32.xlu1 %v10365_v59, %s9375_s7 }
0x14f7   :  { %5197 = vrot.lane.b32.xlu1 %v10359_v50, %s9375_s7 }
0x14f8   :  { %5045 = vrot.lane.b32.xlu0 %v10338_v36, %s9375_s7 }
0x14fb   :  { %5273 = vrot.lane.b32.xlu1 %v10373_v43, %s9375_s7 }
0x14fc   :  { %5349 = vrot.lane.b32.xlu0 %v10363_v13, %s9375_s7  ;;  %v4883_v53 = vpop.xlane.xlu1 %4882 }
0x14fd   :  { %v4905_v24 = vsub.f32 %v4346_v3, %v4883_v53 }
0x14ff   :  { %v4913_v37 = vmul.f32 1.442695, %v4905_v24 }
0x1500   :  { %v4886_v7 = vpop.xlane.xlu0 %4885 }
0x1501   :  { %v4906_v32 = vsub.f32 %v4422_v58, %v4886_v7 }
0x1503   :  { %v4915_v26 = vmul.f32 1.442695, %v4906_v32 }
0x1505   :  { %9256 = vpow2.f32 %v4915_v26 }
0x1506   :  { %9258 = vpow2.f32 %v4913_v37 }
0x150f   :  { %v10475_v59 = vpop.eup %9256 }
0x1510   :  { %v4932_v50 = vsel %vm613_vm2, %v10475_v59, 0.0  ;;  %v10479_v36 = vpop.eup %9258 }
0x1511   :  { %v4929_v43 = vsel %vm613_vm2, %v10479_v36, 0.0 }
0x151b   :  { %4933 = vadd.xlane.f32.xlu0 %v4932_v50 }
0x151f   :  { %4930 = vadd.xlane.f32.xlu1 %v4929_v43 }
0x1563   :  { %v4889_v13 = vpop.xlane.xlu0 %4888 }
0x1564   :  { %v4907_v58 = vsub.f32 %v4498_v22, %v4889_v13 }
0x1566   :  { %v4917_v4 = vmul.f32 1.442695, %v4907_v58 }
0x1567   :  { %v4892_v3 = vpop.xlane.xlu0 %4891  ;;  %v4895_v18 = vpop.xlane.xlu1 %4894 }
0x1568   :  { %9260 = vpow2.f32 %v4917_v4  ;;  %v4908_v57 = vsub.f32 %v4574_v10, %v4892_v3  ;;  %v4909_v11 = vsub.f32 %v4650_v6, %v4895_v18 }
0x156a   :  { %v4919_v25 = vmul.f32 1.442695, %v4908_v57  ;;  %v4921_v16 = vmul.f32 1.442695, %v4909_v11  ;;  %v9044_v11 = vpack.i.bf16 %v10311_v19, %v10306_v54 }
0x156b   :  { %v4898_v44 = vpop.xlane.xlu0 %4897  ;;  %v4901_v60 = vpop.xlane.xlu1 %4900 }
0x156c   :  { %9262 = vpow2.f32 %v4919_v25  ;;  %v4910_v63 = vsub.f32 %v4726_v47, %v4898_v44  ;;  %v4911_v14 = vsub.f32 %v4802_v62, %v4901_v60 }
0x156d   :  { %9264 = vpow2.f32 %v4921_v16 }
0x156e   :  { %v4923_v31 = vmul.f32 1.442695, %v4910_v63  ;;  %v4925_v5 = vmul.f32 1.442695, %v4911_v14 }
0x156f   :  { %v4904_v9 = vpop.xlane.xlu0 %4903  ;;  %v4970_v29 = vpop.permute.xlu1 %4969 }
0x1570   :  { %9266 = vpow2.f32 %v4923_v31  ;;  %v4912_v22 = vsub.f32 %v4878_v17, %v4904_v9  ;;  %8494 = vmatpush3.msra.mxu0 %v4970_v29 }
0x1571   :  { %9268 = vpow2.f32 %v4925_v5  ;;  %8503 = vmatprep.subr.mxu0 %v9377_v51 }
0x1572   :  { %v9261_v10 = vpop.eup %9260  ;;  %v4927_v6 = vmul.f32 1.442695, %v4912_v22  ;;  %v9049_v22 = vpack.i.bf16 %v10323_v40, %v10318_v55 }
0x1573   :  { %v5046_v38 = vpop.permute.xlu0 %5045  ;;  %v4935_v48 = vsel %vm613_vm2, %v9261_v10, 0.0  ;;  %v5122_v7 = vpop.permute.xlu1 %5121 }
0x1574   :  { %9270 = vpow2.f32 %v4927_v6  ;;  %8499 = vmatpush3.msra.mxu1 %v5046_v38  ;;  %4936 = vadd.xlane.f32.xlu1 %v4935_v48 }
0x1575   :  { %8508 = vmatprep.subr.mxu1 %v9377_v51 }
0x1576   :  { %v9263_v47 = vpop.eup %9262 }
0x1577   :  { %v9265_v56 = vpop.eup %9264  ;;  %v4938_v0 = vsel %vm613_vm2, %v9263_v47, 0.0  ;;  %v5198_v32 = vpop.permute.xlu1 %5197 }
0x1578   :  { %4939 = vadd.xlane.f32.xlu0 %v4938_v0  ;;  %v4941_v62 = vsel %vm613_vm2, %v9265_v56, 0.0  ;;  %v5350_v53 = vpop.permute.xlu0 %5349 }
0x1579   :  { %4942 = vadd.xlane.f32.xlu1 %v4941_v62 }
0x157a   :  { %v9267_v30 = vpop.eup %9266 }
0x157b   :  { %v10488_v8 = vpop.eup %9268  ;;  %v4944_v17 = vsel %vm613_vm2, %v9267_v30, 0.0  ;;  %v5274_v24 = vpop.permute.xlu1 %5273 }
0x157c   :  { %4945 = vadd.xlane.f32.xlu0 %v4944_v17  ;;  %v4947_v34 = vsel %vm613_vm2, %v10488_v8, 0.0 }
0x157d   :  { %4948 = vadd.xlane.f32.xlu1 %v4947_v34 }
0x157e   :  { %v10493_v12 = vpop.eup %9270 }
0x157f   :  { %v4950_v42 = vsel %vm613_vm2, %v10493_v12, 0.0 }
0x1580   :  { %4951 = vadd.xlane.f32.xlu0 %v4950_v42 }
0x158e   :  { %5425 = vrot.lane.b32.xlu1 %v10379_v41, %s9375_s7 }
0x1592   :  { %9045 = vrot.lane.b32.xlu1 %v9044_v11, %s9381_s28 }
0x1596   :  { %5501 = vrot.lane.b32.xlu0 %v10371_v2, %s9375_s7 }
0x159a   :  { %9050 = vrot.lane.b32.xlu0 %v9049_v22, %s9381_s28 }
0x15a8   :  { %v4934_v26 = vpop.xlane.xlu0 %4933 }
0x15a9   :  { %9272 = vrcp.f32 %v4934_v26 }
0x15ac   :  { %v4931_v37 = vpop.xlane.xlu1 %4930 }
0x15ad   :  { %9274 = vrcp.f32 %v4931_v37 }
0x15b3   :  { %v9273_v50 = vpop.eup %9272 }
0x15b4   :  { %v4962_v43 = vmul.f32 %v9273_v50, %v10475_v59 }
0x15b6   :  { %8501 = vmatmul.mubr.msk.f32.vlgmr.msra.gmra.mrb[56].mxu1 %vm613_vm2, %v4962_v43 }
0x15b7   :  { %v9275_v13 = vpop.eup %9274  ;;  %8509 = vmatpush3.msra.mxu1 %v5198_v32  ;;  %8510 = vmatprep.mubr.msk.f32.mxu1 %vm9376_vm1, %v9377_v51 }
0x15b8   :  { %v4961_v2 = vmul.f32 %v9275_v13, %v10479_v36  ;;  %8518 = vmatprep.subr.mxu1 %v9377_v51 }
0x15ba   :  { %8496 = vmatmul.mubr.msk.f32.vlgmr.msra.gmra.mrb[44].mxu0 %vm613_vm2, %v4961_v2 }
0x15bb   :  { %8504 = vmatpush3.msra.mxu0 %v5122_v7  ;;  %8505 = vmatprep.mubr.msk.f32.mxu0 %vm9376_vm1, %v9377_v51 }
0x15bc   :  { %8513 = vmatprep.subr.mxu0 %v9377_v51 }
0x1601   :  { %v4937_v41 = vpop.xlane.xlu1 %4936 }
0x1602   :  { %9276 = vrcp.f32 %v4937_v41 }
0x1605   :  { %v4940_v59 = vpop.xlane.xlu0 %4939 }
0x1606   :  { %9278 = vrcp.f32 %v4940_v59  ;;  %v4943_v58 = vpop.xlane.xlu1 %4942 }
0x1607   :  { %9280 = vrcp.f32 %v4943_v58 }
0x1609   :  { %v4946_v4 = vpop.xlane.xlu0 %4945 }
0x160a   :  { %9282 = vrcp.f32 %v4946_v4  ;;  %v4949_v3 = vpop.xlane.xlu1 %4948 }
0x160b   :  { %9284 = vrcp.f32 %v4949_v3 }
0x160c   :  { %v9277_v36 = vpop.eup %9276 }
0x160d   :  { %v4963_v18 = vmul.f32 %v9277_v36, %v9261_v10  ;;  %v4952_v57 = vpop.xlane.xlu0 %4951 }
0x160e   :  { %9286 = vrcp.f32 %v4952_v57  ;;  %v5426_v14 = vpop.permute.xlu1 %5425 }
0x160f   :  { %8506 = vmatmul.mubr.msk.f32.vlgmr.msra.gmra.mrb[46].mxu0 %vm613_vm2, %v4963_v18 }
0x1610   :  { %v9279_v25 = vpop.eup %9278  ;;  %8514 = vmatpush3.msra.mxu0 %v5274_v24  ;;  %8515 = vmatprep.mubr.msk.f32.mxu0 %vm9376_vm1, %v9377_v51 }
0x1611   :  { %v9281_v16 = vpop.eup %9280  ;;  %v4964_v44 = vmul.f32 %v9279_v25, %v9263_v47  ;;  %8523 = vmatprep.subr.mxu0 %v9377_v51  ;;  %v5502_v5 = vpop.permute.xlu0 %5501 }
0x1612   :  { %v4965_v60 = vmul.f32 %v9281_v16, %v9265_v56  ;;  %v9046_v10 = vpop.permute.xlu1 %9045 }
0x1613   :  { %8511 = vmatmul.mubr.msk.f32.vlgmr.msra.gmra.mrb[58].mxu1 %vm613_vm2, %v4964_v44  ;;  %v9048_v6 = vunpack.i.h.bf16 %v9046_v10  ;;  %v9047_v38 = vunpack.i.l.bf16 %v9046_v10 }
0x1614   :  { %v9283_v63 = vpop.eup %9282  ;;  %8516 = vmatmul.mubr.msk.f32.vlgmr.msra.gmra.mrb[48].mxu0 %vm613_vm2, %v4965_v60  ;;  %8519 = vmatpush3.msra.mxu1 %v5350_v53 }
0x1615   :  { %v9285_v54 = vpop.eup %9284  ;;  %v4966_v19 = vmul.f32 %v9283_v63, %v9267_v30  ;;  %8524 = vmatpush3.msra.mxu0 %v5426_v14  ;;  %8520 = vmatprep.mubr.msk.f32.mxu1 %vm9376_vm1, %v9377_v51  ;;  %v8842_v48 = vpack.c.bf16 %v9048_v6, %v9047_v38  ;;  %v9051_v30 = vpop.permute.xlu0 %9050 }
0x1616   :  { %v4967_v31 = vmul.f32 %v9285_v54, %v10488_v8  ;;  %8525 = vmatprep.mubr.msk.f32.mxu0 %vm9376_vm1, %v9377_v51  ;;  %8528 = vmatprep.subr.mxu1 %v9377_v51  ;;  %v9053_v8 = vunpack.i.h.bf16 %v9051_v30  ;;  %v9052_v17 = vunpack.i.l.bf16 %v9051_v30  ;;  %v10586_v30 = vld [vmem:[%s10928_s5 + $0x48] sm:$0xff] }
0x1617   :  { %8521 = vmatmul.mubr.msk.f32.vlgmr.msra.gmra.mrb[60].mxu1 %vm613_vm2, %v4966_v19  ;;  %8843 = vmatprep.subr.bf16.mxu0 %v8842_v48 }
0x1618   :  { %v9287_v9 = vpop.eup %9286  ;;  %8526 = vmatmul.mubr.msk.f32.vlgmr.msra.gmra.mrb[50].mxu0 %vm613_vm2, %v4967_v31  ;;  %8529 = vmatpush3.msra.mxu1 %v5502_v5  ;;  %v8846_v34 = vpack.c.bf16 %v9053_v8, %v9052_v17  ;;  %v10591_v8 = vld [vmem:[%s10928_s5 + $0x58] sm:$0xff] }
0x1619   :  { %v4968_v29 = vmul.f32 %v9287_v9, %v10493_v12  ;;  %8530 = vmatprep.mubr.msk.f32.mxu1 %vm9376_vm1, %v9377_v51  ;;  %8845 = vmatpush3.bf16.msra.mxu0 %v8842_v48  ;;  %v8850_v17 = vpack.c.bf16 %v10591_v8, %v10586_v30 }
0x161a   :  { %8847 = vmatprep.subr.bf16.mxu0 %v8846_v34 }
0x161b   :  { %8531 = vmatmul.mubr.msk.f32.vlgmr.msra.gmra.mrb[62].mxu1 %vm613_vm2, %v4968_v29  ;;  %8851 = vmatprep.subr.bf16.mxu1 %v8850_v17 }
0x161c   :  { %8853 = vmatpush3.bf16.msra.mxu1 %v8850_v17 }
0x161d   :  { %8849 = vmatpush3.bf16.msra.mxu0 %v8846_v34  ;;  %v10605_v34 = vld [vmem:[%s10928_s5 + $0x78] sm:$0xff] }
0x161e   :  { %8858 = vmatprep.subr.bf16.mxu0 %v9374_v33 }
0x1689   :  { %v5117_v47 = vpop.f32.mrb[56].mxu1 }
0x168a   :  { %v8502_v56 = vpop.f32.mrb[57].mxu1 }
0x168d   :  { %v5041_v0 = vpop.f32.mrb[44].mxu0 }
0x168e   :  { %v8497_v62 = vpop.f32.mrb[45].mxu0 }
0x16e2   :  { %v5193_v55 = vpop.f32.mrb[46].mxu0 }
0x16e3   :  { %5579 = vrot.lane.b32.xlu1 %v5193_v55, %s9382_s8  ;;  %v8507_v40 = vpop.f32.mrb[47].mxu0 }
0x16e6   :  { %v5269_v12 = vpop.f32.mrb[58].mxu1 }
0x16e7   :  { %v5345_v42 = vpop.f32.mrb[48].mxu0  ;;  %5581 = vrot.lane.b32.xlu0 %v5269_v12, %s9382_s8  ;;  %v8512_v7 = vpop.f32.mrb[59].mxu1 }
0x16e8   :  { %5587 = vrot.lane.b32.xlu1 %v5345_v42, %s9383_s29  ;;  %v8517_v32 = vpop.f32.mrb[49].mxu0 }
0x16ea   :  { %v5421_v53 = vpop.f32.mrb[60].mxu1 }
0x16eb   :  { %v5497_v24 = vpop.f32.mrb[50].mxu0  ;;  %5589 = vrot.lane.b32.xlu0 %v5421_v53, %s9383_s29  ;;  %v8522_v26 = vpop.f32.mrb[61].mxu1 }
0x16ec   :  { %5595 = vrot.lane.b32.xlu1 %v5497_v24, %s9384_s14  ;;  %v8527_v37 = vpop.f32.mrb[51].mxu0 }
0x16ee   :  { %v5573_v50 = vpop.f32.mrb[62].mxu1 }
0x16ef   :  { %5597 = vrot.lane.b32.xlu0 %v5573_v50, %s9384_s14  ;;  %v8532_v43 = vpop.f32.mrb[63].mxu1 }
0x16f0   :  { %5633 = vrot.lane.b32.xlu1 %v10335_v21, %s9381_s28 }
0x1755   :  { %v5580_v13 = vpop.permute.xlu1 %5579 }
0x1756   :  { %v5601_v59 = vsel %vm613_vm2, %v5041_v0, %v5580_v13 }
0x1759   :  { %v5582_v2 = vpop.permute.xlu0 %5581 }
0x175a   :  { %v5588_v41 = vpop.permute.xlu1 %5587  ;;  %v5602_v18 = vsel %vm613_vm2, %v5117_v47, %v5582_v2 }
0x175b   :  { %v5603_v4 = vsel %vm1942_vm3, %v5601_v59, %v5588_v41 }
0x175d   :  { %v5590_v58 = vpop.permute.xlu0 %5589 }
0x175e   :  { %v5596_v3 = vpop.permute.xlu1 %5595  ;;  %v5604_v57 = vsel %vm1942_vm3, %v5602_v18, %v5590_v58  ;;  %v10613_v58 = vld [vmem:[%s10932_s9 + $0x7] ss:$0 sm:$0xff] }
0x175f   :  { %v5605_v36 = vsel %vm1945_vm4, %v5603_v4, %v5596_v3 }
0x1760   :  { %8541 = vmatprep.mubr.msk.f32.mxu0 %vm171_vm0, %v5605_v36 }
0x1761   :  { %v5598_v11 = vpop.permute.xlu0 %5597 }
0x1762   :  { %v5606_v21 = vsel %vm1945_vm4, %v5604_v57, %v5598_v11  ;;  %v5634_v25 = vpop.permute.xlu1 %5633 }
0x1763   :  { %8542 = vmatmul.mubr.msk.f32.vlgmr.msra.gmra.mrb[52].mxu0 %vm171_vm0, %v5606_v21 }
0x1764   :  { %8559 = vmatprep.mubr.msk.f32.mxu0 %vm9376_vm1, %v9377_v51 }
0x1836   :  { %v8543_v16 = vpop.f32.mrb[52].mxu0 }
0x1837   :  { %v5714_v44 = vadd.f32 %v8543_v16, %v5634_v25  ;;  %v5708_v60 = vpop.f32.mrb[53].mxu0  ;;  %v10627_v16 = vld [vmem:[%s10932_s9 + $0x5] ss:$0 sm:$0xff] }
0x1838   :  { %v5709_v63 = vadd.f32 %v5708_v60, %v5634_v25 }
0x1839   :  { %v10555_v14 = vadd.f32 %v5714_v44, %v10281_v61 }
0x183a   :  { %v10558_v54 = vadd.f32 %v5709_v63, %v10284_v39 }
0x183b   :  { %v5724_v19 = vsel %vm171_vm0, %v10555_v14, 0.0 }
0x183c   :  { %5725 = vadd.xlane.f32.xlu1 %v5724_v19  ;;  %v5721_v31 = vsel %vm171_vm0, %v10558_v54, 0.0 }
0x183d   :  { %5722 = vadd.xlane.f32.xlu0 %v5721_v31 }
0x184d   :  { %9055 = vrot.lane.b32.xlu1 %v9596_v45, %s9375_s7 }
0x1851   :  { %9060 = vrot.lane.b32.xlu1 %v9965_v28, %s9375_s7 }
0x1855   :  { %9065 = vrot.lane.b32.xlu1 %v9982_v35, %s9375_s7 }
0x1859   :  { %9075 = vrot.lane.b32.xlu1 %v9969_v20, %s9375_s7 }
0x18c9   :  { %v5726_v61 = vpop.xlane.xlu1 %5725 }
0x18ca   :  { %v5728_v39 = vmul.f32 0.03125, %v5726_v61  ;;  %v5723_v5 = vpop.xlane.xlu0 %5722 }
0x18cb   :  { %v5727_v9 = vmul.f32 0.03125, %v5723_v5 }
0x18cc   :  { %v5730_v29 = vsub.f32 %v10555_v14, %v5728_v39 }
0x18cd   :  { %v5729_v22 = vsub.f32 %v10558_v54, %v5727_v9  ;;  %v9056_v10 = vpop.permute.xlu1 %9055 }
0x18ce   :  { %v9058_v6 = vunpack.i.h.bf16 %v9056_v10  ;;  %v9057_v38 = vunpack.i.l.bf16 %v9056_v10  ;;  %v5732_v48 = vmul.f32 %v5730_v29, %v5730_v29 }
0x18cf   :  { %v5731_v0 = vmul.f32 %v5729_v22, %v5729_v22 }
0x18d0   :  { %v8859_v47 = vpack.c.bf16 %v9058_v6, %v9057_v38  ;;  %v5736_v56 = vsel %vm171_vm0, %v5732_v48, 0.0 }
0x18d1   :  { %5737 = vadd.xlane.f32.xlu0 %v5736_v56  ;;  %v5733_v62 = vsel %vm171_vm0, %v5731_v0, 0.0  ;;  %v9061_v50 = vpop.permute.xlu1 %9060 }
0x18d2   :  { %8861 = vmatpush3.bf16.xpose.msk.msra.mxu0 %vm9821_vm5, %v8859_v47  ;;  %v9063_v41 = vunpack.i.h.bf16 %v9061_v50  ;;  %v9062_v59 = vunpack.i.l.bf16 %v9061_v50  ;;  %v9340_v50 = vld [vmem:[%s10927_s4 + $0x8] sm:$0xff] }
0x18d3   :  { %8866 = vmatprep.subr.bf16.mxu0 %v9374_v33 }
0x18d4   :  { %v8863_v18 = vpack.c.bf16 %v9063_v41, %v9062_v59  ;;  %v9341_v41 = vld [vmem:[%s10927_s4] sm:$0xff] }
0x18d5   :  { %5734 = vadd.xlane.f32.xlu0 %v5733_v62  ;;  %v9066_v11 = vpop.permute.xlu1 %9065 }
0x18d6   :  { %v9068_v44 = vunpack.i.h.bf16 %v9066_v11  ;;  %v9067_v60 = vunpack.i.l.bf16 %v9066_v11 }
0x18d8   :  { %v8867_v5 = vpack.c.bf16 %v9068_v44, %v9067_v60  ;;  %v9343_v60 = vld [vmem:[%s10927_s4 + $0x18] sm:$0xff] }
0x18eb   :  { %5752 = vrot.lane.b32.xlu0 %v10293_v1, %s9381_s28  ;;  %v10600_v1 = vld [vmem:[%s10928_s5 + $0x68] sm:$0xff] }
0x18ec   :  { %v8854_v55 = vpack.c.bf16 %v10605_v34, %v10600_v1 }
0x18ee   :  { %8855 = vmatprep.subr.bf16.mxu1 %v8854_v55 }
0x18ef   :  { %9070 = vrot.lane.b32.xlu0 %v9889_v15, %s9375_s7  ;;  %8857 = vmatpush3.bf16.msra.mxu1 %v8854_v55 }
0x18f0   :  { %8862 = vmatprep.subr.bf16.mxu1 %v9374_v33 }
0x18f3   :  { %9080 = vrot.lane.b32.xlu0 %v9987_v52, %s9375_s7 }
0x195e   :  { %v5738_v40 = vpop.xlane.xlu0 %5737 }
0x195f   :  { %v5740_v12 = vmul.f32 0.03125, %v5738_v40 }
0x1961   :  { %v5742_v42 = vadd.f32 1e-05, %v5740_v12 }
0x1962   :  { %v5735_v7 = vpop.xlane.xlu0 %5734 }
0x1963   :  { %9288 = vrsqrt.f32 %v5742_v42  ;;  %v5739_v32 = vmul.f32 0.03125, %v5735_v7 }
0x1965   :  { %v5741_v53 = vadd.f32 1e-05, %v5739_v32 }
0x1966   :  { %v5753_v13 = vpop.permute.xlu0 %5752 }
0x1967   :  { %9290 = vrsqrt.f32 %v5741_v53 }
0x196a   :  { %v9071_v57 = vpop.permute.xlu0 %9070 }
0x196b   :  { %v9073_v21 = vunpack.i.h.bf16 %v9071_v57  ;;  %v9072_v25 = vunpack.i.l.bf16 %v9071_v57 }
0x196d   :  { %v9289_v24 = vpop.eup %9288  ;;  %v8871_v61 = vpack.c.bf16 %v9073_v21, %v9072_v25  ;;  %v9342_v21 = vld [vmem:[%s10927_s4 + $0x10] sm:$0xff] }
0x196e   :  { %v5746_v26 = vmul.f32 %v9289_v24, %v5730_v29  ;;  %v9081_v9 = vpop.permute.xlu0 %9080  ;;  %v9076_v29 = vpop.permute.xlu1 %9075 }
0x196f   :  { %v9082_v10 = vunpack.i.l.bf16 %v9081_v9  ;;  %v9078_v6 = vunpack.i.h.bf16 %v9076_v29  ;;  %v9077_v38 = vunpack.i.l.bf16 %v9076_v29 }
0x1970   :  { %v5756_v2 = vmul.f32 %v5753_v13, %v5746_v26 }
0x1971   :  { %v9291_v37 = vpop.eup %9290  ;;  %v8875_v56 = vpack.c.bf16 %v9078_v6, %v9077_v38 }
0x1972   :  { %v5745_v43 = vmul.f32 %v9291_v37, %v5729_v22  ;;  %v5764_v36 = vadd.f32 %v10613_v58, %v5756_v2  ;;  %v9083_v22 = vunpack.i.h.bf16 %v9081_v9 }
0x1974   :  { %v5755_v4 = vmul.f32 %v5753_v13, %v5745_v43  ;;  %v8879_v48 = vpack.c.bf16 %v9083_v22, %v9082_v10  ;;  %v9345_v22 = vld [vmem:[%s10927_s4 + $0x20] sm:$0xff] }
0x1976   :  { %v5763_v3 = vadd.f32 %v10613_v58, %v5755_v4 }
0x1978   :  { %8552 = vmatprep.mubr.msk.f32.mxu1 %vm171_vm0, %v5763_v3 }
0x1979   :  { %8553 = vmatmul.mubr.msk.f32.vlgmr.msra.gmra.mrb[64].mxu1 %vm171_vm0, %v5764_v36 }
0x197a   :  { %8865 = vmatpush3.bf16.xpose.msk.msra.mxu1 %vm9821_vm5, %v8863_v18  ;;  %8566 = vmatprep.mubr.msk.f32.mxu1 %vm9376_vm1, %v9377_v51 }
0x197b   :  { %8870 = vmatprep.subr.bf16.mxu1 %v9374_v33 }
0x1a4c   :  { %v8554_v63 = vpop.f32.mrb[64].mxu1 }
0x1a4d   :  { %v5854_v19 = vadd.f32 %v8554_v63, %v10627_v16  ;;  %v5848_v31 = vpop.f32.mrb[65].mxu1 }
0x1a4e   :  { %v5849_v39 = vadd.f32 %v10627_v16, %v5848_v31 }
0x1a4f   :  { %5861 = vrot.lane.b32.xlu0 %v5854_v19, %s9379_s12  ;;  %8567 = vmatmul.mubr.msk.f32.vlgmr.msra.gmra.mrb[66].mxu1 %vm613_vm2, %v5854_v19 }
0x1a50   :  { %8873 = vmatpush3.bf16.xpose.msk.msra.mxu1 %vm9821_vm5, %v8871_v61  ;;  %5859 = vrot.lane.b32.xlu1 %v5849_v39, %s9379_s12 }
0x1a51   :  { %8560 = vmatmul.mubr.msk.f32.vlgmr.msra.gmra.mrb[54].mxu0 %vm613_vm2, %v5849_v39  ;;  %8580 = vmatprep.mubr.msk.f32.mxu1 %vm9376_vm1, %v9377_v51 }
0x1a52   :  { %8869 = vmatpush3.bf16.xpose.msk.msra.mxu0 %vm9821_vm5, %v8867_v5  ;;  %8878 = vmatprep.subr.bf16.mxu1 %v9374_v33 }
0x1a53   :  { %9090 = vrot.lane.b32.xlu0 %v10001_v23, %s9375_s7  ;;  %8573 = vmatprep.mubr.msk.f32.mxu0 %vm9376_vm1, %v9377_v51 }
0x1a54   :  { %9085 = vrot.lane.b32.xlu1 %v9999_v49, %s9375_s7  ;;  %8874 = vmatprep.subr.bf16.mxu0 %v9374_v33 }
0x1a57   :  { %5865 = vrot.lane.b32.xlu0 %v5854_v19, %s9378_s30 }
0x1a58   :  { %5863 = vrot.lane.b32.xlu1 %v5849_v39, %s9378_s30 }
0x1a5b   :  { %5869 = vrot.lane.b32.xlu0 %v5854_v19, %s9380_s13 }
0x1a5c   :  { %5867 = vrot.lane.b32.xlu1 %v5849_v39, %s9380_s13  ;;  %v9344_v39 = vld [vmem:[%s10927_s4 + $0x28] sm:$0xff] }
0x1ac1   :  { %v5862_v47 = vpop.permute.xlu0 %5861 }
0x1ac2   :  { %v5860_v0 = vpop.permute.xlu1 %5859  ;;  %8581 = vmatmul.mubr.msk.f32.vlgmr.msra.gmra.mrb[68].mxu1 %vm613_vm2, %v5862_v47 }
0x1ac3   :  { %8881 = vmatpush3.bf16.xpose.msk.msra.mxu1 %vm9821_vm5, %v8879_v48  ;;  %8574 = vmatmul.mubr.msk.f32.vlgmr.msra.gmra.mrb[56].mxu0 %vm613_vm2, %v5860_v0 }
0x1ac4   :  { %8877 = vmatpush3.bf16.xpose.msk.msra.mxu0 %vm9821_vm5, %v8875_v56  ;;  %8594 = vmatprep.mubr.msk.f32.mxu1 %vm9376_vm1, %v9377_v51  ;;  %v9346_v56 = vld [vmem:[%s10927_s4 + $0x38] sm:$0xff] }
0x1ac5   :  { %v9091_v62 = vpop.permute.xlu0 %9090  ;;  %8886 = vmatprep.subr.bf16.mxu1 %v9374_v33  ;;  %8587 = vmatprep.mubr.msk.f32.mxu0 %vm9376_vm1, %v9377_v51 }
0x1ac6   :  { %v9093_v17 = vunpack.i.h.bf16 %v9091_v62  ;;  %v9092_v55 = vunpack.i.l.bf16 %v9091_v62  ;;  %v9086_v40 = vpop.permute.xlu1 %9085  ;;  %8882 = vmatprep.subr.bf16.mxu0 %v9374_v33 }
0x1ac7   :  { %v9088_v12 = vunpack.i.h.bf16 %v9086_v40  ;;  %v9087_v42 = vunpack.i.l.bf16 %v9086_v40 }
0x1ac8   :  { %v8887_v7 = vpack.c.bf16 %v9093_v17, %v9092_v55  ;;  %v9347_v55 = vld [vmem:[%s10927_s4 + $0x30] sm:$0xff] }
0x1ac9   :  { %v8883_v32 = vpack.c.bf16 %v9088_v12, %v9087_v42  ;;  %v5866_v53 = vpop.permute.xlu0 %5865 }
0x1aca   :  { %v5864_v24 = vpop.permute.xlu1 %5863  ;;  %8595 = vmatmul.mubr.msk.f32.vlgmr.msra.gmra.mrb[70].mxu1 %vm613_vm2, %v5866_v53 }
0x1acb   :  { %8889 = vmatpush3.bf16.xpose.msk.msra.mxu1 %vm9821_vm5, %v8887_v7  ;;  %8588 = vmatmul.mubr.msk.f32.vlgmr.msra.gmra.mrb[58].mxu0 %vm613_vm2, %v5864_v24 }
0x1acc   :  { %8885 = vmatpush3.bf16.xpose.msk.msra.mxu0 %vm9821_vm5, %v8883_v32  ;;  %8608 = vmatprep.mubr.msk.f32.mxu1 %vm9376_vm1, %v9377_v51 }
0x1acd   :  { %8601 = vmatprep.mubr.msk.f32.mxu0 %vm9376_vm1, %v9377_v51  ;;  %8894 = vmatprep.subr.bf16.mxu1 %v9374_v33  ;;  %v5870_v26 = vpop.permute.xlu0 %5869 }
0x1ace   :  { %8890 = vmatprep.subr.bf16.mxu0 %v9374_v33  ;;  %v5868_v37 = vpop.permute.xlu1 %5867 }
0x1ad2   :  { %8609 = vmatmul.mubr.msk.f32.vlgmr.msra.gmra.mrb[72].mxu1 %vm613_vm2, %v5870_v26 }
0x1ad3   :  { %8602 = vmatmul.mubr.msk.f32.vlgmr.msra.gmra.mrb[60].mxu0 %vm613_vm2, %v5868_v37  ;;  %8622 = vmatprep.mubr.msk.f32.mxu1 %vm9376_vm1, %v9377_v51 }
0x1ad4   :  { %8615 = vmatprep.mubr.msk.f32.mxu0 %vm9376_vm1, %v9377_v51 }
0x1b22   :  { %v6027_v46 = vpop.f32.mrb[66].mxu1 }
0x1b23   :  { %v6028_v43 = vadd.f32 %v9340_v50, %v6027_v46  ;;  %v8568_v13 = vpop.f32.mrb[67].mxu1 }
0x1b24   :  { %v5947_v2 = vpop.f32.mrb[54].mxu0 }
0x1b25   :  { %v5948_v59 = vadd.f32 %v9341_v41, %v5947_v2  ;;  %v8561_v4 = vpop.f32.mrb[55].mxu0  ;;  %v6514_v3 = vsel %vm3012_vm7, %v6028_v43, -inf }
0x1b26   :  { %6515 = vmax.xlane.f32.xlu0 %v6514_v3 }
0x1b27   :  { %v6511_v36 = vsel %vm3012_vm7, %v5948_v59, -inf }
0x1b28   :  { %6512 = vmax.xlane.f32.xlu1 %v6511_v36 }
0x1b95   :  { %v6187_v18 = vpop.f32.mrb[68].mxu1 }
0x1b96   :  { %v6107_v57 = vpop.f32.mrb[56].mxu0  ;;  %v8582_v11 = vpop.f32.mrb[69].mxu1  ;;  %v6188_v63 = vadd.f32 %v9343_v60, %v6187_v18 }
0x1b97   :  { %v6108_v25 = vadd.f32 %v9342_v21, %v6107_v57  ;;  %v8575_v44 = vpop.f32.mrb[57].mxu0 }
0x1b98   :  { %v6520_v61 = vsel %vm3012_vm7, %v6188_v63, -inf }
0x1b99   :  { %v6517_v19 = vsel %vm3012_vm7, %v6108_v25, -inf }
0x1b9a   :  { %6518 = vmax.xlane.f32.xlu0 %v6517_v19 }
0x1b9d   :  { %v6347_v31 = vpop.f32.mrb[70].mxu1 }
0x1b9e   :  { %v6348_v5 = vadd.f32 %v9344_v39, %v6347_v31  ;;  %v6267_v9 = vpop.f32.mrb[58].mxu0  ;;  %6521 = vmax.xlane.f32.xlu0 %v6520_v61  ;;  %v8596_v29 = vpop.f32.mrb[71].mxu1 }
0x1b9f   :  { %v6268_v10 = vadd.f32 %v9345_v22, %v6267_v9  ;;  %v8589_v6 = vpop.f32.mrb[59].mxu0 }
0x1ba0   :  { %v6526_v38 = vsel %vm3012_vm7, %v6348_v5, -inf }
0x1ba1   :  { %v6523_v48 = vsel %vm3012_vm7, %v6268_v10, -inf }
0x1ba2   :  { %6524 = vmax.xlane.f32.xlu1 %v6523_v48  ;;  %6527 = vmax.xlane.f32.xlu0 %v6526_v38 }
0x1ba5   :  { %v6507_v47 = vpop.f32.mrb[72].mxu1 }
0x1ba6   :  { %v6508_v0 = vadd.f32 %v9346_v56, %v6507_v47  ;;  %v6427_v62 = vpop.f32.mrb[60].mxu0  ;;  %v8610_v17 = vpop.f32.mrb[73].mxu1 }
0x1ba7   :  { %v6428_v40 = vadd.f32 %v9347_v55, %v6427_v62  ;;  %v8603_v12 = vpop.f32.mrb[61].mxu0 }
0x1ba8   :  { %v6532_v42 = vsel %vm3012_vm7, %v6508_v0, -inf }
0x1ba9   :  { %6533 = vmax.xlane.f32.xlu0 %v6532_v42  ;;  %v6529_v7 = vsel %vm3012_vm7, %v6428_v40, -inf }
0x1baa   :  { %6530 = vmax.xlane.f32.xlu1 %v6529_v7 }
0x1bb3   :  { %v6516_v32 = vpop.xlane.xlu0 %6515 }
0x1bb4   :  { %v6536_v53 = vsub.f32 %v6028_v43, %v6516_v32 }
0x1bb5   :  { %v6513_v26 = vpop.xlane.xlu1 %6512 }
0x1bb6   :  { %v6545_v24 = vmul.f32 1.442695, %v6536_v53 }
0x1bb8   :  { %9292 = vpow2.f32 %v6545_v24 }
0x1bbb   :  { %9095 = vrot.lane.b32.xlu1 %v9596_v45, %s9381_s28  ;;  %v6535_v45 = vsub.f32 %v5948_v59, %v6513_v26 }
0x1bbd   :  { %v6543_v37 = vmul.f32 1.442695, %v6535_v45 }
0x1bbf   :  { %9105 = vrot.lane.b32.xlu1 %v9982_v35, %s9381_s28  ;;  %9100 = vrot.lane.b32.xlu0 %v9965_v28, %s9381_s28  ;;  %9294 = vpow2.f32 %v6543_v37 }
0x1bc2   :  { %v10727_v35 = vpop.eup %9292 }
0x1bc3   :  { %9110 = vrot.lane.b32.xlu1 %v9889_v15, %s9381_s28  ;;  %9120 = vrot.lane.b32.xlu0 %v9987_v52, %s9381_s28  ;;  %v6562_v28 = vsel %vm3012_vm7, %v10727_v35, 0.0 }
0x1bc7   :  { %9115 = vrot.lane.b32.xlu1 %v9969_v20, %s9381_s28 }
0x1bc9   :  { %v10731_v15 = vpop.eup %9294 }
0x1bca   :  { %v6559_v52 = vsel %vm3012_vm7, %v10731_v15, 0.0 }
0x1be2   :  { %6563 = vadd.xlane.f32.xlu0 %v6562_v28 }
0x1beb   :  { %6560 = vadd.xlane.f32.xlu1 %v6559_v52 }
0x1c27   :  { %v6519_v20 = vpop.xlane.xlu0 %6518 }
0x1c28   :  { %v6537_v46 = vsub.f32 %v6108_v25, %v6519_v20 }
0x1c2a   :  { %v6547_v50 = vmul.f32 1.442695, %v6537_v46 }
0x1c2b   :  { %v6522_v43 = vpop.xlane.xlu0 %6521 }
0x1c2c   :  { %9296 = vpow2.f32 %v6547_v50  ;;  %v6538_v13 = vsub.f32 %v6188_v63, %v6522_v43 }
0x1c2e   :  { %v6549_v2 = vmul.f32 1.442695, %v6538_v13 }
0x1c2f   :  { %v6525_v41 = vpop.xlane.xlu1 %6524  ;;  %v6528_v59 = vpop.xlane.xlu0 %6527 }
0x1c30   :  { %9298 = vpow2.f32 %v6549_v2  ;;  %v6539_v4 = vsub.f32 %v6268_v10, %v6525_v41  ;;  %v6540_v3 = vsub.f32 %v6348_v5, %v6528_v59 }
0x1c32   :  { %v6551_v36 = vmul.f32 1.442695, %v6539_v4  ;;  %v6553_v18 = vmul.f32 1.442695, %v6540_v3 }
0x1c34   :  { %9300 = vpow2.f32 %v6551_v36 }
0x1c35   :  { %9302 = vpow2.f32 %v6553_v18 }
0x1c36   :  { %v10735_v57 = vpop.eup %9296  ;;  %v6534_v11 = vpop.xlane.xlu0 %6533 }
0x1c37   :  { %v6542_v21 = vsub.f32 %v6508_v0, %v6534_v11  ;;  %v6531_v44 = vpop.xlane.xlu1 %6530  ;;  %v6565_v25 = vsel %vm3012_vm7, %v10735_v57, 0.0 }
0x1c38   :  { %v6541_v60 = vsub.f32 %v6428_v40, %v6531_v44  ;;  %6566 = vadd.xlane.f32.xlu1 %v6565_v25 }
0x1c39   :  { %v6557_v63 = vmul.f32 1.442695, %v6542_v21 }
0x1c3a   :  { %v10739_v19 = vpop.eup %9298  ;;  %v6555_v31 = vmul.f32 1.442695, %v6541_v60  ;;  %v9101_v61 = vpop.permute.xlu0 %9100 }
0x1c3b   :  { %9304 = vpow2.f32 %v6557_v63  ;;  %v9103_v39 = vunpack.i.h.bf16 %v9101_v61  ;;  %v9102_v5 = vunpack.i.l.bf16 %v9101_v61  ;;  %v9096_v9 = vpop.permute.xlu1 %9095  ;;  %v6568_v29 = vsel %vm3012_vm7, %v10739_v19, 0.0 }
0x1c3c   :  { %9306 = vpow2.f32 %v6555_v31  ;;  %v9098_v22 = vunpack.i.h.bf16 %v9096_v9  ;;  %v9097_v10 = vunpack.i.l.bf16 %v9096_v9  ;;  %6569 = vadd.xlane.f32.xlu0 %v6568_v29 }
0x1c3d   :  { %v8895_v6 = vpack.c.bf16 %v9103_v39, %v9102_v5 }
0x1c3e   :  { %v10743_v38 = vpop.eup %9300  ;;  %v8891_v48 = vpack.c.bf16 %v9098_v22, %v9097_v10  ;;  %v9121_v42 = vpop.permute.xlu0 %9120  ;;  %v10801_v10 = vpack.i.bf16 %v10591_v8, %v10586_v30 }
0x1c3f   :  { %v10745_v47 = vpop.eup %9302  ;;  %8897 = vmatpush3.bf16.msk.msra.mxu1 %vm10124_vm10, %v8895_v6  ;;  %v6571_v56 = vsel %vm3012_vm7, %v10743_v38, 0.0  ;;  %v9106_v12 = vpop.permute.xlu1 %9105  ;;  %v9123_v3 = vunpack.i.h.bf16 %v9121_v42  ;;  %v9122_v36 = vunpack.i.l.bf16 %v9121_v42 }
0x1c40   :  { %8893 = vmatpush3.bf16.msk.msra.mxu0 %vm10124_vm10, %v8891_v48  ;;  %6572 = vadd.xlane.f32.xlu1 %v6571_v56  ;;  %v6574_v0 = vsel %vm3012_vm7, %v10745_v47, 0.0 }
0x1c41   :  { %6575 = vadd.xlane.f32.xlu0 %v6574_v0  ;;  %8902 = vmatprep.subr.bf16.mxu1 %v9374_v33 }
0x1c42   :  { %8898 = vmatprep.subr.bf16.mxu0 %v9374_v33 }
0x1c43   :  { %v9111_v7 = vpop.permute.xlu1 %9110 }
0x1c44   :  { %v9113_v24 = vunpack.i.h.bf16 %v9111_v7  ;;  %v9112_v26 = vunpack.i.l.bf16 %v9111_v7 }
0x1c45   :  { %v10757_v62 = vpop.eup %9304 }
0x1c46   :  { %v10759_v17 = vpop.eup %9306  ;;  %v6580_v55 = vsel %vm3012_vm7, %v10757_v62, 0.0  ;;  %v8903_v52 = vpack.c.bf16 %v9113_v24, %v9112_v26 }
0x1c47   :  { %6581 = vadd.xlane.f32.xlu0 %v6580_v55  ;;  %v6577_v40 = vsel %vm3012_vm7, %v10759_v17, 0.0  ;;  %v9116_v53 = vpop.permute.xlu1 %9115 }
0x1c48   :  { %6578 = vadd.xlane.f32.xlu1 %v6577_v40  ;;  %v9118_v2 = vunpack.i.h.bf16 %v9116_v53  ;;  %v9117_v41 = vunpack.i.l.bf16 %v9116_v53 }
0x1c4a   :  { %v8907_v18 = vpack.c.bf16 %v9118_v2, %v9117_v41 }
0x1c59   :  { %9125 = vrot.lane.b32.xlu1 %v9999_v49, %s9381_s28  ;;  %v9108_v49 = vunpack.i.h.bf16 %v9106_v12 }
0x1c5d   :  { %9130 = vrot.lane.b32.xlu0 %v10001_v23, %s9381_s28  ;;  %v9107_v23 = vunpack.i.l.bf16 %v9106_v12  ;;  %9135 = vrot.lane.b32.xlu1 %v10801_v10, %s9372_s0 }
0x1c5f   :  { %v8899_v50 = vpack.c.bf16 %v9108_v49, %v9107_v23 }
0x1c6f   :  { %v6564_v32 = vpop.xlane.xlu0 %6563 }
0x1c70   :  { %9308 = vrcp.f32 %v6564_v32 }
0x1c78   :  { %v6561_v45 = vpop.xlane.xlu1 %6560 }
0x1c79   :  { %9310 = vrcp.f32 %v6561_v45 }
0x1c7a   :  { %v9309_v37 = vpop.eup %9308 }
0x1c7b   :  { %v6592_v28 = vmul.f32 %v9309_v37, %v10727_v35 }
0x1c7d   :  { %8623 = vmatmul.mubr.msk.f32.vlgmr.msra.gmra.mrb[74].mxu1 %vm3012_vm7, %v6592_v28 }
0x1c7e   :  { %8905 = vmatpush3.bf16.msk.msra.mxu1 %vm10124_vm10, %v8903_v52  ;;  %8636 = vmatprep.mubr.msk.f32.mxu1 %vm9376_vm1, %v9377_v51 }
0x1c7f   :  { %8910 = vmatprep.subr.bf16.mxu1 %v9374_v33 }
0x1c83   :  { %v9311_v20 = vpop.eup %9310 }
0x1c84   :  { %v6591_v46 = vmul.f32 %v9311_v20, %v10731_v15 }
0x1c86   :  { %8616 = vmatmul.mubr.msk.f32.vlgmr.msra.gmra.mrb[62].mxu0 %vm3012_vm7, %v6591_v46 }
0x1c87   :  { %8901 = vmatpush3.bf16.msk.msra.mxu0 %vm10124_vm10, %v8899_v50  ;;  %8629 = vmatprep.mubr.msk.f32.mxu0 %vm9376_vm1, %v9377_v51 }
0x1c88   :  { %8906 = vmatprep.subr.bf16.mxu0 %v9374_v33 }
0x1cc5   :  { %v6567_v35 = vpop.xlane.xlu1 %6566 }
0x1cc6   :  { %9312 = vrcp.f32 %v6567_v35 }
0x1cc9   :  { %v6570_v43 = vpop.xlane.xlu0 %6569 }
0x1cca   :  { %9314 = vrcp.f32 %v6570_v43 }
0x1ccd   :  { %v6573_v13 = vpop.xlane.xlu1 %6572 }
0x1cce   :  { %9316 = vrcp.f32 %v6573_v13  ;;  %v6576_v15 = vpop.xlane.xlu0 %6575 }
0x1ccf   :  { %9318 = vrcp.f32 %v6576_v15 }
0x1cd0   :  { %v9313_v59 = vpop.eup %9312 }
0x1cd1   :  { %v6593_v4 = vmul.f32 %v9313_v59, %v10735_v57  ;;  %v8911_v57 = vpack.c.bf16 %v9123_v3, %v9122_v36 }
0x1cd3   :  { %8630 = vmatmul.mubr.msk.f32.vlgmr.msra.gmra.mrb[64].mxu0 %vm3012_vm7, %v6593_v4 }
0x1cd4   :  { %v9315_v11 = vpop.eup %9314  ;;  %8909 = vmatpush3.bf16.msk.msra.mxu0 %vm10124_vm10, %v8907_v18  ;;  %v6582_v21 = vpop.xlane.xlu0 %6581  ;;  %8643 = vmatprep.mubr.msk.f32.mxu0 %vm9376_vm1, %v9377_v51 }
0x1cd5   :  { %v6594_v44 = vmul.f32 %v9315_v11, %v10739_v19  ;;  %9320 = vrcp.f32 %v6582_v21  ;;  %v6579_v25 = vpop.xlane.xlu1 %6578  ;;  %8914 = vmatprep.subr.bf16.mxu0 %v9374_v33 }
0x1cd6   :  { %9322 = vrcp.f32 %v6579_v25 }
0x1cd7   :  { %8637 = vmatmul.mubr.msk.f32.vlgmr.msra.gmra.mrb[76].mxu1 %vm3012_vm7, %v6594_v44 }
0x1cd8   :  { %v9317_v60 = vpop.eup %9316  ;;  %v9131_v63 = vpop.permute.xlu0 %9130  ;;  %8913 = vmatpush3.bf16.msk.msra.mxu1 %vm10124_vm10, %v8911_v57  ;;  %8650 = vmatprep.mubr.msk.f32.mxu1 %vm9376_vm1, %v9377_v51 }
0x1cd9   :  { %v9319_v31 = vpop.eup %9318  ;;  %v6595_v61 = vmul.f32 %v9317_v60, %v10743_v38  ;;  %v9133_v19 = vunpack.i.h.bf16 %v9131_v63  ;;  %v9132_v39 = vunpack.i.l.bf16 %v9131_v63  ;;  %v9126_v5 = vpop.permute.xlu1 %9125  ;;  %8918 = vmatprep.subr.bf16.mxu1 %v9374_v33 }
0x1cda   :  { %v6596_v9 = vmul.f32 %v9319_v31, %v10745_v47  ;;  %v9128_v29 = vunpack.i.h.bf16 %v9126_v5  ;;  %v9127_v22 = vunpack.i.l.bf16 %v9126_v5  ;;  %v9139_v47 = vpack.i.bf16 %v10605_v34, %v10600_v1 }
0x1cdb   :  { %v8919_v6 = vpack.c.bf16 %v9133_v19, %v9132_v39  ;;  %8644 = vmatmul.mubr.msk.f32.vlgmr.msra.gmra.mrb[66].mxu0 %vm3012_vm7, %v6595_v61 }
0x1cdc   :  { %v8915_v48 = vpack.c.bf16 %v9128_v29, %v9127_v22  ;;  %8651 = vmatmul.mubr.msk.f32.vlgmr.msra.gmra.mrb[78].mxu1 %vm3012_vm7, %v6596_v9  ;;  %8657 = vmatprep.mubr.msk.f32.mxu0 %vm9376_vm1, %v9377_v51 }
0x1cdd   :  { %8921 = vmatpush3.bf16.msk.msra.mxu1 %vm10124_vm10, %v8919_v6  ;;  %8664 = vmatprep.mubr.msk.f32.mxu1 %vm9376_vm1, %v9377_v51  ;;  %v9136_v27 = vpop.permute.xlu1 %9135 }
0x1cde   :  { %8917 = vmatpush3.bf16.msk.msra.mxu0 %vm10124_vm10, %v8915_v48  ;;  %9140 = vrot.lane.b32.xlu0 %v9139_v47, %s9372_s0  ;;  %v9138_v0 = vunpack.i.h.bf16 %v9136_v27  ;;  %v9137_v55 = vunpack.i.l.bf16 %v9136_v27  ;;  %v7522_v48 = vld [vmem:[%s10929_s6 + $0x8] sm:$0xff]  ;;  %v7528_v27 = vld [vmem:[%s10929_s6 + $0x38] sm:$0xff] }
0x1cdf   :  { %v9321_v33 = vpop.eup %9320 }
0x1ce0   :  { %v9323_v30 = vpop.eup %9322  ;;  %v6598_v8 = vmul.f32 %v9321_v33, %v10757_v62  ;;  %v8922_v40 = vpack.c.bf16 %v9138_v0, %v9137_v55  ;;  %v7523_v33 = vld [vmem:[%s10929_s6 + $0x10] sm:$0xff] }
0x1ce1   :  { %v6597_v38 = vmul.f32 %v9323_v30, %v10759_v17 }
0x1ce2   :  { %8665 = vmatmul.mubr.msk.f32.vlgmr.msra.gmra.mrb[80].mxu1 %vm3012_vm7, %v6598_v8  ;;  %8923 = vmatprep.subr.bf16.mxu0 %v8922_v40  ;;  %v7524_v8 = vld [vmem:[%s10929_s6 + $0x18] sm:$0xff] }
0x1ce3   :  { %8658 = vmatmul.mubr.msk.f32.vlgmr.msra.gmra.mrb[68].mxu0 %vm3012_vm7, %v6597_v38  ;;  %v7526_v38 = vld [vmem:[%s10929_s6 + $0x28] sm:$0xff] }
0x1ce4   :  { %8925 = vmatpush3.bf16.msra.mxu0 %v8922_v40 }
0x1d50   :  { %v6755_v51 = vpop.f32.mrb[74].mxu1  ;;  %v9141_v17 = vpop.permute.xlu0 %9140 }
0x1d51   :  { %v8624_v56 = vpop.f32.mrb[75].mxu1  ;;  %v9143_v42 = vunpack.i.h.bf16 %v9141_v17  ;;  %v9142_v7 = vunpack.i.l.bf16 %v9141_v17 }
0x1d53   :  { %v8926_v32 = vpack.c.bf16 %v9143_v42, %v9142_v7 }
0x1d55   :  { %8927 = vmatprep.subr.bf16.mxu0 %v8926_v32 }
0x1d56   :  { %8929 = vmatpush3.bf16.msra.mxu0 %v8926_v32 }
0x1d59   :  { %v6675_v62 = vpop.f32.mrb[62].mxu0 }
0x1d5a   :  { %v8617_v12 = vpop.f32.mrb[63].mxu0 }
0x1da6   :  { %v6835_v53 = vpop.f32.mrb[64].mxu0 }
0x1da7   :  { %7241 = vrot.lane.b32.xlu1 %v6835_v53, %s9382_s8  ;;  %v8631_v1 = vpop.f32.mrb[65].mxu0 }
0x1daa   :  { %v6915_v34 = vpop.f32.mrb[76].mxu1 }
0x1dab   :  { %7243 = vrot.lane.b32.xlu0 %v6915_v34, %s9382_s8  ;;  %v8638_v24 = vpop.f32.mrb[77].mxu1 }
0x1dae   :  { %v6995_v26 = vpop.f32.mrb[66].mxu0 }
0x1daf   :  { %v7075_v45 = vpop.f32.mrb[78].mxu1  ;;  %7249 = vrot.lane.b32.xlu1 %v6995_v26, %s9383_s29  ;;  %v8645_v37 = vpop.f32.mrb[67].mxu0 }
0x1db0   :  { %7251 = vrot.lane.b32.xlu0 %v7075_v45, %s9383_s29  ;;  %v8652_v28 = vpop.f32.mrb[79].mxu1 }
0x1db5   :  { %v7235_v52 = vpop.f32.mrb[80].mxu1 }
0x1db6   :  { %v7155_v49 = vpop.f32.mrb[68].mxu0  ;;  %7259 = vrot.lane.b32.xlu0 %v7235_v52, %s9384_s14  ;;  %v8666_v23 = vpop.f32.mrb[81].mxu1 }
0x1db7   :  { %7257 = vrot.lane.b32.xlu1 %v7155_v49, %s9384_s14  ;;  %v8659_v20 = vpop.f32.mrb[69].mxu0 }
0x1dbb   :  { %7295 = vrot.lane.b32.xlu1 %v10627_v16, %s9372_s0 }
0x1e19   :  { %v7242_v50 = vpop.permute.xlu1 %7241 }
0x1e1a   :  { %v7263_v13 = vsel %vm613_vm2, %v6675_v62, %v7242_v50 }
0x1e1d   :  { %v7244_v46 = vpop.permute.xlu0 %7243 }
0x1e1e   :  { %v7264_v41 = vsel %vm613_vm2, %v6755_v51, %v7244_v46  ;;  %v7527_v51 = vld [vmem:[%s10929_s6 + $0x30] sm:$0xff] }
0x1e1f   :  { %v9169_v0 = vpack.i.bf16 %v7528_v27, %v7527_v51 }
0x1e21   :  { %v7250_v43 = vpop.permute.xlu1 %7249 }
0x1e22   :  { %v7252_v35 = vpop.permute.xlu0 %7251  ;;  %v7265_v15 = vsel %vm1942_vm3, %v7263_v13, %v7250_v43 }
0x1e23   :  { %v7266_v4 = vsel %vm1942_vm3, %v7264_v41, %v7252_v35 }
0x1e28   :  { %v7260_v2 = vpop.permute.xlu0 %7259 }
0x1e29   :  { %v7258_v59 = vpop.permute.xlu1 %7257  ;;  %v7268_v36 = vsel %vm1945_vm4, %v7266_v4, %v7260_v2 }
0x1e2a   :  { %v7267_v3 = vsel %vm1945_vm4, %v7265_v15, %v7258_v59 }
0x1e2b   :  { %8675 = vmatprep.mubr.msk.f32.mxu0 %vm171_vm0, %v7267_v3 }
0x1e2c   :  { %8676 = vmatmul.mubr.msk.f32.vlgmr.msra.gmra.mrb[70].mxu0 %vm171_vm0, %v7268_v36 }
0x1e2d   :  { %v7296_v18 = vpop.permute.xlu1 %7295 }
0x1eff   :  { %v8677_v11 = vpop.f32.mrb[70].mxu0 }
0x1f00   :  { %v7376_v21 = vadd.f32 %v8677_v11, %v7296_v18  ;;  %v7370_v44 = vpop.f32.mrb[71].mxu0 }
0x1f01   :  { %v7371_v25 = vadd.f32 %v7370_v44, %v7296_v18 }
0x1f02   :  { %v10839_v57 = vadd.f32 %v7376_v21, %v10555_v14 }
0x1f03   :  { %v10842_v60 = vadd.f32 %v7371_v25, %v10558_v54 }
0x1f04   :  { %v7385_v63 = vsel %vm171_vm0, %v10839_v57, 0.0 }
0x1f05   :  { %7386 = vadd.xlane.f32.xlu1 %v7385_v63  ;;  %v7382_v31 = vsel %vm171_vm0, %v10842_v60, 0.0 }
0x1f06   :  { %7383 = vadd.xlane.f32.xlu0 %v7382_v31 }
0x1f16   :  { %9150 = vrot.lane.b32.xlu1 %v9139_v47, %s9375_s7  ;;  %v9159_v47 = vpack.i.bf16 %v7524_v8, %v7523_v33 }
0x1f1a   :  { %7413 = vrot.lane.b32.xlu1 %v10613_v58, %s9372_s0 }
0x1f1e   :  { %7418 = vrot.lane.b32.xlu1 %v10613_v58, %s9375_s7  ;;  %v7521_v58 = vld [vmem:[%s10929_s6] sm:$0xff] }
0x1f1f   :  { %v9154_v30 = vpack.i.bf16 %v7522_v48, %v7521_v58 }
0x1f22   :  { %9160 = vrot.lane.b32.xlu1 %v9159_v47, %s9372_s0 }
0x1f26   :  { %9170 = vrot.lane.b32.xlu1 %v9169_v0, %s9372_s0 }
0x1f92   :  { %v7387_v14 = vpop.xlane.xlu1 %7386 }
0x1f93   :  { %v7389_v61 = vmul.f32 0.03125, %v7387_v14  ;;  %v7384_v54 = vpop.xlane.xlu0 %7383 }
0x1f94   :  { %v7388_v19 = vmul.f32 0.03125, %v7384_v54 }
0x1f95   :  { %v7391_v39 = vsub.f32 %v10839_v57, %v7389_v61 }
0x1f96   :  { %v7390_v5 = vsub.f32 %v10842_v60, %v7388_v19  ;;  %v9151_v62 = vpop.permute.xlu1 %9150 }
0x1f97   :  { %v7393_v9 = vmul.f32 %v7391_v39, %v7391_v39  ;;  %v9153_v32 = vunpack.i.h.bf16 %v9151_v62  ;;  %v9152_v53 = vunpack.i.l.bf16 %v9151_v62 }
0x1f98   :  { %v7392_v22 = vmul.f32 %v7390_v5, %v7390_v5 }
0x1f99   :  { %v7397_v29 = vsel %vm171_vm0, %v7393_v9, 0.0  ;;  %v8934_v45 = vpack.c.bf16 %v9153_v32, %v9152_v53 }
0x1f9a   :  { %7398 = vadd.xlane.f32.xlu0 %v7397_v29  ;;  %v7394_v6 = vsel %vm171_vm0, %v7392_v22, 0.0  ;;  %v7414_v1 = vpop.permute.xlu1 %7413  ;;  %v7907_v29 = vld [vmem:[%s10932_s9 + $0x6] ss:$0 sm:$0xff] }
0x1f9e   :  { %7395 = vadd.xlane.f32.xlu0 %v7394_v6  ;;  %v7419_v28 = vpop.permute.xlu1 %7418 }
0x1fa2   :  { %v9161_v46 = vpop.permute.xlu1 %9160 }
0x1fa3   :  { %v9163_v50 = vunpack.i.h.bf16 %v9161_v46  ;;  %v9162_v35 = vunpack.i.l.bf16 %v9161_v46 }
0x1fa5   :  { %v8942_v41 = vpack.c.bf16 %v9163_v50, %v9162_v35 }
0x1fa6   :  { %v9171_v36 = vpop.permute.xlu1 %9170 }
0x1fa7   :  { %v9173_v21 = vunpack.i.h.bf16 %v9171_v36  ;;  %v9172_v44 = vunpack.i.l.bf16 %v9171_v36 }
0x1fa9   :  { %v8950_v31 = vpack.c.bf16 %v9173_v21, %v9172_v44 }
0x1fb4   :  { %9145 = vrot.lane.b32.xlu0 %v10801_v10, %s9375_s7  ;;  %v7525_v10 = vld [vmem:[%s10929_s6 + $0x20] sm:$0xff] }
0x1fb5   :  { %v9164_v56 = vpack.i.bf16 %v7526_v38, %v7525_v10 }
0x1fb8   :  { %9155 = vrot.lane.b32.xlu0 %v9154_v30, %s9372_s0 }
0x1fbc   :  { %9165 = vrot.lane.b32.xlu0 %v9164_v56, %s9372_s0 }
0x1fc0   :  { %7435 = vrot.lane.b32.xlu0 %v10627_v16, %s9375_s7 }
0x2027   :  { %v7399_v55 = vpop.xlane.xlu0 %7398 }
0x2028   :  { %v7401_v40 = vmul.f32 0.03125, %v7399_v55 }
0x202a   :  { %v7403_v12 = vadd.f32 1e-05, %v7401_v40 }
0x202b   :  { %v7396_v17 = vpop.xlane.xlu0 %7395 }
0x202c   :  { %9324 = vrsqrt.f32 %v7403_v12  ;;  %v7400_v42 = vmul.f32 0.03125, %v7396_v17 }
0x202e   :  { %v7402_v7 = vadd.f32 1e-05, %v7400_v42 }
0x202f   :  { %v9146_v34 = vpop.permute.xlu0 %9145 }
0x2030   :  { %9326 = vrsqrt.f32 %v7402_v7  ;;  %v9148_v24 = vunpack.i.h.bf16 %v9146_v34  ;;  %v9147_v26 = vunpack.i.l.bf16 %v9146_v34 }
0x2032   :  { %v8930_v37 = vpack.c.bf16 %v9148_v24, %v9147_v26  ;;  %v7911_v24 = vld [vmem:[%s10933_s10 + $0x1] ss:$0 sm:$0xff] }
0x2033   :  { %v9156_v52 = vpop.permute.xlu0 %9155 }
0x2034   :  { %8931 = vmatprep.subr.bf16.mxu1 %v8930_v37  ;;  %v9158_v23 = vunpack.i.h.bf16 %v9156_v52  ;;  %v9157_v20 = vunpack.i.l.bf16 %v9156_v52 }
0x2035   :  { %8933 = vmatpush3.bf16.msra.mxu1 %v8930_v37 }
0x2036   :  { %v9325_v16 = vpop.eup %9324  ;;  %8935 = vmatprep.subr.bf16.mxu1 %v8934_v45  ;;  %v8938_v13 = vpack.c.bf16 %v9158_v23, %v9157_v20 }
0x2037   :  { %v7407_v49 = vmul.f32 %v9325_v16, %v7391_v39  ;;  %v9166_v15 = vpop.permute.xlu0 %9165 }
0x2038   :  { %8939 = vmatprep.subr.bf16.mxu0 %v8938_v13  ;;  %v9168_v4 = vunpack.i.h.bf16 %v9166_v15  ;;  %v9167_v3 = vunpack.i.l.bf16 %v9166_v15 }
0x2039   :  { %8937 = vmatpush3.bf16.msra.mxu1 %v8934_v45  ;;  %v7417_v59 = vmul.f32 %v7414_v1, %v7407_v49  ;;  %8941 = vmatpush3.bf16.msra.mxu0 %v8938_v13 }
0x203a   :  { %v9327_v43 = vpop.eup %9326  ;;  %v8946_v11 = vpack.c.bf16 %v9168_v4, %v9167_v3  ;;  %8943 = vmatprep.subr.bf16.mxu0 %v8942_v41 }
0x203b   :  { %v7406_v2 = vmul.f32 %v9327_v43, %v7390_v5  ;;  %v7422_v63 = vadd.f32 %v7419_v28, %v7417_v59  ;;  %v7436_v14 = vpop.permute.xlu0 %7435 }
0x203d   :  { %v7416_v18 = vmul.f32 %v7414_v1, %v7406_v2  ;;  %8945 = vmatpush3.bf16.msra.mxu0 %v8942_v41  ;;  %v7910_v1 = vld [vmem:[%s10933_s10] ss:$0 sm:$0xff] }
0x203e   :  { %8947 = vmatprep.subr.bf16.mxu0 %v8946_v11 }
0x203f   :  { %v7421_v25 = vadd.f32 %v7419_v28, %v7416_v18 }
0x2041   :  { %8686 = vmatprep.mubr.msk.f32.mxu1 %vm171_vm0, %v7421_v25  ;;  %8949 = vmatpush3.bf16.msra.mxu0 %v8946_v11 }
0x2042   :  { %8687 = vmatmul.mubr.msk.f32.vlgmr.msra.gmra.mrb[82].mxu1 %vm171_vm0, %v7422_v63  ;;  %8951 = vmatprep.subr.bf16.mxu0 %v8950_v31 }
0x2045   :  { %8953 = vmatpush3.bf16.msra.mxu0 %v8950_v31 }
0x2115   :  { %v8688_v61 = vpop.f32.mrb[82].mxu1 }
0x2116   :  { %v7516_v54 = vadd.f32 %v8688_v61, %v7436_v14  ;;  %v7510_v19 = vpop.f32.mrb[83].mxu1 }
0x2117   :  { %v7511_v39 = vadd.f32 %v7510_v19, %v7436_v14 }
0x2118   :  { %v7520_v9 = vmax.f32 %v7516_v54, 0.0 }
0x2119   :  { %v7519_v5 = vmax.f32 %v7511_v39, 0.0 }
0x211b   :  { %8705 = vmatprep.mubr.msk.f32.mxu0 %vm4039_vm11, %v7519_v5 }
0x211c   :  { %8706 = vmatmul.mubr.msk.f32.vlgmr.msra.gmra.mrb[72].mxu0 %vm4039_vm11, %v7520_v9 }
0x21ef   :  { %v8707_v22 = vpop.f32.mrb[72].mxu0 }
0x21f0   :  { %v7646_v6 = vadd.f32 %v8707_v22, %v7907_v29  ;;  %v7640_v58 = vpop.f32.mrb[73].mxu0 }
0x21f1   :  { %v7641_v48 = vadd.f32 %v7907_v29, %v7640_v58 }
0x21f2   :  { %v7650_v33 = vadd.f32 %v7646_v6, %v10839_v57 }
0x21f3   :  { %v7649_v30 = vadd.f32 %v7641_v48, %v10842_v60 }
0x21f4   :  { %v7656_v8 = vsel %vm171_vm0, %v7650_v33, 0.0 }
0x21f5   :  { %7657 = vadd.xlane.f32.xlu0 %v7656_v8  ;;  %v7653_v10 = vsel %vm171_vm0, %v7649_v30, 0.0 }
0x21f6   :  { %7654 = vadd.xlane.f32.xlu1 %v7653_v10 }
0x2282   :  { %v7658_v38 = vpop.xlane.xlu0 %7657 }
0x2283   :  { %v7660_v47 = vmul.f32 0.03125, %v7658_v38  ;;  %v7655_v51 = vpop.xlane.xlu1 %7654 }
0x2284   :  { %v7659_v27 = vmul.f32 0.03125, %v7655_v51 }
0x2285   :  { %v7662_v56 = vsub.f32 %v7650_v33, %v7660_v47 }
0x2286   :  { %v7661_v0 = vsub.f32 %v7649_v30, %v7659_v27 }
0x2287   :  { %v7664_v62 = vmul.f32 %v7662_v56, %v7662_v56 }
0x2288   :  { %v7663_v55 = vmul.f32 %v7661_v0, %v7661_v0 }
0x2289   :  { %v7668_v57 = vsel %vm171_vm0, %v7664_v62, 0.0 }
0x228a   :  { %v7665_v40 = vsel %vm171_vm0, %v7663_v55, 0.0 }
0x228b   :  { %7666 = vadd.xlane.f32.xlu0 %v7665_v40 }
0x228f   :  { %7669 = vadd.xlane.f32.xlu0 %v7668_v57 }
0x2318   :  { %v7667_v60 = vpop.xlane.xlu0 %7666 }
0x2319   :  { %v7671_v12 = vmul.f32 0.03125, %v7667_v60 }
0x231b   :  { %v7673_v17 = vadd.f32 1e-05, %v7671_v12 }
0x231c   :  { %v7670_v42 = vpop.xlane.xlu0 %7669 }
0x231d   :  { %9328 = vrsqrt.f32 %v7673_v17  ;;  %v7672_v7 = vmul.f32 0.03125, %v7670_v42 }
0x231f   :  { %v7674_v32 = vadd.f32 1e-05, %v7672_v7 }
0x2321   :  { %9330 = vrsqrt.f32 %v7674_v32 }
0x2327   :  { %v9329_v53 = vpop.eup %9328 }
0x2328   :  { %v7677_v34 = vmul.f32 %v9329_v53, %v7661_v0 }
0x232a   :  { %v7683_v26 = vmul.f32 %v7910_v1, %v7677_v34 }
0x232b   :  { %v9331_v45 = vpop.eup %9330 }
0x232c   :  { %v7678_v37 = vmul.f32 %v9331_v45, %v7662_v56  ;;  %v7689_v28 = vadd.f32 %v7911_v24, %v7683_v26 }
0x232e   :  { %v7684_v16 = vmul.f32 %v7910_v1, %v7678_v37  ;;  %7691 = vst.msk [vmem:[#allocation2] sm:$0xff] %vm171_vm0, %v7689_v28 }
0x2330   :  { %v7690_v52 = vadd.f32 %v7911_v24, %v7684_v16 }
0x2332   :  { %7692 = vst.msk [vmem:[#allocation2 + $0x8] sm:$0xff] %vm171_vm0, %v7690_v52 }
0x2333   :  { %9359 = shalt.err (!%p9356_p4)
}
0x2334   :  { %s9360_s19 = scalar_lea.hbm %s10934_s11, 256 }
0x2335   :  { %p9361_p5 = scmp.ne.s32.totalorder %s10934_s11, %s9360_s19  ;;  %p9364_p6 = scmp.lt.u32.totalorder %s9360_s19, %s10934_s11 }
0x2337   :  { %p9366_p7 = pnand %p9364_p6, %p9361_p5 }
0x2339   :  { %9369 = shalt.err (!%p9366_p7)
}
0x233a   :  { %s9387_s14 = smov 128  }
0x233b   :  { %7704 = dma.vmem_to_hbm [thread:$0]  %s7699_s16, 256, %s10934_s11, [#allocation3], %s9387_s14, %s9387_s14, %s9382_s8  }
0x233c   :  { %9370 = dma.done.wait [#allocation3], 256  }
0x233d   :  { %9371 = vsyncadd [#allocation3], 4294967040 }
0x233e   :  { %7708 = vsyncpa [#allocation3], 1 }

</bundles_post_ra>
